<compile_context>
chip_gen: v7x
topology: tpu7x:2x2x1
jax: 0.10.0
libtpu: 0.0.40
codegen_flags: <defaults>
</compile_context>

<pallas_src>
import functools

import jax
import jax.numpy as jnp
from jax import lax
from jax.experimental import pallas as pl
from jax.experimental.pallas import tpu as pltpu

# Full-f32 matmuls everywhere (kernel AND reference) so accumulated error stays
# far below the res-block amplification threshold.
_PREC = lax.Precision.HIGHEST


# ---------------------------------------------------------------------------
# Kernel 1: flash-style non-local attention
#   theta = x_q @ (w_theta/T) + b_theta/T         (cached in scratch per q tile)
#   [phi | g] = x_kv @ w_pg + b_pg                (fused phi/g projection)
#   online softmax over kv tiles; mask folded into g; W 1x1 conv as epilogue.
# ---------------------------------------------------------------------------
def _flash_nonlocal_kernel(x_q_ref, x_kv_ref, mask_ref,
                           wth_ref, bth_ref, wpg_ref, bpg_ref,
                           ww_ref, bw_ref,
                           o_ref,
                           theta_sc, m_sc, l_sc, acc_sc):
    cint = wth_ref.shape[1]
    kv = pl.program_id(2)

    @pl.when(kv == 0)
    def _():
        xq = x_q_ref[0]                                               # (TQ, Cin)
        theta_sc[...] = jnp.dot(xq, wth_ref[...],
                                preferred_element_type=jnp.float32,
                                precision=_PREC) + bth_ref[...]
        m_sc[...] = jnp.full(m_sc.shape, -jnp.inf, dtype=jnp.float32)
        l_sc[...] = jnp.zeros(l_sc.shape, dtype=jnp.float32)
        acc_sc[...] = jnp.zeros(acc_sc.shape, dtype=jnp.float32)

    xkv = x_kv_ref[0]                                                 # (TKV, Cin)
    pg = jnp.dot(xkv, wpg_ref[...], preferred_element_type=jnp.float32,
                 precision=_PREC) + bpg_ref[...]
    phi = pg[:, :cint]                                                # (TKV, Cint)
    g = pg[:, cint:]                                                  # (TKV, Cint)
    # mask is applied AFTER softmax in the reference => fold it into g, not p.
    mg = g * mask_ref[0]                                              # (TKV, Cint)

    # s[i, j] = <theta_i, phi_j>   (1/temperature already folded into theta)
    s = lax.dot_general(theta_sc[...], phi,
                        (((1,), (1,)), ((), ())),
                        preferred_element_type=jnp.float32,
                        precision=_PREC)                              # (TQ, TKV)

    m_new = jnp.maximum(m_sc[...], jnp.max(s, axis=-1, keepdims=True))
    alpha = jnp.exp(m_sc[...] - m_new)
    p = jnp.exp(s - m_new)
    l_sc[...] = alpha * l_sc[...] + jnp.sum(p, axis=-1, keepdims=True)
    acc_sc[...] = alpha * acc_sc[...] + jnp.dot(p, mg,
                                                preferred_element_type=jnp.float32,
                                                precision=_PREC)
    m_sc[...] = m_new

    @pl.when(kv == pl.num_programs(2) - 1)
    def _():
        y = acc_sc[...] / l_sc[...]                                   # (TQ, Cint)
        wy = jnp.dot(y, ww_ref[...], preferred_element_type=jnp.float32,
                     precision=_PREC) + bw_ref[...]
        o_ref[0] = wy.astype(o_ref.dtype)


def nonlocal_attention(x_flat, mask_flat, params, *, temperature=1.0, tq=128, tkv=128):
    B, HW, Cin = x_flat.shape
    Cint = params["w_theta"].shape[1]
    tq = min(tq, HW)
    tkv = min(tkv, HW)
    assert HW % tq == 0 and HW % tkv == 0, "HW must be divisible by the tile sizes"
    nq, nkv = HW // tq, HW // tkv

    inv_t = jnp.float32(1.0 / temperature)
    w_theta = params["w_theta"] * inv_t        # fold 1/temperature into theta
    b_theta = params["b_theta"] * inv_t
    w_pg = jnp.concatenate([params["w_phi"], params["w_g"]], axis=1)   # fused phi|g
    b_pg = jnp.concatenate([params["b_phi"], params["b_g"]], axis=1)

    wspec = lambda shape: pl.BlockSpec(shape, lambda b, qi, kv: (0, 0))
    return pl.pallas_call(
        _flash_nonlocal_kernel,
        out_shape=jax.ShapeDtypeStruct((B, HW, Cin), jnp.float32),
        grid=(B, nq, nkv),
        in_specs=[
            pl.BlockSpec((1, tq, Cin), lambda b, qi, kv: (b, qi, 0)),    # x (q rows)
            pl.BlockSpec((1, tkv, Cin), lambda b, qi, kv: (b, kv, 0)),   # x (kv rows)
            pl.BlockSpec((1, tkv, 1), lambda b, qi, kv: (b, kv, 0)),     # mask (col)
            wspec((Cin, Cint)), wspec((1, Cint)),                        # theta
            wspec((Cin, 2 * Cint)), wspec((1, 2 * Cint)),                # phi|g fused
            wspec((Cint, Cin)), wspec((1, Cin)),                         # W
        ],
        out_specs=pl.BlockSpec((1, tq, Cin), lambda b, qi, kv: (b, qi, 0)),
        scratch_shapes=[
            pltpu.VMEM((tq, Cint), jnp.float32),     # theta tile (cached per q tile)
            pltpu.VMEM((tq, 1), jnp.float32),        # running max m
            pltpu.VMEM((tq, 1), jnp.float32),        # running sum l (un-masked)
            pltpu.VMEM((tq, Cint), jnp.float32),     # acc = sum exp * mask * g
        ],
        compiler_params=pltpu.CompilerParams(
            dimension_semantics=("parallel", "parallel", "arbitrary")),
    )(x_flat, x_flat, mask_flat, w_theta, b_theta, w_pg, b_pg,
      params["w_w"], params["b_w"])


# ---------------------------------------------------------------------------
# Kernel 2: fused ResnetBlock (+ optional 'combine' epilogue on the last block)
#   [reflpad, conv3x3(im2col), IN, ReLU, reflpad, conv3x3, IN] + residual
#   combine: z = m * x_orig + (1 - m) * (x + block(x))
# ---------------------------------------------------------------------------
def _resblock_kernel(*refs, combine):
    if combine:
        x_ref, w1_ref, b1_ref, w2_ref, b2_ref, xorig_ref, mask_ref, o_ref = refs
    else:
        x_ref, w1_ref, b1_ref, w2_ref, b2_ref, o_ref = refs
    _, H, W, C = x_ref.shape
    HW = H * W
    x = x_ref[0]                                                      # (H, W, C)

    def reflect_pad(a):                                               # -> (H+2, W+2, C)
        a = jnp.concatenate([a[1:2], a, a[H - 2:H - 1]], axis=0)
        a = jnp.concatenate([a[:, 1:2], a, a[:, W - 2:W - 1]], axis=1)
        return a

    def conv3x3(a, w_ref_, b_ref_):                                   # -> (HW, C) f32
        ap = reflect_pad(a)
        cols = [ap[dy:dy + H, dx:dx + W, :].reshape(HW, C)
                for dy in range(3) for dx in range(3)]
        patches = jnp.concatenate(cols, axis=-1)                      # (HW, 9C) im2col
        return jnp.dot(patches, w_ref_[...],
                       preferred_element_type=jnp.float32,
                       precision=_PREC) + b_ref_[...]

    def inorm(a):                     # InstanceNorm2d(affine=False), eps=1e-5, biased var
        mu = jnp.mean(a, axis=0, keepdims=True)
        var = jnp.mean((a - mu) ** 2, axis=0, keepdims=True)
        return (a - mu) * lax.rsqrt(var + 1e-5)

    h = jnp.maximum(inorm(conv3x3(x, w1_ref, b1_ref)), 0.0)           # (HW, C)
    h = inorm(conv3x3(h.reshape(H, W, C), w2_ref, b2_ref))            # (HW, C)
    wy = x.reshape(HW, C) + h                                         # residual add

    if combine:
        m = mask_ref[0]                                               # (HW, 1)
        xo = xorig_ref[0].reshape(HW, C)
        wy = m * xo + (1.0 - m) * wy
    o_ref[0] = wy.reshape(H, W, C).astype(o_ref.dtype)


def resnet_block(x_nhwc, blk, *, combine=False, x_orig=None, mask_flat=None):
    B, H, W, C = x_nhwc.shape
    kern = functools.partial(_resblock_kernel, combine=combine)
    x_spec = pl.BlockSpec((1, H, W, C), lambda b: (b, 0, 0, 0))
    w_spec = pl.BlockSpec((9 * C, C), lambda b: (0, 0))
    b_spec = pl.BlockSpec((1, C), lambda b: (0, 0))
    in_specs = [x_spec, w_spec, b_spec, w_spec, b_spec]
    args = [x_nhwc, blk["w1"], blk["b1"], blk["w2"], blk["b2"]]
    if combine:
        in_specs += [x_spec, pl.BlockSpec((1, H * W, 1), lambda b: (b, 0, 0))]
        args += [x_orig, mask_flat]
    return pl.pallas_call(
        kern,
        out_shape=jax.ShapeDtypeStruct((B, H, W, C), jnp.float32),
        grid=(B,),
        in_specs=in_specs,
        out_specs=x_spec,
        compiler_params=pltpu.CompilerParams(dimension_semantics=("parallel",)),
    )(*args)


# ---------------------------------------------------------------------------
# Mask preprocessing (plain-JAX glue) -- emulates the two F.interpolate calls.
# ---------------------------------------------------------------------------
def _bilinear_align_corners(m, H, W):
    B, C, Hm, Wm = m.shape
    ys = jnp.arange(H, dtype=jnp.float32) * ((Hm - 1) / max(H - 1, 1))
    xs = jnp.arange(W, dtype=jnp.float32) * ((Wm - 1) / max(W - 1, 1))
    y0 = jnp.floor(ys).astype(jnp.int32)
    x0 = jnp.floor(xs).astype(jnp.int32)
    y1 = jnp.minimum(y0 + 1, Hm - 1)
    x1 = jnp.minimum(x0 + 1, Wm - 1)
    wy = (ys - y0.astype(jnp.float32))[:, None]
    wx = (xs - x0.astype(jnp.float32))[None, :]
    m00 = m[:, :, y0, :][:, :, :, x0]
    m01 = m[:, :, y0, :][:, :, :, x1]
    m10 = m[:, :, y1, :][:, :, :, x0]
    m11 = m[:, :, y1, :][:, :, :, x1]
    top = m00 * (1.0 - wx) + m01 * wx
    bot = m10 * (1.0 - wx) + m11 * wx
    return top * (1.0 - wy) + bot * wy


def _nearest(m, H, W):
    B, C, Hm, Wm = m.shape
    yi = jnp.clip(jnp.floor(jnp.arange(H) * (Hm / H)).astype(jnp.int32), 0, Hm - 1)
    xi = jnp.clip(jnp.floor(jnp.arange(W) * (Wm / W)).astype(jnp.int32), 0, Wm - 1)
    return m[:, :, yi, :][:, :, :, xi]


def preprocess_mask(mask, H, W):
    # TODO(synk): F.interpolate has no Pallas equivalent; done as JAX glue.
    tmp = 1.0 - mask
    m_up = _bilinear_align_corners(mask, H, W)            # bilinear, align_corners=True
    m_bin = jnp.where(m_up > 0, 1.0, m_up)                # mask[mask > 0] = 1.0
    m_keep = 1.0 - m_bin
    tmp_up = _nearest(tmp, H, W)                          # default 'nearest' interpolate
    return m_keep * tmp_up                                # (B, 1, H, W)


# ---------------------------------------------------------------------------
# Full forward
# ---------------------------------------------------------------------------
def nonlocal_block_forward(x_nchw, mask_nchw, params, *, temperature=1.0,
                           tq=128, tkv=128):
    B, Cin, H, W = x_nchw.shape
    HW = H * W
    x_nhwc = jnp.transpose(x_nchw, (0, 2, 3, 1))                       # (B,H,W,Cin)
    x_flat = x_nhwc.reshape(B, HW, Cin)
    mask_proc = preprocess_mask(mask_nchw.astype(jnp.float32), H, W)   # (B,1,H,W)
    mask_flat = mask_proc.reshape(B, HW, 1)                            # per-token mask

    wy = nonlocal_attention(x_flat, mask_flat, params,
                            temperature=temperature, tq=tq, tkv=tkv)   # (B,HW,Cin)
    h = wy.reshape(B, H, W, Cin)
    blocks = params["res_blocks"]
    for blk in blocks[:-1]:
        h = resnet_block(h, blk)
    # Last ResnetBlock fuses the 'combine':  z = m * x + (1 - m) * W_y
    z = resnet_block(h, blocks[-1], combine=True, x_orig=x_nhwc, mask_flat=mask_flat)
    return jnp.transpose(z, (0, 3, 1, 2))                              # back to NCHW


# ---------------------------------------------------------------------------
# Deterministic parameter init (shapes match the PyTorch module).
# NOTE: the PyTorch __init__ zero-inits W (weight & bias), which would make the
# whole res_block path output exactly 0; we use small nonzero values instead so
# every kernel is exercised numerically.
# Conv weights are stored as (9*C, Cout) with row index = (3*dy+dx)*C + cin.
# ---------------------------------------------------------------------------
def init_params(key, in_channels, inter_channels):
    def mat(k, shape, scale=0.1):
        return scale * jax.random.normal(k, shape, dtype=jnp.float32)

    keys = jax.random.split(key, 9)
    params = {
        "w_theta": mat(keys[0], (in_channels, inter_channels)),
        "b_theta": mat(keys[1], (1, inter_channels)),
        "w_phi": mat(keys[2], (in_channels, inter_channels)),
        "b_phi": mat(keys[3], (1, inter_channels)),
        "w_g": mat(keys[4], (in_channels, inter_channels)),
        "b_g": mat(keys[5], (1, inter_channels)),
        "w_w": mat(keys[6], (inter_channels, in_channels)),
        "b_w": mat(keys[7], (1, in_channels)),
        "res_blocks": [],
    }
    k = keys[8]
    for _ in range(3):
        k, k1, k2, k3, k4 = jax.random.split(k, 5)
        params["res_blocks"].append({
            "w1": mat(k1, (9 * inter_channels, inter_channels)),
            "b1": mat(k2, (1, inter_channels)),
            "w2": mat(k3, (9 * inter_channels, inter_channels)),
            "b2": mat(k4, (1, inter_channels)),
        })
    return params


# ---------------------------------------------------------------------------
# Plain-JAX f32 reference (faithful to the PyTorch math) for a sanity check.
# Uses the same HIGHEST matmul precision as the kernels.
# ---------------------------------------------------------------------------
def _ref_conv3x3(xf, w, b, H, W):
    B, HW, C = xf.shape
    xp = jnp.pad(xf.reshape(B, H, W, C), ((0, 0), (1, 1), (1, 1), (0, 0)),
                 mode="reflect")
    cols = [xp[:, dy:dy + H, dx:dx + W, :].reshape(B, HW, C)
            for dy in range(3) for dx in range(3)]
    patches = jnp.concatenate(cols, axis=-1)              # (B, HW, 9C)
    return jnp.einsum("bik,ko->bio", patches, w, precision=_PREC) + b


def _ref_resblock(x_flat, blk, H, W):
    def inorm(a):
        mu = jnp.mean(a, axis=1, keepdims=True)
        var = jnp.mean((a - mu) ** 2, axis=1, keepdims=True)
        return (a - mu) * lax.rsqrt(var + 1e-5)

    h = jnp.maximum(inorm(_ref_conv3x3(x_flat, blk["w1"], blk["b1"], H, W)), 0.0)
    h = inorm(_ref_conv3x3(h, blk["w2"], blk["b2"], H, W))
    return x_flat + h


def reference_forward(x_nchw, mask_nchw, params, temperature=1.0):
    B, Cin, H, W = x_nchw.shape
    HW = H * W
    xf = jnp.transpose(x_nchw, (0, 2, 3, 1)).reshape(B, HW, Cin)
    theta = jnp.einsum("bic,co->bio", xf, params["w_theta"], precision=_PREC) + params["b_theta"]
    phi = jnp.einsum("bic,co->bio", xf, params["w_phi"], precision=_PREC) + params["b_phi"]
    g = jnp.einsum("bic,co->bio", xf, params["w_g"], precision=_PREC) + params["b_g"]
    f = jnp.einsum("bic,bjc->bij", theta, phi, precision=_PREC) / temperature
    fdc = jax.nn.softmax(f, axis=-1)
    mask_proc = preprocess_mask(mask_nchw.astype(jnp.float32), H, W)
    fdc = fdc * mask_proc.reshape(B, 1, HW)
    y = jnp.einsum("bij,bjc->bic", fdc, g, precision=_PREC)
    h = jnp.einsum("bic,co->bio", y, params["w_w"], precision=_PREC) + params["b_w"]
    for blk in params["res_blocks"]:
        h = _ref_resblock(h, blk, H, W)
    m = mask_proc.reshape(B, HW, 1)
    z = m * xf + (1.0 - m) * h
    return jnp.transpose(z.reshape(B, H, W, Cin), (0, 3, 1, 2))


if __name__ == "__main__":
    # in_channels == inter_channels (required for the module to be consistent)
    B, Cin, H, W = 2, 8, 16, 16
    Cint = 8
    key = jax.random.PRNGKey(0)
    kx, km, kp = jax.random.split(key, 3)
    x = jax.random.normal(kx, (B, Cin, H, W), dtype=jnp.float32)
    mask = (jax.random.uniform(km, (B, 1, 8, 8)) > 0.5).astype(jnp.float32)
    params = init_params(kp, Cin, Cint)

    out = nonlocal_block_forward(x, mask, params, temperature=1.0)
    out = jax.block_until_ready(out)

    ref = reference_forward(x, mask, params, temperature=1.0)
    assert out.shape == (B, Cin, H, W)
    assert bool(jnp.all(jnp.isfinite(out)))
    max_err = float(jnp.max(jnp.abs(out - ref)))
    # Full-f32 matmuls + exact softmax normalisation; the remaining mismatch is
    # summation-order noise amplified by the IN/residual chain (≪ 1e-2).
    assert bool(jnp.allclose(out, ref, rtol=1e-2, atol=1e-2)), max_err
    print("KERNEL_OK")
</pallas_src>

<mosaic_0001>
module attributes {stable_mosaic.version = 11 : i64} {
  func.func @_flash_nonlocal_kernel(%arg0: i32, %arg1: i32, %arg2: i32, %arg3: memref<1x128x8xf32, #tpu.memory_space<vmem>>, %arg4: memref<1x128x8xf32, #tpu.memory_space<vmem>>, %arg5: memref<1x128x1xf32, #tpu.memory_space<vmem>>, %arg6: memref<8x8xf32, #tpu.memory_space<vmem>>, %arg7: memref<1x8xf32, #tpu.memory_space<vmem>>, %arg8: memref<8x16xf32, #tpu.memory_space<vmem>>, %arg9: memref<1x16xf32, #tpu.memory_space<vmem>>, %arg10: memref<8x8xf32, #tpu.memory_space<vmem>>, %arg11: memref<1x8xf32, #tpu.memory_space<vmem>>, %arg12: memref<1x128x8xf32, #tpu.memory_space<vmem>>, %arg13: memref<128x8xf32, #tpu.memory_space<vmem>>, %arg14: memref<128x1xf32, #tpu.memory_space<vmem>>, %arg15: memref<128x1xf32, #tpu.memory_space<vmem>>, %arg16: memref<128x8xf32, #tpu.memory_space<vmem>>) attributes {dimension_semantics = [#tpu.dimension_semantics<parallel>, #tpu.dimension_semantics<parallel>, #tpu.dimension_semantics<arbitrary>], iteration_bounds = array<i64: 2, 2, 2>, scalar_prefetch = 0 : i64, scratch_operands = 4 : i64, tpu.core_type = #tpu.core_type<tc>, window_params = [{transform_indices = @transform_0, window_bounds = array<i64: 1, 128, 8>}, {transform_indices = @transform_1, window_bounds = array<i64: 1, 128, 8>}, {transform_indices = @transform_2, window_bounds = array<i64: 1, 128, 1>}, {pipeline_mode = #tpu.pipeline_mode<synchronous>, transform_indices = @transform_3, window_bounds = array<i64: 8, 8>}, {pipeline_mode = #tpu.pipeline_mode<synchronous>, transform_indices = @transform_4, window_bounds = array<i64: 1, 8>}, {pipeline_mode = #tpu.pipeline_mode<synchronous>, transform_indices = @transform_5, window_bounds = array<i64: 8, 16>}, {pipeline_mode = #tpu.pipeline_mode<synchronous>, transform_indices = @transform_6, window_bounds = array<i64: 1, 16>}, {pipeline_mode = #tpu.pipeline_mode<synchronous>, transform_indices = @transform_7, window_bounds = array<i64: 8, 8>}, {pipeline_mode = #tpu.pipeline_mode<synchronous>, transform_indices = @transform_8, window_bounds = array<i64: 1, 8>}, {transform_indices = @transform_9, window_bounds = array<i64: 1, 128, 8>}]} {
    %c0_i32 = arith.constant 0 : i32
    %0 = arith.cmpi eq, %arg2, %c0_i32 : i32
    %1 = arith.extui %0 : i1 to i32
    %c0_i32_0 = arith.constant 0 : i32
    %2 = arith.cmpi ne, %1, %c0_i32_0 : i32
    scf.if %2 {
      %c0_31 = arith.constant 0 : index
      %c0_32 = arith.constant 0 : index
      %c0_33 = arith.constant 0 : index
      %44 = vector.load %arg3[%c0_31, %c0_32, %c0_33] : memref<1x128x8xf32, #tpu.memory_space<vmem>>, vector<1x128x8xf32>
      %45 = vector.shape_cast %44 : vector<1x128x8xf32> to vector<128x8xf32>
      %c0_34 = arith.constant 0 : index
      %c0_35 = arith.constant 0 : index
      %46 = vector.load %arg6[%c0_34, %c0_35] : memref<8x8xf32, #tpu.memory_space<vmem>>, vector<8x8xf32>
      %cst_36 = arith.constant dense<0.000000e+00> : vector<128x8xf32>
      %47 = tpu.matmul %45, %46, %cst_36 {dimension_numbers = #tpu.dot_dimension_numbers<[1], [0], [0], [1], [0, 0, 1, 1], [], []>, precision = #tpu.contract_precision<fp32>} : vector<128x8xf32>, vector<8x8xf32>, vector<128x8xf32> -> vector<128x8xf32>
      %c0_37 = arith.constant 0 : index
      %c0_38 = arith.constant 0 : index
      %48 = vector.load %arg7[%c0_37, %c0_38] : memref<1x8xf32, #tpu.memory_space<vmem>>, vector<1x8xf32>
      %49 = vector.broadcast %48 : vector<1x8xf32> to vector<128x8xf32>
      %50 = arith.addf %47, %49 : vector<128x8xf32>
      %c0_39 = arith.constant 0 : index
      %c0_40 = arith.constant 0 : index
      %51 = vector.load %arg13[%c0_39, %c0_40] : memref<128x8xf32, #tpu.memory_space<vmem>>, vector<128x8xf32>
      tpu.vector_store %arg13[%c0_39, %c0_40], %50 {strides = array<i32>} : memref<128x8xf32, #tpu.memory_space<vmem>>, vector<128x8xf32>,
      %cst_41 = arith.constant 0xFF800000 : f32
      %52 = vector.broadcast %cst_41 : f32 to vector<128x1xf32>
      %c0_42 = arith.constant 0 : index
      %c0_43 = arith.constant 0 : index
      %53 = vector.load %arg14[%c0_42, %c0_43] : memref<128x1xf32, #tpu.memory_space<vmem>>, vector<128x1xf32>
      tpu.vector_store %arg14[%c0_42, %c0_43], %52 {strides = array<i32>} : memref<128x1xf32, #tpu.memory_space<vmem>>, vector<128x1xf32>,
      %cst_44 = arith.constant 0.000000e+00 : f32
      %54 = vector.broadcast %cst_44 : f32 to vector<128x1xf32>
      %c0_45 = arith.constant 0 : index
      %c0_46 = arith.constant 0 : index
      %55 = vector.load %arg15[%c0_45, %c0_46] : memref<128x1xf32, #tpu.memory_space<vmem>>, vector<128x1xf32>
      tpu.vector_store %arg15[%c0_45, %c0_46], %54 {strides = array<i32>} : memref<128x1xf32, #tpu.memory_space<vmem>>, vector<128x1xf32>,
      %cst_47 = arith.constant 0.000000e+00 : f32
      %56 = vector.broadcast %cst_47 : f32 to vector<128x8xf32>
      %c0_48 = arith.constant 0 : index
      %c0_49 = arith.constant 0 : index
      %57 = vector.load %arg16[%c0_48, %c0_49] : memref<128x8xf32, #tpu.memory_space<vmem>>, vector<128x8xf32>
      tpu.vector_store %arg16[%c0_48, %c0_49], %56 {strides = array<i32>} : memref<128x8xf32, #tpu.memory_space<vmem>>, vector<128x8xf32>,
    } else {
    }
    %c0 = arith.constant 0 : index
    %c0_1 = arith.constant 0 : index
    %c0_2 = arith.constant 0 : index
    %3 = vector.load %arg4[%c0, %c0_1, %c0_2] : memref<1x128x8xf32, #tpu.memory_space<vmem>>, vector<1x128x8xf32>
    %4 = vector.shape_cast %3 : vector<1x128x8xf32> to vector<128x8xf32>
    %c0_3 = arith.constant 0 : index
    %c0_4 = arith.constant 0 : index
    %5 = vector.load %arg8[%c0_3, %c0_4] : memref<8x16xf32, #tpu.memory_space<vmem>>, vector<8x16xf32>
    %cst = arith.constant dense<0.000000e+00> : vector<128x16xf32>
    %6 = tpu.matmul %4, %5, %cst {dimension_numbers = #tpu.dot_dimension_numbers<[1], [0], [0], [1], [0, 0, 1, 1], [], []>, precision = #tpu.contract_precision<fp32>} : vector<128x8xf32>, vector<8x16xf32>, vector<128x16xf32> -> vector<128x16xf32>
    %c0_5 = arith.constant 0 : index
    %c0_6 = arith.constant 0 : index
    %7 = vector.load %arg9[%c0_5, %c0_6] : memref<1x16xf32, #tpu.memory_space<vmem>>, vector<1x16xf32>
    %8 = vector.broadcast %7 : vector<1x16xf32> to vector<128x16xf32>
    %9 = arith.addf %6, %8 : vector<128x16xf32>
    %10 = vector.extract_strided_slice %9 {offsets = [0, 0], sizes = [128, 8], strides = [1, 1]} : vector<128x16xf32> to vector<128x8xf32>
    %11 = vector.extract_strided_slice %9 {offsets = [0, 8], sizes = [128, 8], strides = [1, 1]} : vector<128x16xf32> to vector<128x8xf32>
    %c0_7 = arith.constant 0 : index
    %c0_8 = arith.constant 0 : index
    %c0_9 = arith.constant 0 : index
    %12 = vector.load %arg5[%c0_7, %c0_8, %c0_9] : memref<1x128x1xf32, #tpu.memory_space<vmem>>, vector<1x128x1xf32>
    %13 = vector.shape_cast %12 : vector<1x128x1xf32> to vector<128x1xf32>
    %14 = vector.broadcast %13 : vector<128x1xf32> to vector<128x8xf32>
    %15 = arith.mulf %11, %14 : vector<128x8xf32>
    %c0_10 = arith.constant 0 : index
    %c0_11 = arith.constant 0 : index
    %16 = vector.load %arg13[%c0_10, %c0_11] : memref<128x8xf32, #tpu.memory_space<vmem>>, vector<128x8xf32>
    %cst_12 = arith.constant dense<0.000000e+00> : vector<128x128xf32>
    %17 = tpu.matmul %16, %10, %cst_12 {dimension_numbers = #tpu.dot_dimension_numbers<[1], [1], [0], [0], [0, 0, 1, 0], [], []>, precision = #tpu.contract_precision<fp32>} : vector<128x8xf32>, vector<128x8xf32>, vector<128x128xf32> -> vector<128x128xf32>
    %c0_13 = arith.constant 0 : index
    %c0_14 = arith.constant 0 : index
    %18 = vector.load %arg14[%c0_13, %c0_14] : memref<128x1xf32, #tpu.memory_space<vmem>>, vector<128x1xf32>
    %cst_15 = arith.constant dense<0xFF800000> : vector<128xf32>
    %19 = vector.multi_reduction <maximumf>, %17, %cst_15 [1] : vector<128x128xf32> to vector<128xf32>
    %20 = vector.shape_cast %19 : vector<128xf32> to vector<128x1xf32>
    %21 = arith.maximumf %18, %20 : vector<128x1xf32>
    %c0_16 = arith.constant 0 : index
    %c0_17 = arith.constant 0 : index
    %22 = vector.load %arg14[%c0_16, %c0_17] : memref<128x1xf32, #tpu.memory_space<vmem>>, vector<128x1xf32>
    %23 = arith.subf %22, %21 : vector<128x1xf32>
    %24 = math.exp %23 : vector<128x1xf32>
    %25 = vector.broadcast %21 : vector<128x1xf32> to vector<128x128xf32>
    %26 = arith.subf %17, %25 : vector<128x128xf32>
    %27 = math.exp %26 : vector<128x128xf32>
    %c0_18 = arith.constant 0 : index
    %c0_19 = arith.constant 0 : index
    %28 = vector.load %arg15[%c0_18, %c0_19] : memref<128x1xf32, #tpu.memory_space<vmem>>, vector<128x1xf32>
    %29 = arith.mulf %24, %28 : vector<128x1xf32>
    %cst_20 = arith.constant dense<0.000000e+00> : vector<128xf32>
    %30 = vector.multi_reduction <add>, %27, %cst_20 [1] : vector<128x128xf32> to vector<128xf32>
    %31 = vector.shape_cast %30 : vector<128xf32> to vector<128x1xf32>
    %32 = arith.addf %29, %31 : vector<128x1xf32>
    %c0_21 = arith.constant 0 : index
    %c0_22 = arith.constant 0 : index
    %33 = vector.load %arg15[%c0_21, %c0_22] : memref<128x1xf32, #tpu.memory_space<vmem>>, vector<128x1xf32>
    tpu.vector_store %arg15[%c0_21, %c0_22], %32 {strides = array<i32>} : memref<128x1xf32, #tpu.memory_space<vmem>>, vector<128x1xf32>,
    %c0_23 = arith.constant 0 : index
    %c0_24 = arith.constant 0 : index
    %34 = vector.load %arg16[%c0_23, %c0_24] : memref<128x8xf32, #tpu.memory_space<vmem>>, vector<128x8xf32>
    %35 = vector.broadcast %24 : vector<128x1xf32> to vector<128x8xf32>
    %36 = arith.mulf %35, %34 : vector<128x8xf32>
    %cst_25 = arith.constant dense<0.000000e+00> : vector<128x8xf32>
    %37 = tpu.matmul %27, %15, %cst_25 {dimension_numbers = #tpu.dot_dimension_numbers<[1], [0], [0], [1], [0, 0, 1, 1], [], []>, precision = #tpu.contract_precision<fp32>} : vector<128x128xf32>, vector<128x8xf32>, vector<128x8xf32> -> vector<128x8xf32>
    %38 = arith.addf %36, %37 : vector<128x8xf32>
    %c0_26 = arith.constant 0 : index
    %c0_27 = arith.constant 0 : index
    %39 = vector.load %arg16[%c0_26, %c0_27] : memref<128x8xf32, #tpu.memory_space<vmem>>, vector<128x8xf32>
    tpu.vector_store %arg16[%c0_26, %c0_27], %38 {strides = array<i32>} : memref<128x8xf32, #tpu.memory_space<vmem>>, vector<128x8xf32>,
    %c0_28 = arith.constant 0 : index
    %c0_29 = arith.constant 0 : index
    %40 = vector.load %arg14[%c0_28, %c0_29] : memref<128x1xf32, #tpu.memory_space<vmem>>, vector<128x1xf32>
    tpu.vector_store %arg14[%c0_28, %c0_29], %21 {strides = array<i32>} : memref<128x1xf32, #tpu.memory_space<vmem>>, vector<128x1xf32>,
    %c1_i32 = arith.constant 1 : i32
    %41 = arith.cmpi eq, %arg2, %c1_i32 : i32
    %42 = arith.extui %41 : i1 to i32
    %c0_i32_30 = arith.constant 0 : i32
    %43 = arith.cmpi ne, %42, %c0_i32_30 : i32
    scf.if %43 {
      %c0_31 = arith.constant 0 : index
      %c0_32 = arith.constant 0 : index
      %44 = vector.load %arg16[%c0_31, %c0_32] : memref<128x8xf32, #tpu.memory_space<vmem>>, vector<128x8xf32>
      %c0_33 = arith.constant 0 : index
      %c0_34 = arith.constant 0 : index
      %45 = vector.load %arg15[%c0_33, %c0_34] : memref<128x1xf32, #tpu.memory_space<vmem>>, vector<128x1xf32>
      %46 = vector.broadcast %45 : vector<128x1xf32> to vector<128x8xf32>
      %47 = arith.divf %44, %46 : vector<128x8xf32>
      %c0_35 = arith.constant 0 : index
      %c0_36 = arith.constant 0 : index
      %48 = vector.load %arg10[%c0_35, %c0_36] : memref<8x8xf32, #tpu.memory_space<vmem>>, vector<8x8xf32>
      %cst_37 = arith.constant dense<0.000000e+00> : vector<128x8xf32>
      %49 = tpu.matmul %47, %48, %cst_37 {dimension_numbers = #tpu.dot_dimension_numbers<[1], [0], [0], [1], [0, 0, 1, 1], [], []>, precision = #tpu.contract_precision<fp32>} : vector<128x8xf32>, vector<8x8xf32>, vector<128x8xf32> -> vector<128x8xf32>
      %c0_38 = arith.constant 0 : index
      %c0_39 = arith.constant 0 : index
      %50 = vector.load %arg11[%c0_38, %c0_39] : memref<1x8xf32, #tpu.memory_space<vmem>>, vector<1x8xf32>
      %51 = vector.broadcast %50 : vector<1x8xf32> to vector<128x8xf32>
      %52 = arith.addf %49, %51 : vector<128x8xf32>
      %c0_40 = arith.constant 0 : index
      %c0_41 = arith.constant 0 : index
      %c0_42 = arith.constant 0 : index
      %53 = vector.load %arg12[%c0_40, %c0_41, %c0_42] : memref<1x128x8xf32, #tpu.memory_space<vmem>>, vector<1x128x8xf32>
      %54 = vector.shape_cast %53 : vector<1x128x8xf32> to vector<128x8xf32>
      %55 = vector.shape_cast %52 : vector<128x8xf32> to vector<1x128x8xf32>
      tpu.vector_store %arg12[%c0_40, %c0_41, %c0_42], %55 {strides = array<i32>} : memref<1x128x8xf32, #tpu.memory_space<vmem>>, vector<1x128x8xf32>,
    } else {
    }
    return
  }
  func.func @transform_0(%arg0: i32, %arg1: i32, %arg2: i32) -> (i32, i32, i32) {
    %c0_i32 = arith.constant 0 : i32
    %c0_i32_0 = arith.constant 0 : i32
    return %arg0, %arg1, %c0_i32 : i32, i32, i32
  }
  func.func @transform_1(%arg0: i32, %arg1: i32, %arg2: i32) -> (i32, i32, i32) {
    %c0_i32 = arith.constant 0 : i32
    %c0_i32_0 = arith.constant 0 : i32
    return %arg0, %arg2, %c0_i32 : i32, i32, i32
  }
  func.func @transform_2(%arg0: i32, %arg1: i32, %arg2: i32) -> (i32, i32, i32) {
    %c0_i32 = arith.constant 0 : i32
    %c0_i32_0 = arith.constant 0 : i32
    return %arg0, %arg2, %c0_i32 : i32, i32, i32
  }
  func.func @transform_3(%arg0: i32, %arg1: i32, %arg2: i32) -> (i32, i32) {
    %c0_i32 = arith.constant 0 : i32
    %c0_i32_0 = arith.constant 0 : i32
    %c0_i32_1 = arith.constant 0 : i32
    return %c0_i32, %c0_i32_0 : i32, i32
  }
  func.func @transform_4(%arg0: i32, %arg1: i32, %arg2: i32) -> (i32, i32) {
    %c0_i32 = arith.constant 0 : i32
    %c0_i32_0 = arith.constant 0 : i32
    %c0_i32_1 = arith.constant 0 : i32
    return %c0_i32, %c0_i32_0 : i32, i32
  }
  func.func @transform_5(%arg0: i32, %arg1: i32, %arg2: i32) -> (i32, i32) {
    %c0_i32 = arith.constant 0 : i32
    %c0_i32_0 = arith.constant 0 : i32
    %c0_i32_1 = arith.constant 0 : i32
    return %c0_i32, %c0_i32_0 : i32, i32
  }
  func.func @transform_6(%arg0: i32, %arg1: i32, %arg2: i32) -> (i32, i32) {
    %c0_i32 = arith.constant 0 : i32
    %c0_i32_0 = arith.constant 0 : i32
    %c0_i32_1 = arith.constant 0 : i32
    return %c0_i32, %c0_i32_0 : i32, i32
  }
  func.func @transform_7(%arg0: i32, %arg1: i32, %arg2: i32) -> (i32, i32) {
    %c0_i32 = arith.constant 0 : i32
    %c0_i32_0 = arith.constant 0 : i32
    %c0_i32_1 = arith.constant 0 : i32
    return %c0_i32, %c0_i32_0 : i32, i32
  }
  func.func @transform_8(%arg0: i32, %arg1: i32, %arg2: i32) -> (i32, i32) {
    %c0_i32 = arith.constant 0 : i32
    %c0_i32_0 = arith.constant 0 : i32
    %c0_i32_1 = arith.constant 0 : i32
    return %c0_i32, %c0_i32_0 : i32, i32
  }
  func.func @transform_9(%arg0: i32, %arg1: i32, %arg2: i32) -> (i32, i32, i32) {
    %c0_i32 = arith.constant 0 : i32
    %c0_i32_0 = arith.constant 0 : i32
    return %arg0, %arg1, %c0_i32 : i32, i32, i32
  }
}

</mosaic_0001>

<bundles_post_ra>
// kernel: tpu_custom_call.1
= control target key start
LH: loop header
LB: loop body
LE: loop exit
PB: predicated region body
PF: predicated region fallthrough
CT: control target
= control target key end

     0   :  { %s10606_s30 = smov 0   ;;  %s10608_s10 = smov 0   ;;  %s12965_s0 = inlined_call_operand.vmem [shape: f32[2,256,8], index: 0, kind: input, shape index: {}]   ;;  %s12966_s1 = inlined_call_operand.vmem [shape: f32[2,256,8], index: 1, kind: input, shape index: {}]   ;;  %s12967_s2 = inlined_call_operand.vmem [shape: f32[2,256,1], index: 2, kind: input, shape index: {}]   ;;  %s12968_s3 = inlined_call_operand.vmem [shape: f32[8,8], index: 3, kind: input, shape index: {}]   ;;  %s12969_s4 = inlined_call_operand.vmem [shape: f32[1,8], index: 4, kind: input, shape index: {}]   ;;  %s12970_s5 = inlined_call_operand.vmem [shape: f32[8,16], index: 5, kind: input, shape index: {}]   ;;  %s12971_s6 = inlined_call_operand.vmem [shape: f32[1,16], index: 6, kind: input, shape index: {}]   ;;  %s12972_s7 = inlined_call_operand.vmem [shape: f32[8,8], index: 7, kind: input, shape index: {}]   ;;  %s12973_s8 = inlined_call_operand.vmem [shape: f32[1,8], index: 8, kind: input, shape index: {}]   ;;  %s12974_s9 = inlined_call_operand.vmem [shape: f32[2,256,8], index: 9, kind: output, shape index: {}]  }
   0x1   :  { %s10610_s11 = smov 0   ;;  %s10612_s12 = smov 0  }
   0x2   :  { %s10614_s13 = smov 0   ;;  %s10616_s14 = smov 0  }
   0x3   :  { %s10618_s15 = smov 0  }
   0x4 LB: > { %13070 = sst [smem:[#allocation6_spill]] %s10545_s14  ;;  %s31_s16 = sadd.s32 1, %s10537_s12  ;;  %s10549_s15 = sphi %s10618_s15, %s19_s15   ;;  %s10545_s14 = sphi %s10616_s14, %s13245_s14   ;;  %s10541_s13 = sphi %s10614_s13, %s13249_s13   ;;  %s10537_s12 = sphi %s10612_s12, %s13248_s12   ;;  %s10533_s11 = sphi %s10610_s11, %s13242_s11   ;;  %s10529_s10 = sphi %s10608_s10, %s13247_s10   ;;  %s10525_s30 = sphi %s10606_s30, %s13246_s30  }
   0x5   : > { %p32_p0 = scmp.ge.s32.totalorder %s31_s16, 2  ;;  %s34_s17 = sadd.s32 1, %s10541_s13 }
   0x6   : > { %p7652_p1 = scmp.ge.s32.totalorder %s10549_s15, 1  ;;  %p349_p2 = scmp.lt.s32.totalorder %s10549_s15, 9 }
   0x7   : > { %s13251_s16 = smov (%p32_p0, %s31_s16), 0  ;;  %s13253_s17 = smov (!%p32_p0, %s34_s17), %s10541_s13 }
   0x8   : > { %13071 = sst [smem:[#allocation7_spill]] %s13251_s16  ;;  %p350_p3 = pnand %p7652_p1, %p349_p2 }
   0x9   : > { %p36_p4 = scmp.ge.s32.totalorder %s13253_s17, 2  ;;  %s38_s18 = sadd.s32 1, %s10545_s14 }
   0xa   : > { %353 = sbr.rel (%p350_p3) target bundleno = 2481 (0x9b1), region = 56 }
   0xb   : > { %s13255_s17 = smov (%p36_p4, %s13253_s17), 0  ;;  %s13257_s18 = smov (!%p36_p4, %s38_s18), %s10545_s14 }
   0xc   : > { %13072 = sst [smem:[#allocation8_spill]] %s13255_s17  ;;  %p40_p5 = scmp.ge.s32.totalorder %s13257_s18, 2 }
   0xe   : > { %s13259_s18 = smov (%p40_p5, %s13257_s18), 0 }
   0xf   : > { %13073 = sst [smem:[#allocation9_spill]] %s13259_s18 }
  0x11   : > { %s7653_s19 = sshll.u32 %s10529_s10, 4  ;;  %p412_p6 = scmp.lt.s32.totalorder %s10533_s11, 1 }
  0x12   : > { %p414_p7 = scmp.lt.s32.totalorder %s7653_s19, 31  ;;  %s7656_s20 = sshll.u32 %s10525_s30, 4 }
  0x13   : > { %s13261_s11 = smov (!%p412_p6, %s10533_s11), 1  ;;  %p424_p8 = scmp.lt.s32.totalorder %s7656_s20, 31 }
  0x14   : > { %s13263_s19 = smov (!%p414_p7, %s7653_s19), 31  ;;  %s7654_s21 = sshll.u32 %s13261_s11, 5 }
  0x15   : > { %s417_s22 = sadd.s32 %s7654_s21, %s13263_s19  ;;  %s13265_s20 = smov (!%p424_p8, %s7656_s20), 31 }
  0x16   : > { %s7655_s23 = sshll.u32 %s417_s22, 3  ;;  %s427_s10 = sadd.s32 %s7654_s21, %s13265_s20 }
  0x17   : > { %s10654_s26 = scalar_lea.vmem %s12965_s0, %s7655_s23  ;;  %s10659_s29 = scalar_lea.vmem %s12974_s9, %s7655_s23 }
  0x18   : > { %s7658_s18 = sshll.u32 %s427_s10, 3  ;;  %p7665_p9 = scmp.ne.s32.totalorder %s10525_s30, 0 }
  0x19   : > { %s10664_s11 = scalar_lea.vmem %s12966_s1, %s7658_s18  ;;  %s10669_s14 = scalar_lea.vmem %s12967_s2, %s7658_s18  ;;  %v471_v0 = vld [vmem:[%s12968_s3] sm:$0xff] (!%p7665_p9)  ;;  %vm479_vm0 = vcmask (!%p7665_p9), 64512   ;;  %v456_v2 = vld [vmem:[%s10654_s26 + $0x8] sm:$0xff] (!%p7665_p9)  ;;  %v457_v6 = vld [vmem:[%s10654_s26 + $0x10] sm:$0xff] (!%p7665_p9)  ;;  %vm1635_vm1 = vcmask (!%p7665_p9), 7168  }
  0x1a   : > { %454 = sbr.rel (%p7665_p9) target bundleno = 349 (0x15d), region = 60  ;;  %v455_v1 = vld [vmem:[%s10654_s26] sm:$0xff] (!%p7665_p9)  ;;  %v10677_v3 = vand.u32 (!%p7665_p9), 4294901760, %v471_v0  ;;  %v484_v5 = vsel (!%p7665_p9), %vm479_vm0, %v456_v2, 0  ;;  %v458_v7 = vld [vmem:[%s10654_s26 + $0x18] sm:$0xff] (!%p7665_p9)  ;;  %v487_v11 = vsel (!%p7665_p9), %vm479_vm0, %v457_v6, 0 }
  0x1b   : > { %v481_v4 = vsel (!%p7665_p9), %vm479_vm0, %v455_v1, 0  ;;  %v459_v8 = vld [vmem:[%s10654_s26 + $0x20] sm:$0xff] (!%p7665_p9)  ;;  %v10686_v10 = vand.u32 (!%p7665_p9), 4294901760, %v484_v5  ;;  %v490_v12 = vsel (!%p7665_p9), %vm479_vm0, %v458_v7, 0  ;;  %v460_v13 = vld [vmem:[%s10654_s26 + $0x28] sm:$0xff] (!%p7665_p9)  ;;  %v10696_v15 = vand.u32 (!%p7665_p9), 4294901760, %v487_v11 }
  0x1c   : > { %v10684_v9 = vand.u32 (!%p7665_p9), 4294901760, %v481_v4  ;;  %8440 = vmatprep.subr.mxu0 (!%p7665_p9), %v10677_v3  ;;  %8362 = vmatprep.subr.mxu1 (!%p7665_p9), %v10677_v3  ;;  %v10694_v14 = vsub.f32 (!%p7665_p9), %v471_v0, %v10677_v3  ;;  %v10698_v16 = vand.u32 (!%p7665_p9), 4294901760, %v490_v12  ;;  %v493_v17 = vsel (!%p7665_p9), %vm479_vm0, %v459_v8, 0  ;;  %v461_v18 = vld [vmem:[%s10654_s26 + $0x30] sm:$0xff] (!%p7665_p9)  ;;  %v462_v39 = vld [vmem:[%s10654_s26 + $0x38] sm:$0xff] (!%p7665_p9)  ;;  %v463_v44 = vld [vmem:[%s10654_s26 + $0x40] sm:$0xff] (!%p7665_p9) }
  0x1d   : > { %8441 = vmatpush3.msra.mxu0 (!%p7665_p9), %v10677_v3  ;;  %v10707_v20 = vsub.f32 (!%p7665_p9), %v484_v5, %v10686_v10  ;;  %8363 = vmatpush3.msra.mxu1 (!%p7665_p9), %v10677_v3  ;;  %v10710_v21 = vand.u32 (!%p7665_p9), 4294901760, %v493_v17  ;;  %v496_v22 = vsel (!%p7665_p9), %vm479_vm0, %v460_v13, 0  ;;  %v10715_v24 = vsub.f32 (!%p7665_p9), %v487_v11, %v10696_v15  ;;  %v464_v49 = vld [vmem:[%s10654_s26 + $0x48] sm:$0xff] (!%p7665_p9)  ;;  %v465_v50 = vld [vmem:[%s10654_s26 + $0x50] sm:$0xff] (!%p7665_p9)  ;;  %v466_v55 = vld [vmem:[%s10654_s26 + $0x58] sm:$0xff] (!%p7665_p9) }
  0x1e   : > { %v10704_v19 = vsub.f32 (!%p7665_p9), %v481_v4, %v10684_v9  ;;  %v757_v23 = vand.u32 (!%p7665_p9), 4294901760, %v10694_v14  ;;  %v10718_v25 = vsub.f32 (!%p7665_p9), %v490_v12, %v10698_v16  ;;  %v10720_v26 = vand.u32 (!%p7665_p9), 4294901760, %v496_v22  ;;  %v467_v60 = vld [vmem:[%s10654_s26 + $0x60] sm:$0xff] (!%p7665_p9)  ;;  %v468_v61 = vld [vmem:[%s10654_s26 + $0x68] sm:$0xff] (!%p7665_p9)  ;;  %v469_v13 = vld [vmem:[%s10654_s26 + $0x70] sm:$0xff] (!%p7665_p9) }
  0x1f   : > { %v606_v28 = vand.u32 (!%p7665_p9), 4294901760, %v10707_v20  ;;  %v10725_v29 = vsub.f32 (!%p7665_p9), %v493_v17, %v10710_v21  ;;  %v499_v30 = vsel (!%p7665_p9), %vm479_vm0, %v461_v18, 0  ;;  %v616_v32 = vand.u32 (!%p7665_p9), 4294901760, %v10715_v24 }
  0x20   : > { %v596_v27 = vand.u32 (!%p7665_p9), 4294901760, %v10704_v19  ;;  %v758_v31 = vsub.f32 (!%p7665_p9), %v10694_v14, %v757_v23  ;;  %v626_v33 = vand.u32 (!%p7665_p9), 4294901760, %v10718_v25  ;;  %8466 = vmatprep.subr.mxu0 (!%p7665_p9), %v757_v23  ;;  %v10732_v34 = vsub.f32 (!%p7665_p9), %v496_v22, %v10720_v26 }
  0x21   : > { %v607_v36 = vsub.f32 %v10707_v20, %v606_v28  ;;  %v636_v37 = vand.u32 4294901760, %v10725_v29  ;;  %v10737_v38 = vand.u32 4294901760, %v499_v30  ;;  %v617_v41 = vsub.f32 %v10715_v24, %v616_v32 }
  0x22   : > { %8442 = vmatprep.mubr.f32.mxu0 %v596_v27  ;;  %v597_v35 = vsub.f32 %v10704_v19, %v596_v27  ;;  %v759_v40 = vand.u32 4294901760, %v758_v31  ;;  %v627_v42 = vsub.f32 %v10718_v25, %v626_v33  ;;  %v646_v43 = vand.u32 4294901760, %v10732_v34 }
  0x23   : > { %8443 = vmatmul.mubr.f32.vlgmr.msra.gmra.mrb[0].mxu0 %v606_v28  ;;  %v608_v46 = vand.u32 4294901760, %v607_v36  ;;  %v637_v47 = vsub.f32 %v10725_v29, %v636_v37  ;;  %v10746_v48 = vsub.f32 %v499_v30, %v10737_v38  ;;  %v618_v51 = vand.u32 4294901760, %v617_v41  ;;  %v470_v41 = vld [vmem:[%s10654_s26 + $0x78] sm:$0xff] }
  0x24   : > { %v598_v45 = vand.u32 4294901760, %v597_v35  ;;  %8445 = vmatprep.mubr.f32.mxu0 %v616_v32  ;;  %8467 = vmatpush3.msra.mxu0 %v757_v23  ;;  %v628_v52 = vand.u32 4294901760, %v627_v42  ;;  %v647_v53 = vsub.f32 %v10732_v34, %v646_v43  ;;  %v502_v54 = vsel %vm479_vm0, %v462_v39, 0 }
  0x25   : > { %8388 = vmatprep.subr.mxu1 %v759_v40  ;;  %8492 = vmatprep.subr.mxu0 %v10677_v3  ;;  %v638_v56 = vand.u32 4294901760, %v637_v47  ;;  %v656_v57 = vand.u32 4294901760, %v10746_v48  ;;  %v10755_v58 = vand.u32 4294901760, %v502_v54  ;;  %v505_v59 = vsel %vm479_vm0, %v463_v44, 0 }
  0x26   : > { %8364 = vmatprep.mubr.f32.mxu1 %v598_v45  ;;  %v648_v62 = vand.u32 4294901760, %v647_v53  ;;  %v10760_v63 = vand.u32 4294901760, %v505_v59  ;;  %v508_v0 = vsel %vm479_vm0, %v464_v49, 0  ;;  %v511_v1 = vsel %vm479_vm0, %v465_v50, 0 }
  0x27   : > { %8365 = vmatmul.mubr.f32.vlgmr.msra.gmra.mrb[0].mxu1 %v608_v46  ;;  %8446 = vmatmul.mubr.f32.gmra.mrb[2].mxu0 %v626_v33  ;;  %v10765_v2 = vsub.f32 %v502_v54, %v10755_v58  ;;  %v657_v4 = vsub.f32 %v10746_v48, %v656_v57  ;;  %v10768_v5 = vand.u32 4294901760, %v508_v0  ;;  %v10770_v6 = vand.u32 4294901760, %v511_v1 }
  0x28   : > { %8389 = vmatpush3.msra.mxu1 %v759_v40  ;;  %8367 = vmatprep.mubr.f32.mxu1 %v618_v51  ;;  %v10773_v7 = vsub.f32 %v505_v59, %v10760_v63  ;;  %v514_v8 = vsel %vm479_vm0, %v466_v55, 0  ;;  %v517_v11 = vsel %vm479_vm0, %v467_v60, 0  ;;  %v520_v12 = vsel %vm479_vm0, %v468_v61, 0 }
  0x29   : > { %8448 = vmatprep.mubr.f32.mxu0 %v636_v37  ;;  %8414 = vmatprep.subr.mxu1 %v10694_v14  ;;  %v666_v17 = vand.u32 4294901760, %v10765_v2  ;;  %v658_v18 = vand.u32 4294901760, %v657_v4  ;;  %v10782_v22 = vsub.f32 %v508_v0, %v10768_v5  ;;  %v10785_v23 = vsub.f32 %v511_v1, %v10770_v6 }
  0x2a   : > { %v676_v27 = vand.u32 4294901760, %v10773_v7  ;;  %v10788_v28 = vand.u32 4294901760, %v514_v8  ;;  %v10790_v30 = vand.u32 4294901760, %v517_v11  ;;  %v10792_v31 = vand.u32 4294901760, %v520_v12 }
  0x2b   : > { %8368 = vmatmul.mubr.f32.gmra.mrb[2].mxu1 %v628_v52  ;;  %8449 = vmatmul.mubr.f32.gmra.mrb[4].mxu0 %v646_v43  ;;  %v667_v32 = vsub.f32 %v10765_v2, %v666_v17  ;;  %v686_v33 = vand.u32 4294901760, %v10782_v22  ;;  %v696_v35 = vand.u32 4294901760, %v10785_v23  ;;  %v523_v36 = vsel %vm479_vm0, %v469_v13, 0 }
  0x2c   : > { %8370 = vmatprep.mubr.f32.mxu1 %v638_v56  ;;  %8451 = vmatprep.mubr.f32.mxu0 %v656_v57  ;;  %v677_v37 = vsub.f32 %v10773_v7, %v676_v27  ;;  %v10800_v39 = vsub.f32 %v514_v8, %v10788_v28  ;;  %v10803_v40 = vsub.f32 %v517_v11, %v10790_v30  ;;  %v10809_v43 = vand.u32 4294901760, %v523_v36 }
  0x2d   : > { %v10807_v42 = vsub.f32 %v520_v12, %v10792_v31  ;;  %v668_v44 = vand.u32 4294901760, %v667_v32  ;;  %v687_v45 = vsub.f32 %v10782_v22, %v686_v33  ;;  %v697_v47 = vsub.f32 %v10785_v23, %v696_v35 }
  0x2e   : > { %v706_v46 = vand.u32 4294901760, %v10800_v39  ;;  %v678_v49 = vand.u32 4294901760, %v677_v37  ;;  %v716_v50 = vand.u32 4294901760, %v10803_v40  ;;  %v10816_v51 = vsub.f32 %v523_v36, %v10809_v43 }
  0x2f   : > { %8371 = vmatmul.mubr.f32.gmra.mrb[4].mxu1 %v648_v62  ;;  %8452 = vmatmul.mubr.f32.gmra.mrb[6].mxu0 %v666_v17  ;;  %v526_v52 = vsel %vm479_vm0, %v470_v41, 0  ;;  %v688_v54 = vand.u32 4294901760, %v687_v45  ;;  %v726_v56 = vand.u32 4294901760, %v10807_v42  ;;  %v698_v59 = vand.u32 4294901760, %v697_v47 }
  0x30   : > { %8373 = vmatprep.mubr.f32.mxu1 %v658_v18  ;;  %8454 = vmatprep.mubr.f32.mxu0 %v676_v27  ;;  %v10819_v53 = vand.u32 4294901760, %v526_v52  ;;  %v707_v55 = vsub.f32 %v10800_v39, %v706_v46  ;;  %v717_v60 = vsub.f32 %v10803_v40, %v716_v50  ;;  %v736_v61 = vand.u32 4294901760, %v10816_v51 }
  0x31   : > { %v727_v0 = vsub.f32 %v10807_v42, %v726_v56 }
  0x32   : > { %v10824_v57 = vsub.f32 %v526_v52, %v10819_v53  ;;  %v708_v62 = vand.u32 4294901760, %v707_v55  ;;  %v718_v4 = vand.u32 4294901760, %v717_v60  ;;  %v737_v8 = vsub.f32 %v10816_v51, %v736_v61 }
  0x33   : > { %8374 = vmatmul.mubr.f32.gmra.mrb[6].mxu1 %v668_v44  ;;  %8455 = vmatmul.mubr.f32.gmra.mrb[8].mxu0 %v686_v33  ;;  %v728_v11 = vand.u32 4294901760, %v727_v0 }
  0x34   : > { %8376 = vmatprep.mubr.f32.mxu1 %v678_v49  ;;  %8457 = vmatprep.mubr.f32.mxu0 %v696_v35  ;;  %v746_v1 = vand.u32 4294901760, %v10824_v57  ;;  %v738_v13 = vand.u32 4294901760, %v737_v8 }
  0x36   : > { %v747_v12 = vsub.f32 %v10824_v57, %v746_v1 }
  0x37   : > { %8377 = vmatmul.mubr.f32.gmra.mrb[8].mxu1 %v688_v54  ;;  %8458 = vmatmul.mubr.f32.gmra.mrb[10].mxu0 %v706_v46 }
  0x38   : > { %8379 = vmatprep.mubr.f32.mxu1 %v698_v59  ;;  %8460 = vmatprep.mubr.f32.mxu0 %v716_v50  ;;  %v748_v17 = vand.u32 4294901760, %v747_v12 }
  0x3b   : > { %8380 = vmatmul.mubr.f32.gmra.mrb[10].mxu1 %v708_v62  ;;  %8461 = vmatmul.mubr.f32.gmra.mrb[12].mxu0 %v726_v56 }
  0x3c   : > { %8382 = vmatprep.mubr.f32.mxu1 %v718_v4  ;;  %8463 = vmatprep.mubr.f32.mxu0 %v736_v61 }
  0x3f   : > { %8383 = vmatmul.mubr.f32.gmra.mrb[12].mxu1 %v728_v11  ;;  %8464 = vmatmul.mubr.f32.gmra.mrb[14].mxu0 %v746_v1 }
  0x40   : > { %8385 = vmatprep.mubr.f32.mxu1 %v738_v13  ;;  %8468 = vmatprep.mubr.f32.mxu0 %v10684_v9 }
  0x43   : > { %8386 = vmatmul.mubr.f32.gmra.mrb[14].mxu1 %v748_v17  ;;  %8469 = vmatmul.mubr.f32.vlgmr.msra.gmra.mrb[0].mxu0 %v10686_v10 }
  0x44   : > { %8390 = vmatprep.mubr.f32.mxu1 %v10684_v9  ;;  %8471 = vmatprep.mubr.f32.mxu0 %v10696_v15 }
  0x45   : > { %8493 = vmatpush3.msra.mxu0 %v10677_v3  ;;  %v10551_v3 = vmov -inf  }
  0x46   : > { %1636 = vst.msk [vmem:[#allocation3] sm:$0xff] %vm1635_vm1, %v10551_v3  ;;  %1637 = vst.msk [vmem:[#allocation3 + $0x8] sm:$0xff] %vm1635_vm1, %v10551_v3 }
  0x47   : > { %8391 = vmatmul.mubr.f32.vlgmr.msra.gmra.mrb[0].mxu1 %v10686_v10  ;;  %8472 = vmatmul.mubr.f32.gmra.mrb[2].mxu0 %v10698_v16  ;;  %1638 = vst.msk [vmem:[#allocation3 + $0x10] sm:$0xff] %vm1635_vm1, %v10551_v3  ;;  %1639 = vst.msk [vmem:[#allocation3 + $0x18] sm:$0xff] %vm1635_vm1, %v10551_v3 }
  0x48   : > { %8415 = vmatpush3.msra.mxu1 %v10694_v14  ;;  %8393 = vmatprep.mubr.f32.mxu1 %v10696_v15  ;;  %1640 = vst.msk [vmem:[#allocation3 + $0x20] sm:$0xff] %vm1635_vm1, %v10551_v3  ;;  %1641 = vst.msk [vmem:[#allocation3 + $0x28] sm:$0xff] %vm1635_vm1, %v10551_v3 }
  0x49   : > { %8474 = vmatprep.mubr.f32.mxu0 %v10710_v21  ;;  %1642 = vst.msk [vmem:[#allocation3 + $0x30] sm:$0xff] %vm1635_vm1, %v10551_v3  ;;  %1643 = vst.msk [vmem:[#allocation3 + $0x38] sm:$0xff] %vm1635_vm1, %v10551_v3 }
  0x4a   : > { %1644 = vst.msk [vmem:[#allocation3 + $0x40] sm:$0xff] %vm1635_vm1, %v10551_v3  ;;  %1645 = vst.msk [vmem:[#allocation3 + $0x48] sm:$0xff] %vm1635_vm1, %v10551_v3 }
  0x4b   : > { %8394 = vmatmul.mubr.f32.gmra.mrb[2].mxu1 %v10698_v16  ;;  %8475 = vmatmul.mubr.f32.gmra.mrb[4].mxu0 %v10720_v26  ;;  %1646 = vst.msk [vmem:[#allocation3 + $0x50] sm:$0xff] %vm1635_vm1, %v10551_v3  ;;  %1647 = vst.msk [vmem:[#allocation3 + $0x58] sm:$0xff] %vm1635_vm1, %v10551_v3 }
  0x4c   : > { %8396 = vmatprep.mubr.f32.mxu1 %v10710_v21  ;;  %8477 = vmatprep.mubr.f32.mxu0 %v10737_v38  ;;  %1648 = vst.msk [vmem:[#allocation3 + $0x60] sm:$0xff] %vm1635_vm1, %v10551_v3  ;;  %1649 = vst.msk [vmem:[#allocation3 + $0x68] sm:$0xff] %vm1635_vm1, %v10551_v3 }
  0x4d   : > { %1650 = vst.msk [vmem:[#allocation3 + $0x70] sm:$0xff] %vm1635_vm1, %v10551_v3  ;;  %1651 = vst.msk [vmem:[#allocation3 + $0x78] sm:$0xff] %vm1635_vm1, %v10551_v3 }
  0x4f   : > { %8397 = vmatmul.mubr.f32.gmra.mrb[4].mxu1 %v10720_v26  ;;  %8478 = vmatmul.mubr.f32.gmra.mrb[6].mxu0 %v10755_v58 }
  0x50   : > { %8399 = vmatprep.mubr.f32.mxu1 %v10737_v38  ;;  %8480 = vmatprep.mubr.f32.mxu0 %v10760_v63 }
  0x53   : > { %8400 = vmatmul.mubr.f32.gmra.mrb[6].mxu1 %v10755_v58  ;;  %8481 = vmatmul.mubr.f32.gmra.mrb[8].mxu0 %v10768_v5 }
  0x54   : > { %8402 = vmatprep.mubr.f32.mxu1 %v10760_v63  ;;  %8483 = vmatprep.mubr.f32.mxu0 %v10770_v6 }
  0x57   : > { %8403 = vmatmul.mubr.f32.gmra.mrb[8].mxu1 %v10768_v5  ;;  %8484 = vmatmul.mubr.f32.gmra.mrb[10].mxu0 %v10788_v28 }
  0x58   : > { %8405 = vmatprep.mubr.f32.mxu1 %v10770_v6  ;;  %8486 = vmatprep.mubr.f32.mxu0 %v10790_v30 }
  0x5b   : > { %8406 = vmatmul.mubr.f32.gmra.mrb[10].mxu1 %v10788_v28  ;;  %8487 = vmatmul.mubr.f32.gmra.mrb[12].mxu0 %v10792_v31 }
  0x5c   : > { %8408 = vmatprep.mubr.f32.mxu1 %v10790_v30  ;;  %8489 = vmatprep.mubr.f32.mxu0 %v10809_v43 }
  0x5f   : > { %8409 = vmatmul.mubr.f32.gmra.mrb[12].mxu1 %v10792_v31  ;;  %8490 = vmatmul.mubr.f32.gmra.mrb[14].mxu0 %v10819_v53 }
  0x60   : > { %8411 = vmatprep.mubr.f32.mxu1 %v10809_v43  ;;  %8494 = vmatprep.mubr.f32.mxu0 %v10684_v9  ;;  %v10552_v9 = vmov 0.0  }
  0x61   : > { %1652 = vst.msk [vmem:[#allocation4] sm:$0xff] %vm1635_vm1, %v10552_v9  ;;  %1653 = vst.msk [vmem:[#allocation4 + $0x8] sm:$0xff] %vm1635_vm1, %v10552_v9 }
  0x62   : > { %1654 = vst.msk [vmem:[#allocation4 + $0x10] sm:$0xff] %vm1635_vm1, %v10552_v9  ;;  %1655 = vst.msk [vmem:[#allocation4 + $0x18] sm:$0xff] %vm1635_vm1, %v10552_v9 }
  0x63   : > { %8412 = vmatmul.mubr.f32.gmra.mrb[14].mxu1 %v10819_v53  ;;  %8495 = vmatmul.mubr.f32.vlgmr.msra.gmra.mrb[0].mxu0 %v10686_v10  ;;  %1656 = vst.msk [vmem:[#allocation4 + $0x20] sm:$0xff] %vm1635_vm1, %v10552_v9  ;;  %1657 = vst.msk [vmem:[#allocation4 + $0x28] sm:$0xff] %vm1635_vm1, %v10552_v9 }
  0x64   : > { %8416 = vmatprep.mubr.f32.mxu1 %v10704_v19  ;;  %8497 = vmatprep.mubr.f32.mxu0 %v10696_v15  ;;  %1658 = vst.msk [vmem:[#allocation4 + $0x30] sm:$0xff] %vm1635_vm1, %v10552_v9  ;;  %1659 = vst.msk [vmem:[#allocation4 + $0x38] sm:$0xff] %vm1635_vm1, %v10552_v9  ;;  %v10949_v15 = vld [vmem:[%s12969_s4] ss:$0 sm:$0xff] }
  0x65   : > { %1660 = vst.msk [vmem:[#allocation4 + $0x40] sm:$0xff] %vm1635_vm1, %v10552_v9  ;;  %1661 = vst.msk [vmem:[#allocation4 + $0x48] sm:$0xff] %vm1635_vm1, %v10552_v9 }
  0x66   : > { %1662 = vst.msk [vmem:[#allocation4 + $0x50] sm:$0xff] %vm1635_vm1, %v10552_v9  ;;  %1663 = vst.msk [vmem:[#allocation4 + $0x58] sm:$0xff] %vm1635_vm1, %v10552_v9 }
  0x67   : > { %8417 = vmatmul.mubr.f32.vlgmr.msra.gmra.mrb[0].mxu1 %v10707_v20  ;;  %8498 = vmatmul.mubr.f32.gmra.mrb[2].mxu0 %v10698_v16  ;;  %1664 = vst.msk [vmem:[#allocation4 + $0x60] sm:$0xff] %vm1635_vm1, %v10552_v9  ;;  %1665 = vst.msk [vmem:[#allocation4 + $0x68] sm:$0xff] %vm1635_vm1, %v10552_v9 }
  0x68   : > { %8419 = vmatprep.mubr.f32.mxu1 %v10715_v24  ;;  %8500 = vmatprep.mubr.f32.mxu0 %v10710_v21  ;;  %1666 = vst.msk [vmem:[#allocation4 + $0x70] sm:$0xff] %vm1635_vm1, %v10552_v9  ;;  %1667 = vst.msk [vmem:[#allocation4 + $0x78] sm:$0xff] %vm1635_vm1, %v10552_v9 }
  0x69   : > { %1668 = vst.msk [vmem:[#allocation5] sm:$0xff] %vm479_vm0, %v10552_v9  ;;  %1669 = vst.msk [vmem:[#allocation5 + $0x8] sm:$0xff] %vm479_vm0, %v10552_v9 }
  0x6a   : > { %1670 = vst.msk [vmem:[#allocation5 + $0x10] sm:$0xff] %vm479_vm0, %v10552_v9  ;;  %1671 = vst.msk [vmem:[#allocation5 + $0x18] sm:$0xff] %vm479_vm0, %v10552_v9 }
  0x6b   : > { %8420 = vmatmul.mubr.f32.gmra.mrb[2].mxu1 %v10718_v25  ;;  %8501 = vmatmul.mubr.f32.gmra.mrb[4].mxu0 %v10720_v26  ;;  %1672 = vst.msk [vmem:[#allocation5 + $0x20] sm:$0xff] %vm479_vm0, %v10552_v9  ;;  %1673 = vst.msk [vmem:[#allocation5 + $0x28] sm:$0xff] %vm479_vm0, %v10552_v9 }
  0x6c   : > { %8422 = vmatprep.mubr.f32.mxu1 %v10725_v29  ;;  %8503 = vmatprep.mubr.f32.mxu0 %v10737_v38  ;;  %1674 = vst.msk [vmem:[#allocation5 + $0x30] sm:$0xff] %vm479_vm0, %v10552_v9  ;;  %1675 = vst.msk [vmem:[#allocation5 + $0x38] sm:$0xff] %vm479_vm0, %v10552_v9 }
  0x6d   : > { %1676 = vst.msk [vmem:[#allocation5 + $0x40] sm:$0xff] %vm479_vm0, %v10552_v9  ;;  %1677 = vst.msk [vmem:[#allocation5 + $0x48] sm:$0xff] %vm479_vm0, %v10552_v9 }
  0x6e   : > { %1678 = vst.msk [vmem:[#allocation5 + $0x50] sm:$0xff] %vm479_vm0, %v10552_v9  ;;  %1679 = vst.msk [vmem:[#allocation5 + $0x58] sm:$0xff] %vm479_vm0, %v10552_v9 }
  0x6f   : > { %8423 = vmatmul.mubr.f32.gmra.mrb[4].mxu1 %v10732_v34  ;;  %8504 = vmatmul.mubr.f32.gmra.mrb[6].mxu0 %v10755_v58  ;;  %1680 = vst.msk [vmem:[#allocation5 + $0x60] sm:$0xff] %vm479_vm0, %v10552_v9  ;;  %1681 = vst.msk [vmem:[#allocation5 + $0x68] sm:$0xff] %vm479_vm0, %v10552_v9 }
  0x70   : > { %8425 = vmatprep.mubr.f32.mxu1 %v10746_v48  ;;  %8506 = vmatprep.mubr.f32.mxu0 %v10760_v63  ;;  %1682 = vst.msk [vmem:[#allocation5 + $0x70] sm:$0xff] %vm479_vm0, %v10552_v9  ;;  %1683 = vst.msk [vmem:[#allocation5 + $0x78] sm:$0xff] %vm479_vm0, %v10552_v9 }
  0x73   : > { %8426 = vmatmul.mubr.f32.gmra.mrb[6].mxu1 %v10765_v2  ;;  %8507 = vmatmul.mubr.f32.gmra.mrb[8].mxu0 %v10768_v5 }
  0x74   : > { %8428 = vmatprep.mubr.f32.mxu1 %v10773_v7  ;;  %8509 = vmatprep.mubr.f32.mxu0 %v10770_v6 }
  0x77   : > { %8429 = vmatmul.mubr.f32.gmra.mrb[8].mxu1 %v10782_v22  ;;  %8510 = vmatmul.mubr.f32.gmra.mrb[10].mxu0 %v10788_v28 }
  0x78   : > { %8431 = vmatprep.mubr.f32.mxu1 %v10785_v23  ;;  %8512 = vmatprep.mubr.f32.mxu0 %v10790_v30 }
  0x7b   : > { %8432 = vmatmul.mubr.f32.gmra.mrb[10].mxu1 %v10800_v39  ;;  %8513 = vmatmul.mubr.f32.gmra.mrb[12].mxu0 %v10792_v31 }
  0x7c   : > { %8434 = vmatprep.mubr.f32.mxu1 %v10803_v40  ;;  %8515 = vmatprep.mubr.f32.mxu0 %v10809_v43 }
  0x7f   : > { %8435 = vmatmul.mubr.f32.gmra.mrb[12].mxu1 %v10807_v42  ;;  %8516 = vmatmul.mubr.f32.gmra.mrb[14].mxu0 %v10819_v53 }
  0x80   : > { %8437 = vmatprep.mubr.f32.mxu1 %v10816_v51 }
  0x83   : > { %8438 = vmatmul.mubr.f32.gmra.mrb[14].mxu1 %v10824_v57 }
 0x136   : > { %v8496_v10 = vpop.f32.mrb[0].mxu0 }
 0x137   : > { %v1525_v14 = vpop.f32.mrb[1].mxu0 }
 0x13a   : > { %v8418_v16 = vpop.f32.mrb[0].mxu1  ;;  %v8499_v19 = vpop.f32.mrb[2].mxu0 }
 0x13b   : > { %v9886_v20 = vadd.f32 %v8418_v16, %v10949_v15  ;;  %v990_v21 = vpop.f32.mrb[1].mxu1  ;;  %v1537_v24 = vpop.f32.mrb[3].mxu0 }
 0x13c   : > { %v9888_v25 = vadd.f32 %v10949_v15, %v990_v21 }
 0x13d   : > { %v9887_v26 = vadd.f32 %v9886_v20, %v8496_v10 }
 0x13e   : > { %v9889_v29 = vadd.f32 %v9888_v25, %v1525_v14  ;;  %v8421_v34 = vpop.f32.mrb[2].mxu1  ;;  %v8502_v38 = vpop.f32.mrb[4].mxu0 }
 0x13f   : > { %1620 = vst.msk [vmem:[#allocation2 + $0x8] sm:$0xff] %vm479_vm0, %v9887_v26  ;;  %v9890_v48 = vadd.f32 %v8421_v34, %v10949_v15  ;;  %v1004_v58 = vpop.f32.mrb[3].mxu1  ;;  %v1549_v63 = vpop.f32.mrb[5].mxu0 }
 0x140   : > { %1619 = vst.msk [vmem:[#allocation2] sm:$0xff] %vm479_vm0, %v9889_v29  ;;  %v9892_v2 = vadd.f32 %v10949_v15, %v1004_v58 }
 0x141   : > { %v9891_v5 = vadd.f32 %v9890_v48, %v8499_v19 }
 0x142   : > { %v9893_v6 = vadd.f32 %v9892_v2, %v1537_v24  ;;  %v8424_v7 = vpop.f32.mrb[4].mxu1  ;;  %v8505_v18 = vpop.f32.mrb[6].mxu0 }
 0x143   : > { %1622 = vst.msk [vmem:[#allocation2 + $0x18] sm:$0xff] %vm479_vm0, %v9891_v5  ;;  %v9894_v22 = vadd.f32 %v8424_v7, %v10949_v15  ;;  %v1018_v23 = vpop.f32.mrb[5].mxu1  ;;  %v1561_v27 = vpop.f32.mrb[7].mxu0 }
 0x144   : > { %1621 = vst.msk [vmem:[#allocation2 + $0x10] sm:$0xff] %vm479_vm0, %v9893_v6  ;;  %v9896_v28 = vadd.f32 %v10949_v15, %v1018_v23 }
 0x145   : > { %v9895_v30 = vadd.f32 %v9894_v22, %v8502_v38 }
 0x146   : > { %v9897_v31 = vadd.f32 %v9896_v28, %v1549_v63  ;;  %v8427_v32 = vpop.f32.mrb[6].mxu1  ;;  %v8508_v33 = vpop.f32.mrb[8].mxu0 }
 0x147   : > { %1624 = vst.msk [vmem:[#allocation2 + $0x28] sm:$0xff] %vm479_vm0, %v9895_v30  ;;  %v9898_v35 = vadd.f32 %v8427_v32, %v10949_v15  ;;  %v1032_v36 = vpop.f32.mrb[7].mxu1  ;;  %v1573_v37 = vpop.f32.mrb[9].mxu0 }
 0x148   : > { %1623 = vst.msk [vmem:[#allocation2 + $0x20] sm:$0xff] %vm479_vm0, %v9897_v31  ;;  %v9900_v39 = vadd.f32 %v10949_v15, %v1032_v36 }
 0x149   : > { %v9899_v40 = vadd.f32 %v9898_v35, %v8505_v18 }
 0x14a   : > { %v9901_v41 = vadd.f32 %v9900_v39, %v1561_v27  ;;  %v8430_v42 = vpop.f32.mrb[8].mxu1  ;;  %v8511_v43 = vpop.f32.mrb[10].mxu0 }
 0x14b   : > { %1626 = vst.msk [vmem:[#allocation2 + $0x38] sm:$0xff] %vm479_vm0, %v9899_v40  ;;  %v9902_v44 = vadd.f32 %v8430_v42, %v10949_v15  ;;  %v1046_v45 = vpop.f32.mrb[9].mxu1  ;;  %v1585_v46 = vpop.f32.mrb[11].mxu0 }
 0x14c   : > { %1625 = vst.msk [vmem:[#allocation2 + $0x30] sm:$0xff] %vm479_vm0, %v9901_v41  ;;  %v9904_v47 = vadd.f32 %v10949_v15, %v1046_v45 }
 0x14d   : > { %v9903_v49 = vadd.f32 %v9902_v44, %v8508_v33 }
 0x14e   : > { %v9905_v50 = vadd.f32 %v9904_v47, %v1573_v37  ;;  %v8433_v51 = vpop.f32.mrb[10].mxu1  ;;  %v8514_v52 = vpop.f32.mrb[12].mxu0 }
 0x14f   : > { %1628 = vst.msk [vmem:[#allocation2 + $0x48] sm:$0xff] %vm479_vm0, %v9903_v49  ;;  %v9906_v53 = vadd.f32 %v8433_v51, %v10949_v15  ;;  %v1060_v54 = vpop.f32.mrb[11].mxu1  ;;  %v1597_v55 = vpop.f32.mrb[13].mxu0 }
 0x150   : > { %1627 = vst.msk [vmem:[#allocation2 + $0x40] sm:$0xff] %vm479_vm0, %v9905_v50  ;;  %v9908_v56 = vadd.f32 %v10949_v15, %v1060_v54 }
 0x151   : > { %v9907_v57 = vadd.f32 %v9906_v53, %v8511_v43 }
 0x152   : > { %v9909_v59 = vadd.f32 %v9908_v56, %v1585_v46  ;;  %v8436_v60 = vpop.f32.mrb[12].mxu1  ;;  %v8517_v61 = vpop.f32.mrb[14].mxu0 }
 0x153   : > { %1630 = vst.msk [vmem:[#allocation2 + $0x58] sm:$0xff] %vm479_vm0, %v9907_v57  ;;  %v9910_v62 = vadd.f32 %v8436_v60, %v10949_v15  ;;  %v1074_v0 = vpop.f32.mrb[13].mxu1  ;;  %v1609_v1 = vpop.f32.mrb[15].mxu0 }
 0x154   : > { %1629 = vst.msk [vmem:[#allocation2 + $0x50] sm:$0xff] %vm479_vm0, %v9909_v59  ;;  %v9912_v4 = vadd.f32 %v10949_v15, %v1074_v0 }
 0x155   : > { %v9911_v8 = vadd.f32 %v9910_v62, %v8514_v52 }
 0x156   : > { %v9913_v11 = vadd.f32 %v9912_v4, %v1597_v55  ;;  %v8439_v12 = vpop.f32.mrb[14].mxu1 }
 0x157   : > { %1632 = vst.msk [vmem:[#allocation2 + $0x68] sm:$0xff] %vm479_vm0, %v9911_v8  ;;  %v9914_v13 = vadd.f32 %v8439_v12, %v10949_v15  ;;  %v1088_v17 = vpop.f32.mrb[15].mxu1 }
 0x158   : > { %1631 = vst.msk [vmem:[#allocation2 + $0x60] sm:$0xff] %vm479_vm0, %v9913_v11  ;;  %v9916_v3 = vadd.f32 %v10949_v15, %v1088_v17 }
 0x159   : > { %v9915_v9 = vadd.f32 %v9914_v13, %v8517_v61 }
 0x15a   : > { %v9917_v10 = vadd.f32 %v9916_v3, %v1609_v1 }
 0x15b   : > { %1634 = vst.msk [vmem:[#allocation2 + $0x78] sm:$0xff] %vm479_vm0, %v9915_v9 }
 0x15c   : > { %1633 = vst.msk [vmem:[#allocation2 + $0x70] sm:$0xff] %vm479_vm0, %v9917_v10 }
 0x15d PF: > { %v1700_v14 = vld [vmem:[%s12970_s5] sm:$0xff]  ;;  %vm1708_vm2 = vcmask 64512   ;;  %v1685_v15 = vld [vmem:[%s10664_s11 + $0x8] sm:$0xff]  ;;  %v1686_v24 = vld [vmem:[%s10664_s11 + $0x10] sm:$0xff]  ;;  %s10554_s23 = smov 120   ;;  %vm4678_vm3 = vcmask 7168  }
 0x15e   : > { %v1684_v16 = vld [vmem:[%s10664_s11] sm:$0xff]  ;;  %v10988_v19 = vand.u32 4294901760, %v1700_v14  ;;  %v1713_v21 = vsel %vm1708_vm2, %v1685_v15, 0  ;;  %v1687_v25 = vld [vmem:[%s10664_s11 + $0x18] sm:$0xff]  ;;  %v1716_v38 = vsel %vm1708_vm2, %v1686_v24, 0  ;;  %v1689_v58 = vld [vmem:[%s10664_s11 + $0x28] sm:$0xff] }
 0x15f   : > { %v1710_v20 = vsel %vm1708_vm2, %v1684_v16, 0  ;;  %v1688_v26 = vld [vmem:[%s10664_s11 + $0x20] sm:$0xff]  ;;  %v10997_v34 = vand.u32 4294901760, %v1713_v21  ;;  %v1719_v48 = vsel %vm1708_vm2, %v1687_v25, 0  ;;  %v11006_v2 = vand.u32 4294901760, %v1716_v38  ;;  %v1690_v7 = vld [vmem:[%s10664_s11 + $0x30] sm:$0xff] }
 0x160   : > { %v10995_v29 = vand.u32 4294901760, %v1710_v20  ;;  %8518 = vmatprep.subr.mxu0 %v10988_v19  ;;  %v11004_v63 = vsub.f32 %v1700_v14, %v10988_v19  ;;  %v11008_v5 = vand.u32 4294901760, %v1719_v48  ;;  %v1722_v6 = vsel %vm1708_vm2, %v1688_v26, 0  ;;  %v1691_v47 = vld [vmem:[%s10664_s11 + $0x38] sm:$0xff]  ;;  %v1692_v53 = vld [vmem:[%s10664_s11 + $0x40] sm:$0xff]  ;;  %v1693_v59 = vld [vmem:[%s10664_s11 + $0x48] sm:$0xff] }
 0x161   : > { %8519 = vmatpush3.msra.mxu0 %v10988_v19  ;;  %v11017_v22 = vsub.f32 %v1713_v21, %v10997_v34  ;;  %v11019_v23 = vand.u32 4294901760, %v1722_v6  ;;  %v1725_v27 = vsel %vm1708_vm2, %v1689_v58, 0  ;;  %v11026_v30 = vsub.f32 %v1716_v38, %v11006_v2  ;;  %v1694_v60 = vld [vmem:[%s10664_s11 + $0x50] sm:$0xff]  ;;  %v1695_v4 = vld [vmem:[%s10664_s11 + $0x58] sm:$0xff]  ;;  %v1696_v17 = vld [vmem:[%s10664_s11 + $0x60] sm:$0xff]  ;;  %p7668_p10 = scmp.ne.s32.totalorder %s10525_s30, 1 }
 0x162   : > { %v11014_v18 = vsub.f32 %v1710_v20, %v10995_v29  ;;  %v11023_v28 = vand.u32 4294901760, %v11004_v63  ;;  %v11029_v31 = vsub.f32 %v1719_v48, %v11008_v5  ;;  %v11031_v32 = vand.u32 4294901760, %v1725_v27  ;;  %v1697_v3 = vld [vmem:[%s10664_s11 + $0x68] sm:$0xff]  ;;  %v1698_v58 = vld [vmem:[%s10664_s11 + $0x70] sm:$0xff] }
 0x163   : > { %v1835_v35 = vand.u32 4294901760, %v11017_v22  ;;  %v11036_v36 = vsub.f32 %v1722_v6, %v11019_v23  ;;  %v1728_v37 = vsel %vm1708_vm2, %v1690_v7, 0  ;;  %v1845_v40 = vand.u32 4294901760, %v11026_v30 }
 0x164   : > { %v1825_v33 = vand.u32 4294901760, %v11014_v18  ;;  %v1987_v39 = vsub.f32 %v11004_v63, %v11023_v28  ;;  %v1855_v41 = vand.u32 4294901760, %v11029_v31  ;;  %v11044_v42 = vsub.f32 %v1725_v27, %v11031_v32 }
 0x165   : > { %v1836_v44 = vsub.f32 %v11017_v22, %v1835_v35  ;;  %v1865_v45 = vand.u32 4294901760, %v11036_v36  ;;  %v11053_v46 = vand.u32 4294901760, %v1728_v37  ;;  %v1846_v50 = vsub.f32 %v11026_v30, %v1845_v40 }
 0x166   : > { %v1826_v43 = vsub.f32 %v11014_v18, %v1825_v33  ;;  %v1988_v49 = vand.u32 4294901760, %v1987_v39  ;;  %v1856_v51 = vsub.f32 %v11029_v31, %v1855_v41  ;;  %v1875_v52 = vand.u32 4294901760, %v11044_v42 }
 0x167   : > { %v1837_v55 = vand.u32 4294901760, %v1836_v44  ;;  %v1866_v56 = vsub.f32 %v11036_v36, %v1865_v45  ;;  %v11068_v57 = vsub.f32 %v1728_v37, %v11053_v46  ;;  %v1847_v61 = vand.u32 4294901760, %v1846_v50 }
 0x168   : > { %v1827_v54 = vand.u32 4294901760, %v1826_v43  ;;  %8544 = vmatprep.subr.mxu0 %v1988_v49  ;;  %v1857_v62 = vand.u32 4294901760, %v1856_v51  ;;  %v1876_v0 = vsub.f32 %v11044_v42, %v1875_v52  ;;  %v1731_v1 = vsel %vm1708_vm2, %v1691_v47, 0 }
 0x169   : > { %v1867_v8 = vand.u32 4294901760, %v1866_v56  ;;  %v1885_v11 = vand.u32 4294901760, %v11068_v57  ;;  %v11078_v12 = vand.u32 4294901760, %v1731_v1  ;;  %v1734_v13 = vsel %vm1708_vm2, %v1692_v53, 0 }
 0x16a   : > { %8520 = vmatprep.mubr.f32.mxu0 %v1827_v54  ;;  %v1877_v9 = vand.u32 4294901760, %v1876_v0  ;;  %v11083_v10 = vand.u32 4294901760, %v1734_v13  ;;  %v1737_v14 = vsel %vm1708_vm2, %v1693_v59, 0  ;;  %v1740_v16 = vsel %vm1708_vm2, %v1694_v60, 0  ;;  %v1699_v59 = vld [vmem:[%s10664_s11 + $0x78] sm:$0xff] }
 0x16b   : > { %8521 = vmatmul.mubr.f32.vlgmr.msra.gmra.mrb[0].mxu0 %v1837_v55  ;;  %v1886_v15 = vsub.f32 %v11068_v57, %v1885_v11  ;;  %v11091_v20 = vsub.f32 %v1731_v1, %v11078_v12  ;;  %v11093_v21 = vand.u32 4294901760, %v1737_v14  ;;  %v11095_v24 = vand.u32 4294901760, %v1740_v16 }
 0x16c   : > { %8545 = vmatpush3.msra.mxu0 %v1988_v49  ;;  %8523 = vmatprep.mubr.f32.mxu0 %v1847_v61  ;;  %v11098_v25 = vsub.f32 %v1734_v13, %v11083_v10  ;;  %v1743_v26 = vsel %vm1708_vm2, %v1695_v4, 0  ;;  %v1746_v38 = vsel %vm1708_vm2, %v1696_v17, 0  ;;  %v1749_v48 = vsel %vm1708_vm2, %v1697_v3, 0 }
 0x16d   : > { %8570 = vmatprep.subr.mxu0 %v11004_v63  ;;  %v1887_v6 = vand.u32 4294901760, %v1886_v15  ;;  %v1895_v7 = vand.u32 4294901760, %v11091_v20  ;;  %v11107_v27 = vsub.f32 %v1737_v14, %v11093_v21  ;;  %v11110_v37 = vsub.f32 %v1740_v16, %v11095_v24 }
 0x16e   : > { %v1905_v39 = vand.u32 4294901760, %v11098_v25  ;;  %v11113_v43 = vand.u32 4294901760, %v1743_v26  ;;  %v11115_v44 = vand.u32 4294901760, %v1746_v38  ;;  %v11117_v47 = vand.u32 4294901760, %v1749_v48 }
 0x16f   : > { %8524 = vmatmul.mubr.f32.gmra.mrb[2].mxu0 %v1857_v62  ;;  %v1896_v49 = vsub.f32 %v11091_v20, %v1895_v7  ;;  %v1915_v50 = vand.u32 4294901760, %v11107_v27  ;;  %v1925_v51 = vand.u32 4294901760, %v11110_v37  ;;  %v1752_v53 = vsel %vm1708_vm2, %v1698_v58, 0 }
 0x170   : > { %8526 = vmatprep.mubr.f32.mxu0 %v1867_v8  ;;  %v1906_v54 = vsub.f32 %v11098_v25, %v1905_v39  ;;  %v11129_v55 = vsub.f32 %v1743_v26, %v11113_v43  ;;  %v11132_v56 = vsub.f32 %v1746_v38, %v11115_v44  ;;  %v11136_v60 = vsub.f32 %v1749_v48, %v11117_v47 }
 0x171   : > { %v11138_v61 = vand.u32 4294901760, %v1752_v53  ;;  %v1897_v62 = vand.u32 4294901760, %v1896_v49  ;;  %v1916_v0 = vsub.f32 %v11107_v27, %v1915_v50  ;;  %v1926_v1 = vsub.f32 %v11110_v37, %v1925_v51 }
 0x172   : > { %v1935_v4 = vand.u32 4294901760, %v11129_v55  ;;  %v1907_v8 = vand.u32 4294901760, %v1906_v54  ;;  %v1945_v13 = vand.u32 4294901760, %v11132_v56  ;;  %v1755_v3 = vsel %vm1708_vm2, %v1699_v59, 0 }
 0x173   : > { %8527 = vmatmul.mubr.f32.gmra.mrb[4].mxu0 %v1877_v9  ;;  %v11149_v17 = vsub.f32 %v1752_v53, %v11138_v61  ;;  %v11152_v9 = vand.u32 4294901760, %v1755_v3  ;;  %v1917_v14 = vand.u32 4294901760, %v1916_v0  ;;  %v1955_v15 = vand.u32 4294901760, %v11136_v60 }
 0x174   : > { %8529 = vmatprep.mubr.f32.mxu0 %v1887_v6  ;;  %v1936_v16 = vsub.f32 %v11129_v55, %v1935_v4  ;;  %v1927_v38 = vand.u32 4294901760, %v1926_v1  ;;  %v1946_v48 = vsub.f32 %v11132_v56, %v1945_v13 }
 0x175   : > { %v11159_v26 = vsub.f32 %v1755_v3, %v11152_v9  ;;  %v1965_v58 = vand.u32 4294901760, %v11149_v17  ;;  %v1956_v49 = vsub.f32 %v11136_v60, %v1955_v15  ;;  %v10553_v3 = vmov 0  }
 0x176   : > { %v1937_v6 = vand.u32 4294901760, %v1936_v16  ;;  %v1947_v54 = vand.u32 4294901760, %v1946_v48  ;;  %10395 = vset.pattern.permute.xlu1 %v10553_v3  ;;  %10396 = vset.pattern.permute.xlu0 %v10553_v3  ;;  %v2849_v16 = vld [vmem:[%s10669_s14 + $0x8] sm:$0xff]  ;;  %v2851_v48 = vld [vmem:[%s10669_s14 + $0x18] sm:$0xff] }
 0x177   : > { %8530 = vmatmul.mubr.f32.gmra.mrb[6].mxu0 %v1897_v62  ;;  %v1975_v53 = vand.u32 4294901760, %v11159_v26  ;;  %v1966_v59 = vsub.f32 %v11149_v17, %v1965_v58  ;;  %v1957_v62 = vand.u32 4294901760, %v1956_v49  ;;  %v2853_v49 = vld [vmem:[%s10669_s14 + $0x28] sm:$0xff] }
 0x178   : > { %8532 = vmatprep.mubr.f32.mxu0 %v1907_v8  ;;  %v2861_v3 = vld [vmem:[%s10669_s14 + $0x68] sm:$0xff] }
 0x179   : > { %v1976_v0 = vsub.f32 %v11159_v26, %v1975_v53  ;;  %v1967_v1 = vand.u32 4294901760, %v1966_v59  ;;  %v2855_v59 = vld [vmem:[%s10669_s14 + $0x38] sm:$0xff] }
 0x17b   : > { %8533 = vmatmul.mubr.f32.gmra.mrb[8].mxu0 %v1917_v14  ;;  %v1977_v8 = vand.u32 4294901760, %v1976_v0  ;;  %v2850_v14 = vld [vmem:[%s10669_s14 + $0x10] sm:$0xff]  ;;  %v2857_v0 = vld [vmem:[%s10669_s14 + $0x48] sm:$0xff] }
 0x17c   : > { %8535 = vmatprep.mubr.f32.mxu0 %v1927_v38  ;;  %2876 = vperm.xlu0 %10396, %v2850_v14   ;;  %v2852_v38 = vld [vmem:[%s10669_s14 + $0x20] sm:$0xff]  ;;  %v2863_v14 = vld [vmem:[%s10669_s14 + $0x78] sm:$0xff] }
 0x17f   : > { %8536 = vmatmul.mubr.f32.gmra.mrb[10].mxu0 %v1937_v6  ;;  %v2854_v6 = vld [vmem:[%s10669_s14 + $0x30] sm:$0xff] }
 0x180   : > { %8538 = vmatprep.mubr.f32.mxu0 %v1947_v54  ;;  %2886 = vperm.xlu0 %10396, %v2852_v38   ;;  %v2856_v54 = vld [vmem:[%s10669_s14 + $0x40] sm:$0xff] }
 0x183   : > { %8539 = vmatmul.mubr.f32.gmra.mrb[12].mxu0 %v1957_v62  ;;  %v2858_v62 = vld [vmem:[%s10669_s14 + $0x50] sm:$0xff] }
 0x184   : > { %8541 = vmatprep.mubr.f32.mxu0 %v1967_v1  ;;  %2896 = vperm.xlu0 %10396, %v2854_v6   ;;  %v2860_v1 = vld [vmem:[%s10669_s14 + $0x60] sm:$0xff] }
 0x187   : > { %8542 = vmatmul.mubr.f32.gmra.mrb[14].mxu0 %v1977_v8  ;;  %v2859_v8 = vld [vmem:[%s10669_s14 + $0x58] sm:$0xff] }
 0x188   : > { %8546 = vmatprep.mubr.f32.mxu0 %v10995_v29  ;;  %2906 = vperm.xlu0 %10396, %v2856_v54  }
 0x18b   : > { %8547 = vmatmul.mubr.f32.vlgmr.msra.gmra.mrb[0].mxu0 %v10997_v34 }
 0x18c   : > { %8571 = vmatpush3.msra.mxu0 %v11004_v63  ;;  %8549 = vmatprep.mubr.f32.mxu0 %v11006_v2  ;;  %v2848_v63 = vld [vmem:[%s10669_s14] sm:$0xff] }
 0x18d   : > { %8596 = vmatprep.subr.mxu0 %v10988_v19  ;;  %2866 = vperm.xlu1 %10395, %v2848_v63   ;;  %v2862_v63 = vld [vmem:[%s10669_s14 + $0x70] sm:$0xff] }
 0x18e   : > { %2916 = vperm.xlu0 %10396, %v2858_v62  }
 0x18f   : > { %8550 = vmatmul.mubr.f32.gmra.mrb[2].mxu0 %v11008_v5 }
 0x190   : > { %8552 = vmatprep.mubr.f32.mxu0 %v11019_v23 }
 0x191   : > { %2871 = vperm.xlu1 %10395, %v2849_v16  }
 0x192   : > { %2926 = vperm.xlu0 %10396, %v2860_v1  }
 0x193   : > { %8553 = vmatmul.mubr.f32.gmra.mrb[4].mxu0 %v11031_v32 }
 0x194   : > { %8555 = vmatprep.mubr.f32.mxu0 %v11053_v46 }
 0x195   : > { %2881 = vperm.xlu1 %10395, %v2851_v48  }
 0x196   : > { %2936 = vperm.xlu0 %10396, %v2862_v63  }
 0x197   : > { %8556 = vmatmul.mubr.f32.gmra.mrb[6].mxu0 %v11078_v12 }
 0x198   : > { %8558 = vmatprep.mubr.f32.mxu0 %v11083_v10 }
 0x199   : > { %2891 = vperm.xlu1 %10395, %v2853_v49  }
 0x19b   : > { %8559 = vmatmul.mubr.f32.gmra.mrb[8].mxu0 %v11093_v21 }
 0x19c   : > { %8561 = vmatprep.mubr.f32.mxu0 %v11095_v24 }
 0x19d   : > { %2901 = vperm.xlu1 %10395, %v2855_v59  }
 0x19f   : > { %8562 = vmatmul.mubr.f32.gmra.mrb[10].mxu0 %v11113_v43 }
 0x1a0   : > { %8564 = vmatprep.mubr.f32.mxu0 %v11115_v44 }
 0x1a1   : > { %2911 = vperm.xlu1 %10395, %v2857_v0  }
 0x1a3   : > { %8565 = vmatmul.mubr.f32.gmra.mrb[12].mxu0 %v11117_v47 }
 0x1a4   : > { %8567 = vmatprep.mubr.f32.mxu0 %v11138_v61 }
 0x1a5   : > { %2921 = vperm.xlu1 %10395, %v2859_v8  }
 0x1a7   : > { %8568 = vmatmul.mubr.f32.gmra.mrb[14].mxu0 %v11152_v9 }
 0x1a8   : > { %8572 = vmatprep.mubr.f32.mxu0 %v11014_v18 }
 0x1a9   : > { %2931 = vperm.xlu1 %10395, %v2861_v3  }
 0x1ab   : > { %8573 = vmatmul.mubr.f32.vlgmr.msra.gmra.mrb[0].mxu0 %v11017_v22 }
 0x1ac   : > { %8597 = vmatpush3.msra.mxu0 %v10988_v19  ;;  %8575 = vmatprep.mubr.f32.mxu0 %v11026_v30 }
 0x1ad   : > { %8622 = vmatprep.subr.mxu0 %v11023_v28  ;;  %2941 = vperm.xlu1 %10395, %v2863_v14  }
 0x1af   : > { %8576 = vmatmul.mubr.f32.gmra.mrb[2].mxu0 %v11029_v31 }
 0x1b0   : > { %8578 = vmatprep.mubr.f32.mxu0 %v11036_v36 }
 0x1b3   : > { %8579 = vmatmul.mubr.f32.gmra.mrb[4].mxu0 %v11044_v42 }
 0x1b4   : > { %8581 = vmatprep.mubr.f32.mxu0 %v11068_v57 }
 0x1b7   : > { %8582 = vmatmul.mubr.f32.gmra.mrb[6].mxu0 %v11091_v20 }
 0x1b8   : > { %8584 = vmatprep.mubr.f32.mxu0 %v11098_v25 }
 0x1bb   : > { %8585 = vmatmul.mubr.f32.gmra.mrb[8].mxu0 %v11107_v27 }
 0x1bc   : > { %8587 = vmatprep.mubr.f32.mxu0 %v11110_v37 }
 0x1bf   : > { %8588 = vmatmul.mubr.f32.gmra.mrb[10].mxu0 %v11129_v55 }
 0x1c0   : > { %8590 = vmatprep.mubr.f32.mxu0 %v11132_v56 }
 0x1c3   : > { %8591 = vmatmul.mubr.f32.gmra.mrb[12].mxu0 %v11136_v60 }
 0x1c4   : > { %8593 = vmatprep.mubr.f32.mxu0 %v11149_v17 }
 0x1c7   : > { %8594 = vmatmul.mubr.f32.gmra.mrb[14].mxu0 %v11159_v26 }
 0x1c8   : > { %8598 = vmatprep.mubr.f32.mxu0 %v1825_v33 }
 0x1cb   : > { %8599 = vmatmul.mubr.f32.vlgmr.msra.gmra.mrb[0].mxu0 %v1835_v35 }
 0x1cc   : > { %8623 = vmatpush3.msra.mxu0 %v11023_v28  ;;  %8601 = vmatprep.mubr.f32.mxu0 %v1845_v40  ;;  %v11307_v28 = vld [vmem:[%s12971_s6] ss:$0 sm:$0xff] }
 0x1cd   : > { %8648 = vmatprep.subr.mxu0 %v10988_v19 }
 0x1cf   : > { %8602 = vmatmul.mubr.f32.gmra.mrb[2].mxu0 %v1855_v41 }
 0x1d0   : > { %8604 = vmatprep.mubr.f32.mxu0 %v1865_v45 }
 0x1d3   : > { %8605 = vmatmul.mubr.f32.gmra.mrb[4].mxu0 %v1875_v52 }
 0x1d4   : > { %8607 = vmatprep.mubr.f32.mxu0 %v1885_v11 }
 0x1d7   : > { %8608 = vmatmul.mubr.f32.gmra.mrb[6].mxu0 %v1895_v7 }
 0x1d8   : > { %8610 = vmatprep.mubr.f32.mxu0 %v1905_v39 }
 0x1db   : > { %8611 = vmatmul.mubr.f32.gmra.mrb[8].mxu0 %v1915_v50 }
 0x1dc   : > { %8613 = vmatprep.mubr.f32.mxu0 %v1925_v51 }
 0x1df   : > { %8614 = vmatmul.mubr.f32.gmra.mrb[10].mxu0 %v1935_v4 }
 0x1e0   : > { %8616 = vmatprep.mubr.f32.mxu0 %v1945_v13 }
 0x1e3   : > { %8617 = vmatmul.mubr.f32.gmra.mrb[12].mxu0 %v1955_v15 }
 0x1e4   : > { %8619 = vmatprep.mubr.f32.mxu0 %v1965_v58 }
 0x1e7   : > { %8620 = vmatmul.mubr.f32.gmra.mrb[14].mxu0 %v1975_v53 }
 0x1e8   : > { %8624 = vmatprep.mubr.f32.mxu0 %v10995_v29 }
 0x1eb   : > { %8625 = vmatmul.mubr.f32.vlgmr.msra.gmra.mrb[0].mxu0 %v10997_v34 }
 0x1ec   : > { %8649 = vmatpush3.msra.mxu0 %v10988_v19  ;;  %8627 = vmatprep.mubr.f32.mxu0 %v11006_v2  ;;  %v2960_v19 = vld [vmem:[#allocation2] sm:$0xff] }
 0x1ef   : > { %8628 = vmatmul.mubr.f32.gmra.mrb[2].mxu0 %v11008_v5 }
 0x1f0   : > { %8630 = vmatprep.mubr.f32.mxu0 %v11019_v23 }
 0x1f3   : > { %8631 = vmatmul.mubr.f32.gmra.mrb[4].mxu0 %v11031_v32 }
 0x1f4   : > { %8633 = vmatprep.mubr.f32.mxu0 %v11053_v46 }
 0x1f7   : > { %8634 = vmatmul.mubr.f32.gmra.mrb[6].mxu0 %v11078_v12 }
 0x1f8   : > { %8636 = vmatprep.mubr.f32.mxu0 %v11083_v10 }
 0x1fb   : > { %8637 = vmatmul.mubr.f32.gmra.mrb[8].mxu0 %v11093_v21  ;;  %v2877_v31 = vpop.permute.xlu0 %2876 }
 0x1fc   : > { %8639 = vmatprep.mubr.f32.mxu0 %v11095_v24 }
 0x1ff   : > { %8640 = vmatmul.mubr.f32.gmra.mrb[10].mxu0 %v11113_v43 }
 0x200   : > { %8642 = vmatprep.mubr.f32.mxu0 %v11115_v44 }
 0x203   : > { %8643 = vmatmul.mubr.f32.gmra.mrb[12].mxu0 %v11117_v47 }
 0x204   : > { %8645 = vmatprep.mubr.f32.mxu0 %v11138_v61 }
 0x207   : > { %8646 = vmatmul.mubr.f32.gmra.mrb[14].mxu0 %v11152_v9 }
 0x208   : > { %8650 = vmatprep.mubr.f32.mxu0 %v10995_v29  ;;  %v2977_v29 = vsel %vm1708_vm2, %v2960_v19, 0 }
 0x20b   : > { %8651 = vmatmul.mubr.f32.vlgmr.msra.gmra.mrb[0].mxu0 %v10997_v34  ;;  %v11295_v34 = vand.u32 4294901760, %v2977_v29 }
 0x20c   : > { %8653 = vmatprep.mubr.f32.mxu0 %v11006_v2 }
 0x20d   : > { %13074 = vst [vmem:[#allocation10_spill] sm:$0xff] %v11295_v34  ;;  %v11298_v2 = vsub.f32 %v2977_v29, %v11295_v34 }
 0x20f   : > { %8654 = vmatmul.mubr.f32.gmra.mrb[2].mxu0 %v11008_v5  ;;  %v12976_v5 = vand.u32 4294901760, %v11298_v2 }
 0x210   : > { %8656 = vmatprep.mubr.f32.mxu0 %v11019_v23  ;;  %v2867_v23 = vpop.permute.xlu1 %2866 }
 0x211   : > { %v3156_v18 = vsub.f32 %v11298_v2, %v12976_v5 }
 0x213   : > { %8657 = vmatmul.mubr.f32.gmra.mrb[4].mxu0 %v11031_v32  ;;  %v3157_v22 = vand.u32 4294901760, %v3156_v18 }
 0x214   : > { %8659 = vmatprep.mubr.f32.mxu0 %v11053_v46  ;;  %v2872_v30 = vpop.permute.xlu1 %2871 }
 0x215   : > { %8706 = vmatprep.mubr.f32.mxu1 %v3157_v22 }
 0x217   : > { %8660 = vmatmul.mubr.f32.gmra.mrb[6].mxu0 %v11078_v12 }
 0x218   : > { %8662 = vmatprep.mubr.f32.mxu0 %v11083_v10  ;;  %v2882_v52 = vpop.permute.xlu1 %2881  ;;  %v2887_v10 = vpop.permute.xlu0 %2886 }
 0x21b   : > { %8663 = vmatmul.mubr.f32.gmra.mrb[8].mxu0 %v11093_v21 }
 0x21c   : > { %8665 = vmatprep.mubr.f32.mxu0 %v11095_v24  ;;  %v2892_v4 = vpop.permute.xlu1 %2891  ;;  %v2897_v26 = vpop.permute.xlu0 %2896 }
 0x21f   : > { %8666 = vmatmul.mubr.f32.gmra.mrb[10].mxu0 %v11113_v43 }
 0x220   : > { %8668 = vmatprep.mubr.f32.mxu0 %v11115_v44  ;;  %v2902_v18 = vpop.permute.xlu1 %2901 }
 0x223   : > { %8669 = vmatmul.mubr.f32.gmra.mrb[12].mxu0 %v11117_v47 }
 0x224   : > { %8671 = vmatprep.mubr.f32.mxu0 %v11138_v61 }
 0x227   : > { %8672 = vmatmul.mubr.f32.gmra.mrb[14].mxu0 %v11152_v9 }
 0x2de   : > { %v8652_v32 = vpop.f32.mrb[0].mxu0 }
 0x2df   : > { %v9982_v33 = vadd.f32 %v8652_v32, %v11307_v28  ;;  %v2754_v35 = vpop.f32.mrb[1].mxu0 }
 0x2e0   : > { %v9983_v36 = vadd.f32 %v11307_v28, %v2754_v35  ;;  %v2907_v35 = vpop.permute.xlu0 %2906 }
 0x2e1   : > { %v3028_v40 = vsel %vm1708_vm2, %v9982_v33, 0  ;;  %v2945_v41 = vmul.f32 %v9982_v33, %v2872_v30 }
 0x2e2   : > { %v3076_v42 = vand.u32 4294901760, %v3028_v40  ;;  %v3025_v45 = vsel %vm1708_vm2, %v9983_v36, 0  ;;  %v8655_v46 = vpop.f32.mrb[2].mxu0  ;;  %v2944_v24 = vmul.f32 %v9983_v36, %v2867_v23 }
 0x2e3   : > { %v3073_v57 = vand.u32 4294901760, %v3025_v45  ;;  %v9984_v11 = vadd.f32 %v8655_v46, %v11307_v28  ;;  %4825 = vrot.lane.b32.xlu0 %v2945_v41, %s10554_s23  ;;  %v2766_v12 = vpop.f32.mrb[3].mxu0 }
 0x2e4   : > { %v11315_v20 = vsub.f32 %v3028_v40, %v3076_v42  ;;  %v9985_v21 = vadd.f32 %v11307_v28, %v2766_v12 }
 0x2e5   : > { %v11318_v25 = vpack.c.bf16 %v3076_v42, %v3073_v57  ;;  %v11320_v7 = vsub.f32 %v3025_v45, %v3073_v57  ;;  %v3034_v27 = vsel %vm1708_vm2, %v9984_v11, 0  ;;  %v2947_v9 = vmul.f32 %v9984_v11, %v2882_v52 }
 0x2e6   : > { %v3323_v37 = vand.u32 4294901760, %v11315_v20  ;;  %v3082_v39 = vand.u32 4294901760, %v3034_v27  ;;  %v3031_v43 = vsel %vm1708_vm2, %v9985_v21, 0  ;;  %v2946_v44 = vmul.f32 %v9985_v21, %v2877_v31  ;;  %v8658_v47 = vpop.f32.mrb[4].mxu0 }
 0x2e7   : > { %v3316_v50 = vand.u32 4294901760, %v11320_v7  ;;  %v3079_v51 = vand.u32 4294901760, %v3031_v43  ;;  %v9986_v55 = vadd.f32 %v8658_v47, %v11307_v28  ;;  %v2778_v56 = vpop.f32.mrb[5].mxu0  ;;  %9503 = vmatprep.subr.bf16.mxu1 %v11318_v25  ;;  %4823 = vrot.lane.b32.xlu0 %v2944_v24, %s10554_s23 }
 0x2e8   : > { %v11329_v60 = vsub.f32 %v3034_v27, %v3082_v39  ;;  %v9987_v61 = vadd.f32 %v11307_v28, %v2778_v56  ;;  %4827 = vrot.lane.b32.xlu1 %v2946_v44, %s10554_s23  ;;  %9505 = vmatpush3.bf16.xpose.msra.mxu1 %v11318_v25  ;;  %v3324_v48 = vsub.f32 %v11315_v20, %v3323_v37 }
 0x2e9   : > { %v11334_v13 = vpack.c.bf16 %v3082_v39, %v3079_v51  ;;  %v11336_v17 = vsub.f32 %v3031_v43, %v3079_v51  ;;  %v3040_v15 = vsel %vm1708_vm2, %v9986_v55, 0  ;;  %v3317_v62 = vsub.f32 %v11320_v7, %v3316_v50 }
 0x2ea   : > { %v3088_v58 = vand.u32 4294901760, %v3040_v15  ;;  %v3037_v53 = vsel %vm1708_vm2, %v9987_v61, 0  ;;  %v2948_v16 = vmul.f32 %v9987_v61, %v2887_v10  ;;  %v8661_v38 = vpop.f32.mrb[6].mxu0  ;;  %v12983_v6 = vand.u32 4294901760, %v11329_v60 }
 0x2eb   : > { %v3085_v49 = vand.u32 4294901760, %v3037_v53  ;;  %v9988_v54 = vadd.f32 %v8661_v38, %v11307_v28  ;;  %v2790_v59 = vpop.f32.mrb[7].mxu0  ;;  %9507 = vmatprep.subr.bf16.mxu1 %v11334_v13  ;;  %4829 = vrot.lane.b32.xlu0 %v2947_v9, %s10554_s23  ;;  %v12984_v0 = vand.u32 4294901760, %v11336_v17  ;;  %v2949_v3 = vmul.f32 %v9986_v55, %v2892_v4 }
 0x2ec   : > { %v9989_v1 = vadd.f32 %v11307_v28, %v2790_v59  ;;  %4831 = vrot.lane.b32.xlu1 %v2948_v16, %s10554_s23  ;;  %v3325_v30 = vand.u32 4294901760, %v3324_v48  ;;  %v3318_v36 = vand.u32 4294901760, %v3317_v62  ;;  %v3338_v40 = vsub.f32 %v11329_v60, %v12983_v6 }
 0x2ed   : > { %v11353_v8 = vpack.c.bf16 %v3088_v58, %v3085_v49  ;;  %v11355_v63 = vsub.f32 %v3037_v53, %v3085_v49  ;;  %v3046_v14 = vsel %vm1708_vm2, %v9988_v54, 0  ;;  %v11366_v41 = vsub.f32 %v3040_v15, %v3088_v58 }
 0x2ee   : > { %v3094_v19 = vand.u32 4294901760, %v3046_v14  ;;  %v3043_v29 = vsel %vm1708_vm2, %v9989_v1, 0  ;;  %v2950_v22 = vmul.f32 %v9989_v1, %v2897_v26  ;;  %v8664_v23 = vpop.f32.mrb[8].mxu0  ;;  %v3331_v45 = vsub.f32 %v11336_v17, %v12984_v0 }
 0x2ef   : > { %v3091_v31 = vand.u32 4294901760, %v3043_v29  ;;  %v11360_v32 = vadd.f32 %v8664_v23, %v11307_v28  ;;  %v2802_v33 = vpop.f32.mrb[9].mxu0  ;;  %4833 = vrot.lane.b32.xlu0 %v2949_v3, %s10554_s23  ;;  %v12982_v46 = vand.u32 4294901760, %v11355_v63  ;;  %v2951_v57 = vmul.f32 %v9988_v54, %v2902_v18 }
 0x2f0   : > { %v9991_v42 = vadd.f32 %v11307_v28, %v2802_v33  ;;  %4835 = vrot.lane.b32.xlu1 %v2950_v22, %s10554_s23  ;;  %9509 = vmatpush3.bf16.xpose.msra.mxu1 %v11334_v13  ;;  %v11380_v12 = vsub.f32 %v3046_v14, %v3094_v19  ;;  %v11387_v47 = vpack.c.bf16 %v3325_v30, %v3318_v36  ;;  %v3339_v51 = vand.u32 4294901760, %v3338_v40 }
 0x2f1   : > { %13075 = vst [vmem:[#allocation11_spill] sm:$0xff] %v11360_v32  ;;  %v11375_v52 = vpack.c.bf16 %v3094_v19, %v3091_v31  ;;  %v3052_v11 = vsel %vm1708_vm2, %v11360_v32, 0  ;;  %9511 = vmatprep.subr.bf16.mxu1 %v11353_v8  ;;  %v12981_v55 = vand.u32 4294901760, %v11366_v41  ;;  %v11390_v56 = vsub.f32 %v3043_v29, %v3091_v31  ;;  %v2971_v32 = vld [vmem:[#allocation2 + $0x58] sm:$0xff] }
 0x2f2   : > { %v3100_v10 = vand.u32 4294901760, %v3052_v11  ;;  %v3049_v21 = vsel %vm1708_vm2, %v9991_v42, 0  ;;  %v2952_v24 = vmul.f32 %v9991_v42, %v2907_v35  ;;  %v8667_v27 = vpop.f32.mrb[10].mxu0  ;;  %v3332_v4 = vand.u32 4294901760, %v3331_v45 }
 0x2f3   : > { %13076 = vst [vmem:[#allocation12_spill] sm:$0xff] %v11375_v52  ;;  %v3097_v39 = vand.u32 4294901760, %v3049_v21  ;;  %v11384_v43 = vadd.f32 %v8667_v27, %v11307_v28  ;;  %v2814_v44 = vpop.f32.mrb[11].mxu0  ;;  %4837 = vrot.lane.b32.xlu0 %v2951_v57, %s10554_s23  ;;  %v3345_v48 = vsub.f32 %v11355_v63, %v12982_v46  ;;  %v12978_v49 = vand.u32 4294901760, %v11380_v12 }
 0x2f4   : > { %v11393_v61 = vadd.f32 %v11307_v28, %v2814_v44  ;;  %4839 = vrot.lane.b32.xlu1 %v2952_v24, %s10554_s23  ;;  %v11396_v9 = vsub.f32 %v3052_v11, %v3100_v10  ;;  %v11413_v1 = vpack.c.bf16 %v3339_v51, %v3332_v4  ;;  %v12980_v3 = vand.u32 4294901760, %v11390_v56 }
 0x2f5   : > { %13077 = vst [vmem:[#allocation13_spill] sm:$0xff] %v11384_v43  ;;  %v11398_v15 = vpack.c.bf16 %v3100_v10, %v3097_v39  ;;  %v3058_v26 = vsel %vm1708_vm2, %v11384_v43, 0  ;;  %v11402_v58 = vsub.f32 %v3049_v21, %v3097_v39  ;;  %v3352_v29 = vsub.f32 %v11366_v41, %v12981_v55 }
 0x2f6   : > { %13078 = vst [vmem:[#allocation14_spill] sm:$0xff] %v11393_v61  ;;  %v3106_v53 = vand.u32 4294901760, %v3058_v26  ;;  %v3055_v16 = vsel %vm1708_vm2, %v11393_v61, 0  ;;  %v8670_v38 = vpop.f32.mrb[12].mxu0  ;;  %v12979_v18 = vand.u32 4294901760, %v11396_v9  ;;  %v3346_v40 = vand.u32 4294901760, %v3345_v48 }
 0x2f7   : > { %13079 = vst [vmem:[#allocation15_spill] sm:$0xff] %v11398_v15  ;;  %v3103_v54 = vand.u32 4294901760, %v3055_v16  ;;  %v11411_v59 = vadd.f32 %v8670_v38, %v11307_v28  ;;  %v2826_v62 = vpop.f32.mrb[13].mxu0  ;;  %v12977_v31 = vand.u32 4294901760, %v11402_v58  ;;  %v3353_v10 = vand.u32 4294901760, %v3352_v29 }
 0x2f8   : > { %v11416_v14 = vsub.f32 %v3058_v26, %v3106_v53  ;;  %v11419_v19 = vadd.f32 %v11307_v28, %v2826_v62  ;;  %9513 = vmatpush3.bf16.xpose.msra.mxu1 %v11353_v8  ;;  %v3359_v27 = vsub.f32 %v11390_v56, %v12980_v3  ;;  %v3366_v39 = vsub.f32 %v11380_v12, %v12978_v49 }
 0x2f9   : > { %13080 = vst [vmem:[#allocation16_spill] sm:$0xff] %v11411_v59  ;;  %v11426_v22 = vpack.c.bf16 %v3106_v53, %v3103_v54  ;;  %v11428_v23 = vsub.f32 %v3055_v16, %v3103_v54  ;;  %v3064_v30 = vsel %vm1708_vm2, %v11411_v59, 0  ;;  %9515 = vmatprep.subr.bf16.mxu1 %v11375_v52  ;;  %v11456_v54 = vpack.c.bf16 %v3353_v10, %v3346_v40 }
 0x2fa   : > { %13081 = vst [vmem:[#allocation17_spill] sm:$0xff] %v11419_v19  ;;  %v3112_v33 = vand.u32 4294901760, %v3064_v30  ;;  %v3061_v35 = vsel %vm1708_vm2, %v11419_v19, 0  ;;  %v8673_v36 = vpop.f32.mrb[14].mxu0  ;;  %v3393_v42 = vand.u32 4294901760, %v11416_v14  ;;  %v3360_v62 = vand.u32 4294901760, %v3359_v27 }
 0x2fb   : > { %13082 = vst [vmem:[#allocation18_spill] sm:$0xff] %v11426_v22  ;;  %v3109_v45 = vand.u32 4294901760, %v3061_v35  ;;  %v11438_v57 = vadd.f32 %v8673_v36, %v11307_v28  ;;  %v2838_v11 = vpop.f32.mrb[15].mxu0  ;;  %v3386_v44 = vand.u32 4294901760, %v11428_v23  ;;  %v2972_v19 = vld [vmem:[#allocation2 + $0x60] sm:$0xff] }
 0x2fc   : > { %v3406_v21 = vsub.f32 %v3064_v30, %v3112_v33  ;;  %v11441_v24 = vadd.f32 %v11307_v28, %v2838_v11  ;;  %v3367_v30 = vand.u32 4294901760, %v3366_v39  ;;  %v3394_v11 = vsub.f32 %v11416_v14, %v3393_v42 }
 0x2fd   : > { %13083 = vst [vmem:[#allocation19_spill] sm:$0xff] %v11438_v57  ;;  %v11450_v51 = vpack.c.bf16 %v3112_v33, %v3109_v45  ;;  %v3399_v4 = vsub.f32 %v3061_v35, %v3109_v45  ;;  %v3070_v26 = vsel %vm1708_vm2, %v11438_v57, 0  ;;  %v3373_v33 = vsub.f32 %v11402_v58, %v12977_v31 }
 0x2fe   : > { %13084 = vst [vmem:[#allocation20_spill] sm:$0xff] %v11441_v24  ;;  %v3407_v53 = vand.u32 4294901760, %v3406_v21  ;;  %v3118_v16 = vand.u32 4294901760, %v3070_v26  ;;  %v3067_v28 = vsel %vm1708_vm2, %v11441_v24, 0  ;;  %v3380_v35 = vsub.f32 %v11396_v9, %v12979_v18 }
 0x2ff   : > { %13085 = vst [vmem:[#allocation21_spill] sm:$0xff] %v11450_v51  ;;  %v3400_v38 = vand.u32 4294901760, %v3399_v4  ;;  %v3115_v48 = vand.u32 4294901760, %v3067_v28  ;;  %v3387_v40 = vsub.f32 %v11428_v23, %v3386_v44  ;;  %v11472_v27 = vpack.c.bf16 %v3367_v30, %v3360_v62 }
 0x300   : > { %v3420_v29 = vsub.f32 %v3070_v26, %v3118_v16  ;;  %9517 = vmatpush3.bf16.xpose.msra.mxu1 %v11375_v52  ;;  %v3374_v39 = vand.u32 4294901760, %v3373_v33  ;;  %v3381_v26 = vand.u32 4294901760, %v3380_v35  ;;  %v3395_v49 = vand.u32 4294901760, %v3394_v11 }
 0x301   : > { %v11465_v36 = vpack.c.bf16 %v3118_v16, %v3115_v48  ;;  %v3413_v45 = vsub.f32 %v3067_v28, %v3115_v48  ;;  %9519 = vmatprep.subr.bf16.mxu1 %v11398_v15  ;;  %v3388_v31 = vand.u32 4294901760, %v3387_v40  ;;  %v3401_v18 = vsub.f32 %v3399_v4, %v3400_v38 }
 0x302   : > { %v3421_v10 = vand.u32 4294901760, %v3420_v29  ;;  %v11474_v16 = vpack.c.bf16 %v3381_v26, %v3374_v39  ;;  %v3408_v28 = vsub.f32 %v3406_v21, %v3407_v53  ;;  %v11480_v62 = vpack.c.bf16 %v11315_v20, %v11320_v7  ;;  %v2961_v20 = vld [vmem:[#allocation2 + $0x8] sm:$0xff] }
 0x303   : > { %13086 = vst [vmem:[#allocation22_spill] sm:$0xff] %v11465_v36  ;;  %v3414_v5 = vand.u32 4294901760, %v3413_v45  ;;  %v11476_v3 = vpack.c.bf16 %v3395_v49, %v3388_v31  ;;  %v3402_v55 = vand.u32 4294901760, %v3401_v18  ;;  %v11487_v35 = vpack.c.bf16 %v11329_v60, %v11336_v17 }
 0x304   : > { %v3422_v48 = vsub.f32 %v3420_v29, %v3421_v10  ;;  %v3409_v6 = vand.u32 4294901760, %v3408_v28  ;;  %v11491_v49 = vpack.c.bf16 %v11366_v41, %v11355_v63  ;;  %v11498_v31 = vpack.c.bf16 %v11380_v12, %v11390_v56 }
 0x305   : > { %v3415_v46 = vsub.f32 %v3413_v45, %v3414_v5  ;;  %v11510_v40 = vpack.c.bf16 %v3420_v29, %v3413_v45  ;;  %v13088_v11 = vand.u32 4294901760, %v11336_v17  ;;  %v13089_v39 = vand.u32 4294901760, %v11329_v60 }
 0x306   : > { %v3423_v0 = vand.u32 4294901760, %v3422_v48  ;;  %v11483_v33 = vpack.c.bf16 %v3409_v6, %v3402_v55  ;;  %v11502_v6 = vpack.c.bf16 %v11396_v9, %v11402_v58  ;;  %v11508_v55 = vpack.c.bf16 %v3406_v21, %v3399_v4 }
 0x307   : > { %v3416_v30 = vand.u32 4294901760, %v3415_v46  ;;  %v11506_v46 = vpack.c.bf16 %v11416_v14, %v11428_v23  ;;  %v11522_v26 = vpack.c.bf16 %v13089_v39, %v13088_v11  ;;  %v13091_v28 = vand.u32 4294901760, %v11355_v63 }
 0x308   : > { %9521 = vmatpush3.bf16.xpose.msra.mxu1 %v11398_v15  ;;  %v13092_v23 = vand.u32 4294901760, %v11366_v41  ;;  %v13094_v4 = vand.u32 4294901760, %v11390_v56  ;;  %v13095_v7 = vand.u32 4294901760, %v11380_v12  ;;  %v11544_v17 = vpack.c.bf16 %v3393_v42, %v3386_v44  ;;  %v2962_v41 = vld [vmem:[#allocation2 + $0x10] sm:$0xff]  ;;  %v2965_v44 = vld [vmem:[#allocation2 + $0x28] sm:$0xff] }
 0x309   : > { %9523 = vmatprep.subr.bf16.mxu1 %v11426_v22  ;;  %v11494_v18 = vpack.c.bf16 %v3423_v0, %v3416_v30  ;;  %v11516_v0 = vpack.c.bf16 %v3323_v37, %v3316_v50  ;;  %13090 = vst [vmem:[#allocation24_spill] sm:$0xff] %v11522_v26  ;;  %v13097_v37 = vand.u32 4294901760, %v11402_v58  ;;  %v13098_v50 = vand.u32 4294901760, %v11396_v9  ;;  %v2963_v9 = vld [vmem:[#allocation2 + $0x18] sm:$0xff]  ;;  %v2964_v58 = vld [vmem:[#allocation2 + $0x20] sm:$0xff] }
 0x30a   : > { %v11528_v21 = vpack.c.bf16 %v13092_v23, %v13091_v28  ;;  %v11534_v29 = vpack.c.bf16 %v13095_v7, %v13094_v4  ;;  %13100 = vst [vmem:[#allocation28_spill] sm:$0xff] %v11544_v17  ;;  %v11546_v63 = vpack.c.bf16 %v3407_v53, %v3400_v38  ;;  %v11548_v45 = vpack.c.bf16 %v3421_v10, %v3414_v5  ;;  %v2966_v53 = vld [vmem:[#allocation2 + $0x30] sm:$0xff]  ;;  %v2967_v23 = vld [vmem:[#allocation2 + $0x38] sm:$0xff]  ;;  %v2968_v4 = vld [vmem:[#allocation2 + $0x40] sm:$0xff] }
 0x30b   : > { %13087 = vst [vmem:[#allocation23_spill] sm:$0xff] %v11516_v0  ;;  %v11540_v60 = vpack.c.bf16 %v13098_v50, %v13097_v37  ;;  %v2980_v12 = vsel %vm1708_vm2, %v2961_v20, 0  ;;  %v2983_v56 = vsel %vm1708_vm2, %v2962_v41, 0  ;;  %v2986_v42 = vsel %vm1708_vm2, %v2963_v9, 0  ;;  %v2973_v17 = vld [vmem:[#allocation2 + $0x68] sm:$0xff] }
 0x30c   : > { %13093 = vst [vmem:[#allocation25_spill] sm:$0xff] %v11528_v21  ;;  %13096 = vst [vmem:[#allocation26_spill] sm:$0xff] %v11534_v29  ;;  %v11554_v48 = vand.u32 4294901760, %v2980_v12  ;;  %v11556_v14 = vand.u32 4294901760, %v2983_v56  ;;  %v2989_v5 = vsel %vm1708_vm2, %v2964_v58, 0  ;;  %v11563_v10 = vand.u32 4294901760, %v2986_v42 }
 0x30d   : > { %13099 = vst [vmem:[#allocation27_spill] sm:$0xff] %v11540_v60  ;;  %13101 = vst [vmem:[#allocation29_spill] sm:$0xff] %v11546_v63  ;;  %v2992_v30 = vsel %vm1708_vm2, %v2965_v44, 0  ;;  %v2995_v11 = vsel %vm1708_vm2, %v2966_v53, 0  ;;  %v11571_v28 = vand.u32 4294901760, %v2989_v5  ;;  %v2998_v41 = vsel %vm1708_vm2, %v2967_v23, 0 }
 0x30e   : > { %13102 = vst [vmem:[#allocation30_spill] sm:$0xff] %v11548_v45  ;;  %v11561_v38 = vsub.f32 %v2980_v12, %v11554_v48  ;;  %v11569_v39 = vsub.f32 %v2983_v56, %v11556_v14  ;;  %v11574_v7 = vand.u32 4294901760, %v2992_v30  ;;  %v11576_v20 = vand.u32 4294901760, %v2995_v11  ;;  %v2969_v58 = vld [vmem:[#allocation2 + $0x48] sm:$0xff]  ;;  %v2974_v21 = vld [vmem:[#allocation2 + $0x70] sm:$0xff] }
 0x30f   : > { %v11580_v50 = vsub.f32 %v2986_v42, %v11563_v10  ;;  %v11585_v56 = vsub.f32 %v2989_v5, %v11571_v28  ;;  %v3001_v9 = vsel %vm1708_vm2, %v2968_v4, 0  ;;  %v11594_v37 = vand.u32 4294901760, %v2998_v41  ;;  %v2970_v42 = vld [vmem:[#allocation2 + $0x50] sm:$0xff] }
 0x310   : > { %9525 = vmatpush3.bf16.xpose.msra.mxu1 %v11426_v22  ;;  %v11589_v44 = vsub.f32 %v2992_v30, %v11574_v7  ;;  %v11592_v53 = vsub.f32 %v2995_v11, %v11576_v20  ;;  %v13103_v57 = vand.u32 4294901760, %v11561_v38  ;;  %v11600_v5 = vand.u32 4294901760, %v3001_v9 }
 0x311   : > { %9527 = vmatprep.subr.bf16.mxu1 %v11450_v51  ;;  %v13104_v4 = vand.u32 4294901760, %v11569_v39  ;;  %v3004_v59 = vsel %vm1708_vm2, %v2969_v58, 0  ;;  %v3007_v43 = vsel %vm1708_vm2, %v2970_v42, 0  ;;  %v11613_v24 = vsub.f32 %v2998_v41, %v11594_v37 }
 0x312   : > { %v3166_v23 = vsub.f32 %v11561_v38, %v13103_v57  ;;  %v11619_v58 = vsub.f32 %v3001_v9, %v11600_v5  ;;  %v11621_v45 = vand.u32 4294901760, %v3004_v59  ;;  %v13106_v63 = vand.u32 4294901760, %v11585_v56 }
 0x313   : > { %v3176_v30 = vsub.f32 %v11569_v39, %v13104_v4  ;;  %v13105_v4 = vand.u32 4294901760, %v11580_v50  ;;  %v11626_v12 = vand.u32 4294901760, %v3007_v43  ;;  %v3010_v41 = vsel %vm1708_vm2, %v2971_v32, 0 }
 0x314   : > { %v3167_v61 = vand.u32 4294901760, %v3166_v23  ;;  %v3196_v57 = vsub.f32 %v11585_v56, %v13106_v63  ;;  %v3013_v23 = vsel %vm1708_vm2, %v2972_v19, 0  ;;  %v13107_v60 = vand.u32 4294901760, %v11589_v44 }
 0x315   : > { %v3186_v11 = vsub.f32 %v11580_v50, %v13105_v4  ;;  %v3177_v42 = vand.u32 4294901760, %v3176_v30  ;;  %v13108_v9 = vand.u32 4294901760, %v11592_v53  ;;  %v11639_v32 = vsub.f32 %v3004_v59, %v11621_v45 }
 0x316   : > { %v3206_v4 = vsub.f32 %v11589_v44, %v13107_v60  ;;  %v11641_v19 = vand.u32 4294901760, %v3010_v41  ;;  %v3197_v60 = vand.u32 4294901760, %v3196_v57  ;;  %v11645_v0 = vsub.f32 %v3007_v43, %v11626_v12 }
 0x317   : > { %v3216_v29 = vsub.f32 %v11592_v53, %v13108_v9  ;;  %v3187_v63 = vand.u32 4294901760, %v3186_v11  ;;  %v11647_v9 = vand.u32 4294901760, %v3013_v23  ;;  %v3016_v30 = vsel %vm1708_vm2, %v2973_v17, 0  ;;  %v2975_v11 = vld [vmem:[#allocation2 + $0x78] sm:$0xff] }
 0x318   : > { %9529 = vmatpush3.bf16.xpose.msra.mxu1 %v11450_v51  ;;  %v3207_v59 = vand.u32 4294901760, %v3206_v4  ;;  %v13110_v57 = vand.u32 4294901760, %v11619_v58  ;;  %v11660_v17 = vsub.f32 %v3010_v41, %v11641_v19  ;;  %v11662_v51 = vand.u32 4294901760, %v3016_v30 }
 0x319   : > { %9531 = vmatprep.subr.bf16.mxu1 %v11465_v36  ;;  %v3217_v26 = vand.u32 4294901760, %v3216_v29  ;;  %v11666_v29 = vsub.f32 %v3013_v23, %v11647_v9 }
 0x31a   : > { %v3236_v43 = vsub.f32 %v11619_v58, %v13110_v57  ;;  %13111 = vst [vmem:[#allocation31_spill] sm:$0xff] %v11660_v17  ;;  %v13008_v41 = vand.u32 4294901760, %v11660_v17  ;;  %v11676_v22 = vsub.f32 %v3016_v30, %v11662_v51 }
 0x31b   : > { %13112 = vst [vmem:[#allocation32_spill] sm:$0xff] %v11666_v29 }
 0x31c   : > { %13113 = vst [vmem:[#allocation33_spill] sm:$0xff] %v11676_v22  ;;  %v3237_v23 = vand.u32 4294901760, %v3236_v43 }
 0x320   : > { %9533 = vmatpush3.bf16.xpose.msra.mxu1 %v11465_v36  ;;  %v13109_v36 = vand.u32 4294901760, %v11613_v24 }
 0x321   : > { %9535 = vmatprep.subr.bf16.mxu1 %v11387_v47 }
 0x327   : > { %8707 = vmatmul.mubr.f32.vlgmr.msra.gmra.mrb[0].mxu1 %v3167_v61  ;;  %v3019_v61 = vsel %vm1708_vm2, %v2974_v21, 0  ;;  %v13007_v21 = vand.u32 4294901760, %v11645_v0 }
 0x328   : > { %9537 = vmatpush3.bf16.xpose.msra.mxu1 %v11387_v47  ;;  %8709 = vmatprep.mubr.f32.mxu1 %v3177_v42  ;;  %v3226_v47 = vsub.f32 %v11613_v24, %v13109_v36  ;;  %v13006_v42 = vand.u32 4294901760, %v11639_v32  ;;  %v11668_v4 = vand.u32 4294901760, %v3019_v61  ;;  %v3022_v36 = vsel %vm1708_vm2, %v2975_v11, 0 }
 0x329   : > { %9539 = vmatprep.subr.bf16.mxu1 %v11413_v1  ;;  %v3256_v11 = vsub.f32 %v11645_v0, %v13007_v21 }
 0x32a   : > { %v3246_v57 = vsub.f32 %v11639_v32, %v13006_v42  ;;  %v3266_v42 = vsub.f32 %v11660_v17, %v13008_v41 }
 0x32b   : > { %8710 = vmatmul.mubr.f32.gmra.mrb[2].mxu1 %v3187_v63  ;;  %v3227_v63 = vand.u32 4294901760, %v3226_v47  ;;  %v11686_v47 = vsub.f32 %v3019_v61, %v11668_v4  ;;  %v3257_v43 = vand.u32 4294901760, %v3256_v11 }
 0x32c   : > { %8712 = vmatprep.mubr.f32.mxu1 %v3197_v60  ;;  %v11678_v60 = vand.u32 4294901760, %v3022_v36  ;;  %v3247_v30 = vand.u32 4294901760, %v3246_v57 }
 0x32d   : > { %13114 = vst [vmem:[#allocation34_spill] sm:$0xff] %v11686_v47  ;;  %v13011_v21 = vand.u32 4294901760, %v11686_v47 }
 0x32f   : > { %8713 = vmatmul.mubr.f32.gmra.mrb[4].mxu1 %v3207_v59  ;;  %v13012_v59 = vand.u32 4294901760, %v11666_v29 }
 0x330   : > { %9541 = vmatpush3.bf16.xpose.msra.mxu1 %v11413_v1  ;;  %8715 = vmatprep.mubr.f32.mxu1 %v3217_v26  ;;  %v13009_v1 = vand.u32 4294901760, %v11676_v22  ;;  %v11694_v26 = vsub.f32 %v3022_v36, %v11678_v60 }
 0x331   : > { %9543 = vmatprep.subr.bf16.mxu1 %v11456_v54  ;;  %v3276_v61 = vsub.f32 %v11666_v29, %v13012_v59 }
 0x332   : > { %13115 = vst [vmem:[#allocation35_spill] sm:$0xff] %v11694_v26  ;;  %v3286_v57 = vsub.f32 %v11676_v22, %v13009_v1  ;;  %v13010_v41 = vand.u32 4294901760, %v11694_v26 }
 0x333   : > { %8716 = vmatmul.mubr.f32.gmra.mrb[6].mxu1 %v3227_v63  ;;  %v3267_v63 = vand.u32 4294901760, %v3266_v42  ;;  %v3277_v36 = vand.u32 4294901760, %v3276_v61 }
 0x334   : > { %8718 = vmatprep.mubr.f32.mxu1 %v3237_v23  ;;  %v3296_v23 = vsub.f32 %v11686_v47, %v13011_v21  ;;  %v3287_v11 = vand.u32 4294901760, %v3286_v57  ;;  %v3306_v42 = vsub.f32 %v11694_v26, %v13010_v41 }
 0x336   : > { %v3307_v1 = vand.u32 4294901760, %v3306_v42 }
 0x337   : > { %8719 = vmatmul.mubr.f32.gmra.mrb[8].mxu1 %v3247_v30  ;;  %v3297_v30 = vand.u32 4294901760, %v3296_v23 }
 0x338   : > { %9545 = vmatpush3.bf16.xpose.msra.mxu1 %v11456_v54  ;;  %8721 = vmatprep.mubr.f32.mxu1 %v3257_v43  ;;  %v11714_v54 = vpop.permute.xlu1 %2911  ;;  %v11717_v43 = vpop.permute.xlu0 %2916 }
 0x339   : > { %9547 = vmatprep.subr.bf16.mxu1 %v11472_v27  ;;  %13116 = vst [vmem:[#allocation36_spill] sm:$0xff] %v11714_v54  ;;  %13117 = vst [vmem:[#allocation37_spill] sm:$0xff] %v11717_v43 }
 0x33b   : > { %8722 = vmatmul.mubr.f32.gmra.mrb[10].mxu1 %v3267_v63 }
 0x33c   : > { %8724 = vmatprep.mubr.f32.mxu1 %v3277_v36  ;;  %v11721_v61 = vpop.permute.xlu1 %2921  ;;  %v11723_v63 = vpop.permute.xlu0 %2926 }
 0x33d   : > { %13118 = vst [vmem:[#allocation38_spill] sm:$0xff] %v11721_v61  ;;  %13119 = vst [vmem:[#allocation39_spill] sm:$0xff] %v11723_v63 }
 0x33f   : > { %8725 = vmatmul.mubr.f32.gmra.mrb[12].mxu1 %v3287_v11 }
 0x340   : > { %9549 = vmatpush3.bf16.xpose.msra.mxu1 %v11472_v27  ;;  %8727 = vmatprep.mubr.f32.mxu1 %v3297_v30  ;;  %v11725_v57 = vpop.permute.xlu1 %2931  ;;  %v11728_v27 = vpop.permute.xlu0 %2936 }
 0x341   : > { %9551 = vmatprep.subr.bf16.mxu1 %v11474_v16  ;;  %13120 = vst [vmem:[#allocation40_spill] sm:$0xff] %v11725_v57  ;;  %13121 = vst [vmem:[#allocation41_spill] sm:$0xff] %v11728_v27 }
 0x343   : > { %8728 = vmatmul.mubr.f32.gmra.mrb[14].mxu1 %v3307_v1 }
 0x344   : > { %8762 = vmatprep.mubr.f32.mxu1 %v11295_v34  ;;  %v11731_v36 = vpop.permute.xlu1 %2941 }
 0x345   : > { %13122 = vst [vmem:[#allocation42_spill] sm:$0xff] %v11731_v36 }
 0x348   : > { %9553 = vmatpush3.bf16.xpose.msra.mxu1 %v11474_v16 }
 0x349   : > { %9555 = vmatprep.subr.bf16.mxu1 %v11476_v3 }
 0x350   : > { %9557 = vmatpush3.bf16.xpose.msra.mxu1 %v11476_v3 }
 0x351   : > { %9559 = vmatprep.subr.bf16.mxu1 %v11483_v33 }
 0x355   : > { %v4826_v1 = vpop.permute.xlu0 %4825 }
 0x356   : > { %v4875_v23 = vand.u32 4294901760, %v4826_v1 }
 0x358   : > { %v5121_v11 = vsub.f32 %v4826_v1, %v4875_v23  ;;  %9561 = vmatpush3.bf16.xpose.msra.mxu1 %v11483_v33 }
 0x359   : > { %9563 = vmatprep.subr.bf16.mxu1 %v11494_v18  ;;  %v4824_v16 = vpop.permute.xlu0 %4823 }
 0x35a   : > { %v5122_v42 = vand.u32 4294901760, %v5121_v11  ;;  %v4872_v30 = vand.u32 4294901760, %v4824_v16  ;;  %v4828_v41 = vpop.permute.xlu1 %4827 }
 0x35b   : > { %v4878_v21 = vand.u32 4294901760, %v4828_v41 }
 0x35c   : > { %v11735_v59 = vpack.c.bf16 %v4875_v23, %v4872_v30  ;;  %v5114_v3 = vsub.f32 %v4824_v16, %v4872_v30  ;;  %v5123_v57 = vsub.f32 %v5121_v11, %v5122_v42 }
 0x35d   : > { %v5128_v61 = vsub.f32 %v4828_v41, %v4878_v21  ;;  %v4830_v54 = vpop.permute.xlu0 %4829 }
 0x35e   : > { %13123 = vst [vmem:[#allocation43_spill] sm:$0xff] %v11735_v59  ;;  %v5115_v27 = vand.u32 4294901760, %v5114_v3  ;;  %v4881_v63 = vand.u32 4294901760, %v4830_v54  ;;  %v4832_v36 = vpop.permute.xlu1 %4831  ;;  %9695 = vmatprep.subr.bf16.mxu0 %v11735_v59  ;;  %v11738_v1 = vpack.c.bf16 %v5121_v11, %v5114_v3  ;;  %v5124_v15 = vand.u32 4294901760, %v5123_v57 }
 0x35f   : > { %v5129_v33 = vand.u32 4294901760, %v5128_v61  ;;  %v4884_v43 = vand.u32 4294901760, %v4832_v36  ;;  %9697 = vmatpush3.bf16.msra.mxu0 %v11735_v59 }
 0x360   : > { %13124 = vst [vmem:[#allocation44_spill] sm:$0xff] %v11738_v1  ;;  %v5116_v34 = vsub.f32 %v5114_v3, %v5115_v27  ;;  %v11741_v26 = vpack.c.bf16 %v4881_v63, %v4878_v21  ;;  %v5135_v23 = vsub.f32 %v4830_v54, %v4881_v63  ;;  %9565 = vmatpush3.bf16.xpose.msra.mxu1 %v11494_v18 }
 0x361   : > { %v11744_v16 = vpack.c.bf16 %v5122_v42, %v5115_v27  ;;  %v5142_v41 = vsub.f32 %v4832_v36, %v4884_v43  ;;  %9567 = vmatprep.subr.bf16.mxu1 %v11480_v62  ;;  %v4834_v30 = vpop.permute.xlu0 %4833  ;;  %v5130_v21 = vsub.f32 %v5128_v61, %v5129_v33 }
 0x362   : > { %v5136_v47 = vand.u32 4294901760, %v5135_v23  ;;  %v4887_v11 = vand.u32 4294901760, %v4834_v30  ;;  %v4836_v1 = vpop.permute.xlu1 %4835  ;;  %9699 = vmatprep.subr.bf16.mxu0 %v11741_v26  ;;  %v5117_v22 = vand.u32 4294901760, %v5116_v34  ;;  %v11748_v59 = vpack.c.bf16 %v5135_v23, %v5128_v61 }
 0x363   : > { %13125 = vst [vmem:[#allocation45_spill] sm:$0xff] %v11744_v16  ;;  %v5143_v3 = vand.u32 4294901760, %v5142_v41  ;;  %v4890_v54 = vand.u32 4294901760, %v4836_v1  ;;  %9701 = vmatpush3.bf16.msra.mxu0 %v11741_v26 }
 0x364   : > { %13126 = vst [vmem:[#allocation46_spill] sm:$0xff] %v11748_v59  ;;  %v5137_v18 = vsub.f32 %v5135_v23, %v5136_v47  ;;  %v11751_v63 = vpack.c.bf16 %v4887_v11, %v4884_v43  ;;  %v5149_v27 = vsub.f32 %v4834_v30, %v4887_v11  ;;  %v11753_v36 = vpack.c.bf16 %v5124_v15, %v5117_v22 }
 0x365   : > { %v5144_v57 = vsub.f32 %v5142_v41, %v5143_v3  ;;  %v5156_v42 = vsub.f32 %v4836_v1, %v4890_v54  ;;  %v4838_v16 = vpop.permute.xlu0 %4837  ;;  %v11755_v29 = vpack.c.bf16 %v5136_v47, %v5129_v33  ;;  %v5131_v43 = vand.u32 4294901760, %v5130_v21 }
 0x366   : > { %v5150_v17 = vand.u32 4294901760, %v5149_v27  ;;  %v4893_v34 = vand.u32 4294901760, %v4838_v16  ;;  %9703 = vmatprep.subr.bf16.mxu0 %v11751_v63  ;;  %v5138_v61 = vand.u32 4294901760, %v5137_v18  ;;  %v11758_v59 = vpack.c.bf16 %v5149_v27, %v5142_v41 }
 0x367   : > { %13127 = vst [vmem:[#allocation47_spill] sm:$0xff] %v11755_v29  ;;  %v5157_v52 = vand.u32 4294901760, %v5156_v42  ;;  %9705 = vmatpush3.bf16.msra.mxu0 %v11751_v63  ;;  %8763 = vmatmul.mubr.f32.vlgmr.msra.gmra.mrb[0].mxu1 %v11554_v48  ;;  %v5145_v33 = vand.u32 4294901760, %v5144_v57  ;;  %v13139_v57 = vld [vmem:[#allocation21_spill] sm:$0xff] }
 0x368   : > { %v5151_v15 = vsub.f32 %v5149_v27, %v5150_v17  ;;  %v11762_v22 = vpack.c.bf16 %v4893_v34, %v4890_v54  ;;  %v5163_v1 = vsub.f32 %v4838_v16, %v4893_v34  ;;  %9569 = vmatpush3.bf16.xpose.msra.mxu1 %v11480_v62  ;;  %8765 = vmatprep.mubr.f32.mxu1 %v11556_v14  ;;  %v13138_v27 = vld [vmem:[#allocation18_spill] sm:$0xff]  ;;  %v13141_v34 = vld [vmem:[#allocation23_spill] sm:$0xff] }
 0x369   : > { %9571 = vmatprep.subr.bf16.mxu1 %v11487_v35  ;;  %v11767_v47 = vpack.c.bf16 %v5138_v61, %v5131_v43  ;;  %v11769_v23 = vpack.c.bf16 %v5150_v17, %v5143_v3  ;;  %v5158_v41 = vsub.f32 %v5156_v42, %v5157_v52  ;;  %v13142_v61 = vand.u32 4294901760, %v11561_v38  ;;  %v13144_v43 = vld [vmem:[#allocation24_spill] sm:$0xff] }
 0x36a   : > { %v5164_v30 = vand.u32 4294901760, %v5163_v1  ;;  %9707 = vmatprep.subr.bf16.mxu0 %v11762_v22  ;;  %v5152_v11 = vand.u32 4294901760, %v5151_v15  ;;  %v11772_v21 = vpack.c.bf16 %v5163_v1, %v5156_v42  ;;  %v13140_v42 = vld [vmem:[#allocation22_spill] sm:$0xff]  ;;  %v13145_v15 = vand.u32 4294901760, %v11580_v50 }
 0x36b   : > { %13128 = vst [vmem:[#allocation48_spill] sm:$0xff] %v11769_v23  ;;  %9709 = vmatpush3.bf16.msra.mxu0 %v11762_v22  ;;  %8766 = vmatmul.mubr.f32.gmra.mrb[2].mxu1 %v11563_v10  ;;  %v5159_v17 = vand.u32 4294901760, %v5158_v41  ;;  %v13149_v41 = vld [vmem:[#allocation25_spill] sm:$0xff] }
 0x36c   : > { %v5165_v62 = vsub.f32 %v5163_v1, %v5164_v30  ;;  %8768 = vmatprep.mubr.f32.mxu1 %v11571_v28  ;;  %v11777_v16 = vpack.c.bf16 %v5152_v11, %v5145_v33  ;;  %v11779_v54 = vpack.c.bf16 %v5164_v30, %v5157_v52  ;;  %v13130_v52 = vld [vmem:[#allocation12_spill] sm:$0xff]  ;;  %v13146_v1 = vand.u32 4294901760, %v11585_v56 }
 0x36d   : > { %v13147_v33 = vand.u32 4294901760, %v11589_v44  ;;  %v13151_v30 = vand.u32 4294901760, %v11619_v58 }
 0x36e   : > { %13129 = vst [vmem:[#allocation49_spill] sm:$0xff] %v11779_v54  ;;  %v5166_v3 = vand.u32 4294901760, %v5165_v62  ;;  %v13161_v62 = vld [vmem:[#allocation10_spill] sm:$0xff] }
 0x36f   : > { %8769 = vmatmul.mubr.f32.gmra.mrb[4].mxu1 %v11574_v7 }
 0x370   : > { %9573 = vmatpush3.bf16.xpose.msra.mxu1 %v11487_v35  ;;  %8771 = vmatprep.mubr.f32.mxu1 %v11576_v20  ;;  %v11784_v18 = vpack.c.bf16 %v5166_v3, %v5159_v17  ;;  %v13131_v35 = vld [vmem:[#allocation31_spill] sm:$0xff]  ;;  %v13162_v17 = vld [vmem:[#allocation28_spill] sm:$0xff]  ;;  %v13163_v3 = vld [vmem:[#allocation29_spill] sm:$0xff] }
 0x371   : > { %9575 = vmatprep.subr.bf16.mxu1 %v11491_v49 }
 0x373   : > { %8772 = vmatmul.mubr.f32.gmra.mrb[6].mxu1 %v11594_v37 }
 0x374   : > { %8774 = vmatprep.mubr.f32.mxu1 %v11600_v5 }
 0x377   : > { %8775 = vmatmul.mubr.f32.gmra.mrb[8].mxu1 %v11621_v45 }
 0x378   : > { %9577 = vmatpush3.bf16.xpose.msra.mxu1 %v11491_v49  ;;  %8777 = vmatprep.mubr.f32.mxu1 %v11626_v12  ;;  %v13132_v49 = vld [vmem:[#allocation32_spill] sm:$0xff] }
 0x379   : > { %9579 = vmatprep.subr.bf16.mxu1 %v11498_v31  ;;  %v13156_v11 = vand.u32 4294901760, %v13132_v49 }
 0x37b   : > { %8778 = vmatmul.mubr.f32.gmra.mrb[10].mxu1 %v11641_v19 }
 0x37c   : > { %8780 = vmatprep.mubr.f32.mxu1 %v11647_v9 }
 0x37f   : > { %8781 = vmatmul.mubr.f32.gmra.mrb[12].mxu1 %v11662_v51 }
 0x380   : > { %9581 = vmatpush3.bf16.xpose.msra.mxu1 %v11498_v31  ;;  %8783 = vmatprep.mubr.f32.mxu1 %v11668_v4  ;;  %v13133_v31 = vld [vmem:[#allocation33_spill] sm:$0xff] }
 0x381   : > { %9583 = vmatprep.subr.bf16.mxu1 %v11502_v6 }
 0x383   : > { %8784 = vmatmul.mubr.f32.gmra.mrb[14].mxu1 %v11678_v60 }
 0x384   : > { %8818 = vmatprep.mubr.f32.mxu1 %v11298_v2 }
 0x388   : > { %9585 = vmatpush3.bf16.xpose.msra.mxu1 %v11502_v6  ;;  %v13134_v6 = vld [vmem:[#allocation34_spill] sm:$0xff] }
 0x389   : > { %9587 = vmatprep.subr.bf16.mxu1 %v11506_v46 }
 0x390   : > { %9589 = vmatpush3.bf16.xpose.msra.mxu1 %v11506_v46  ;;  %v13135_v46 = vld [vmem:[#allocation15_spill] sm:$0xff] }
 0x391   : > { %9591 = vmatprep.subr.bf16.mxu1 %v11508_v55 }
 0x398   : > { %9593 = vmatpush3.bf16.xpose.msra.mxu1 %v11508_v55  ;;  %v13136_v55 = vld [vmem:[#allocation35_spill] sm:$0xff] }
 0x399   : > { %9595 = vmatprep.subr.bf16.mxu1 %v11510_v40 }
 0x3a0   : > { %9597 = vmatpush3.bf16.xpose.msra.mxu1 %v11510_v40  ;;  %v13137_v40 = vand.u32 4294901760, %v11298_v2  ;;  %v13143_v2 = vand.u32 4294901760, %v11569_v39 }
 0x3a1   : > { %9599 = vmatprep.subr.bf16.mxu1 %v11318_v25 }
 0x3a7   : > { %8819 = vmatmul.mubr.f32.vlgmr.msra.gmra.mrb[0].mxu1 %v11561_v38  ;;  %v13148_v38 = vand.u32 4294901760, %v11592_v53 }
 0x3a8   : > { %9601 = vmatpush3.bf16.xpose.msra.mxu1 %v11318_v25  ;;  %8821 = vmatprep.mubr.f32.mxu1 %v11569_v39  ;;  %v13150_v39 = vand.u32 4294901760, %v11613_v24 }
 0x3a9   : > { %9603 = vmatprep.subr.bf16.mxu1 %v11334_v13 }
 0x3ab   : > { %8822 = vmatmul.mubr.f32.gmra.mrb[2].mxu1 %v11580_v50  ;;  %v13152_v50 = vand.u32 4294901760, %v11639_v32 }
 0x3ac   : > { %8824 = vmatprep.mubr.f32.mxu1 %v11585_v56  ;;  %v13153_v56 = vand.u32 4294901760, %v11645_v0 }
 0x3af   : > { %8825 = vmatmul.mubr.f32.gmra.mrb[4].mxu1 %v11589_v44  ;;  %v13154_v44 = vld [vmem:[#allocation26_spill] sm:$0xff] }
 0x3b0   : > { %9605 = vmatpush3.bf16.xpose.msra.mxu1 %v11334_v13  ;;  %8827 = vmatprep.mubr.f32.mxu1 %v11592_v53  ;;  %v13155_v53 = vand.u32 4294901760, %v13131_v35 }
 0x3b1   : > { %9607 = vmatprep.subr.bf16.mxu1 %v11353_v8 }
 0x3b3   : > { %8828 = vmatmul.mubr.f32.gmra.mrb[6].mxu1 %v11613_v24  ;;  %v13157_v24 = vand.u32 4294901760, %v13133_v31 }
 0x3b4   : > { %8830 = vmatprep.mubr.f32.mxu1 %v11619_v58  ;;  %v13158_v58 = vand.u32 4294901760, %v13134_v6 }
 0x3b7   : > { %8831 = vmatmul.mubr.f32.gmra.mrb[8].mxu1 %v11639_v32  ;;  %v13159_v32 = vld [vmem:[#allocation27_spill] sm:$0xff] }
 0x3b8   : > { %9609 = vmatpush3.bf16.xpose.msra.mxu1 %v11353_v8  ;;  %8833 = vmatprep.mubr.f32.mxu1 %v11645_v0  ;;  %v13160_v0 = vand.u32 4294901760, %v13136_v55 }
 0x3b9   : > { %9611 = vmatprep.subr.bf16.mxu1 %v13130_v52 }
 0x3bb   : > { %8834 = vmatmul.mubr.f32.gmra.mrb[10].mxu1 %v13131_v35  ;;  %v13164_v35 = vld [vmem:[#allocation30_spill] sm:$0xff] }
 0x3bc   : > { %8836 = vmatprep.mubr.f32.mxu1 %v13132_v49  ;;  %v13167_v49 = vld [vmem:[#allocation39_spill] sm:$0xff] }
 0x3bf   : > { %8837 = vmatmul.mubr.f32.gmra.mrb[12].mxu1 %v13133_v31  ;;  %v13168_v31 = vld [vmem:[#allocation17_spill] sm:$0xff] }
 0x3c0   : > { %9613 = vmatpush3.bf16.xpose.msra.mxu1 %v13130_v52  ;;  %8839 = vmatprep.mubr.f32.mxu1 %v13134_v6  ;;  %v2956_v6 = vmul.f32 %v13168_v31, %v13167_v49 }
 0x3c1   : > { %9615 = vmatprep.subr.bf16.mxu1 %v13135_v46 }
 0x3c3   : > { %8840 = vmatmul.mubr.f32.gmra.mrb[14].mxu1 %v13136_v55  ;;  %v13170_v55 = vld [vmem:[#allocation20_spill] sm:$0xff] }
 0x3c4   : > { %8874 = vmatprep.mubr.f32.mxu1 %v13137_v40 }
 0x3c8   : > { %9617 = vmatpush3.bf16.xpose.msra.mxu1 %v13135_v46 }
 0x3c9   : > { %9619 = vmatprep.subr.bf16.mxu1 %v13138_v27 }
 0x3d0   : > { %9621 = vmatpush3.bf16.xpose.msra.mxu1 %v13138_v27 }
 0x3d1   : > { %9623 = vmatprep.subr.bf16.mxu1 %v13139_v57 }
 0x3d8   : > { %9625 = vmatpush3.bf16.xpose.msra.mxu1 %v13139_v57 }
 0x3d9   : > { %9627 = vmatprep.subr.bf16.mxu1 %v13140_v42 }
 0x3e0   : > { %9629 = vmatpush3.bf16.xpose.msra.mxu1 %v13140_v42 }
 0x3e1   : > { %9631 = vmatprep.subr.bf16.mxu1 %v13141_v34 }
 0x3e7   : > { %8875 = vmatmul.mubr.f32.vlgmr.msra.gmra.mrb[0].mxu1 %v13142_v61  ;;  %v13174_v61 = vld [vmem:[#allocation13_spill] sm:$0xff] }
 0x3e8   : > { %9633 = vmatpush3.bf16.xpose.msra.mxu1 %v13141_v34  ;;  %8877 = vmatprep.mubr.f32.mxu1 %v13143_v2  ;;  %v13173_v34 = vld [vmem:[#allocation38_spill] sm:$0xff] }
 0x3e9   : > { %9635 = vmatprep.subr.bf16.mxu1 %v13144_v43  ;;  %v2955_v2 = vmul.f32 %v13174_v61, %v13173_v34 }
 0x3eb   : > { %8878 = vmatmul.mubr.f32.gmra.mrb[2].mxu1 %v13145_v15  ;;  %v13176_v15 = vld [vmem:[#allocation16_spill] sm:$0xff] }
 0x3ec   : > { %8880 = vmatprep.mubr.f32.mxu1 %v13146_v1 }
 0x3ef   : > { %8881 = vmatmul.mubr.f32.gmra.mrb[4].mxu1 %v13147_v33  ;;  %v13177_v33 = vld [vmem:[#allocation42_spill] sm:$0xff] }
 0x3f0   : > { %9637 = vmatpush3.bf16.xpose.msra.mxu1 %v13144_v43  ;;  %8883 = vmatprep.mubr.f32.mxu1 %v13148_v38  ;;  %v13175_v43 = vld [vmem:[#allocation40_spill] sm:$0xff]  ;;  %v13178_v38 = vld [vmem:[#allocation19_spill] sm:$0xff] }
 0x3f1   : > { %9639 = vmatprep.subr.bf16.mxu1 %v13149_v41  ;;  %v2957_v1 = vmul.f32 %v13176_v15, %v13175_v43  ;;  %v12045_v43 = vld [vmem:[#allocation3 + $0x40] sm:$0xff] }
 0x3f3   : > { %8884 = vmatmul.mubr.f32.gmra.mrb[6].mxu1 %v13150_v39  ;;  %v4359_v39 = vld [vmem:[#allocation3 + $0x8] sm:$0xff] }
 0x3f4   : > { %8886 = vmatprep.mubr.f32.mxu1 %v13151_v30  ;;  %v12004_v30 = vpop.permute.xlu1 %4839 }
 0x3f7   : > { %8887 = vmatmul.mubr.f32.gmra.mrb[8].mxu1 %v13152_v50 }
 0x3f8   : > { %9641 = vmatpush3.bf16.xpose.msra.mxu1 %v13149_v41  ;;  %8889 = vmatprep.mubr.f32.mxu1 %v13153_v56  ;;  %v2959_v41 = vmul.f32 %v13178_v38, %v13177_v33 }
 0x3f9   : > { %9643 = vmatprep.subr.bf16.mxu1 %v13154_v44 }
 0x3fb   : > { %8890 = vmatmul.mubr.f32.gmra.mrb[10].mxu1 %v13155_v53  ;;  %v4358_v53 = vld [vmem:[#allocation3] sm:$0xff] }
 0x3fc   : > { %8892 = vmatprep.mubr.f32.mxu1 %v13156_v11 }
 0x3ff   : > { %8893 = vmatmul.mubr.f32.gmra.mrb[12].mxu1 %v13157_v24 }
 0x400   : > { %9645 = vmatpush3.bf16.xpose.msra.mxu1 %v13154_v44  ;;  %8895 = vmatprep.mubr.f32.mxu1 %v13158_v58  ;;  %v4361_v44 = vld [vmem:[#allocation3 + $0x18] sm:$0xff] }
 0x401   : > { %9647 = vmatprep.subr.bf16.mxu1 %v13159_v32 }
 0x403   : > { %8896 = vmatmul.mubr.f32.gmra.mrb[14].mxu1 %v13160_v0  ;;  %v12007_v0 = vld [vmem:[#allocation3 + $0x28] sm:$0xff] }
 0x404   : > { %8930 = vmatprep.mubr.f32.mxu1 %v13161_v62 }
 0x408   : > { %9649 = vmatpush3.bf16.xpose.msra.mxu1 %v13159_v32 }
 0x409   : > { %9651 = vmatprep.subr.bf16.mxu1 %v13162_v17 }
 0x410   : > { %9653 = vmatpush3.bf16.xpose.msra.mxu1 %v13162_v17 }
 0x411   : > { %9655 = vmatprep.subr.bf16.mxu1 %v13163_v3 }
 0x418   : > { %9657 = vmatpush3.bf16.xpose.msra.mxu1 %v13163_v3 }
 0x419   : > { %9659 = vmatprep.subr.bf16.mxu1 %v13164_v35 }
 0x420   : > { %9661 = vmatpush3.bf16.xpose.msra.mxu1 %v13164_v35 }
 0x421   : > { %9663 = vmatprep.subr.bf16.mxu1 %v11318_v25 }
 0x427   : > { %8931 = vmatmul.mubr.f32.vlgmr.msra.gmra.mrb[0].mxu1 %v11554_v48 }
 0x428   : > { %9665 = vmatpush3.bf16.xpose.msra.mxu1 %v11318_v25  ;;  %8933 = vmatprep.mubr.f32.mxu1 %v11556_v14 }
 0x429   : > { %9667 = vmatprep.subr.bf16.mxu1 %v11334_v13 }
 0x42b   : > { %8934 = vmatmul.mubr.f32.gmra.mrb[2].mxu1 %v11563_v10 }
 0x42c   : > { %8936 = vmatprep.mubr.f32.mxu1 %v11571_v28 }
 0x42f   : > { %8937 = vmatmul.mubr.f32.gmra.mrb[4].mxu1 %v11574_v7 }
 0x430   : > { %9669 = vmatpush3.bf16.xpose.msra.mxu1 %v11334_v13  ;;  %8939 = vmatprep.mubr.f32.mxu1 %v11576_v20 }
 0x431   : > { %9671 = vmatprep.subr.bf16.mxu1 %v11353_v8 }
 0x433   : > { %8940 = vmatmul.mubr.f32.gmra.mrb[6].mxu1 %v11594_v37 }
 0x434   : > { %8942 = vmatprep.mubr.f32.mxu1 %v11600_v5 }
 0x437   : > { %8943 = vmatmul.mubr.f32.gmra.mrb[8].mxu1 %v11621_v45 }
 0x438   : > { %9673 = vmatpush3.bf16.xpose.msra.mxu1 %v11353_v8  ;;  %8945 = vmatprep.mubr.f32.mxu1 %v11626_v12 }
 0x439   : > { %9675 = vmatprep.subr.bf16.mxu1 %v13130_v52 }
 0x43b   : > { %8946 = vmatmul.mubr.f32.gmra.mrb[10].mxu1 %v11641_v19 }
 0x43c   : > { %8948 = vmatprep.mubr.f32.mxu1 %v11647_v9 }
 0x43f   : > { %8949 = vmatmul.mubr.f32.gmra.mrb[12].mxu1 %v11662_v51 }
 0x440   : > { %9677 = vmatpush3.bf16.xpose.msra.mxu1 %v13130_v52  ;;  %8951 = vmatprep.mubr.f32.mxu1 %v11668_v4 }
 0x441   : > { %9679 = vmatprep.subr.bf16.mxu1 %v13135_v46 }
 0x443   : > { %8952 = vmatmul.mubr.f32.gmra.mrb[14].mxu1 %v11678_v60 }
 0x444   : > { %8986 = vmatprep.mubr.f32.mxu1 %v13161_v62  ;;  %v12009_v62 = vld [vmem:[#allocation3 + $0x10] sm:$0xff] }
 0x448   : > { %9681 = vmatpush3.bf16.xpose.msra.mxu1 %v13135_v46  ;;  %v13169_v46 = vld [vmem:[#allocation41_spill] sm:$0xff] }
 0x449   : > { %9683 = vmatprep.subr.bf16.mxu1 %v13138_v27  ;;  %v2958_v40 = vmul.f32 %v13170_v55, %v13169_v46  ;;  %v12029_v55 = vld [vmem:[#allocation3 + $0x48] sm:$0xff] }
 0x450   : > { %9685 = vmatpush3.bf16.xpose.msra.mxu1 %v13138_v27  ;;  %v13171_v27 = vld [vmem:[#allocation36_spill] sm:$0xff] }
 0x451   : > { %9687 = vmatprep.subr.bf16.mxu1 %v13139_v57 }
 0x458   : > { %9689 = vmatpush3.bf16.xpose.msra.mxu1 %v13139_v57  ;;  %v13172_v57 = vld [vmem:[#allocation11_spill] sm:$0xff] }
 0x459   : > { %9691 = vmatprep.subr.bf16.mxu1 %v13140_v42 }
 0x460   : > { %9693 = vmatpush3.bf16.xpose.msra.mxu1 %v13140_v42  ;;  %v2953_v42 = vmul.f32 %v13172_v57, %v13171_v27 }
 0x467   : > { %8987 = vmatmul.mubr.f32.vlgmr.msra.gmra.mrb[0].mxu1 %v11554_v48 }
 0x468   : > { %8989 = vmatprep.mubr.f32.mxu1 %v11556_v14 }
 0x46b   : > { %8990 = vmatmul.mubr.f32.gmra.mrb[2].mxu1 %v11563_v10 }
 0x46c   : > { %8992 = vmatprep.mubr.f32.mxu1 %v11571_v28 }
 0x46f   : > { %8993 = vmatmul.mubr.f32.gmra.mrb[4].mxu1 %v11574_v7 }
 0x470   : > { %8995 = vmatprep.mubr.f32.mxu1 %v11576_v20 }
 0x473   : > { %8996 = vmatmul.mubr.f32.gmra.mrb[6].mxu1 %v11594_v37 }
 0x474   : > { %8998 = vmatprep.mubr.f32.mxu1 %v11600_v5 }
 0x477   : > { %8999 = vmatmul.mubr.f32.gmra.mrb[8].mxu1 %v11621_v45 }
 0x478   : > { %9001 = vmatprep.mubr.f32.mxu1 %v11626_v12 }
 0x47b   : > { %9002 = vmatmul.mubr.f32.gmra.mrb[10].mxu1 %v11641_v19 }
 0x47c   : > { %9004 = vmatprep.mubr.f32.mxu1 %v11647_v9 }
 0x47f   : > { %9005 = vmatmul.mubr.f32.gmra.mrb[12].mxu1 %v11662_v51 }
 0x480   : > { %9007 = vmatprep.mubr.f32.mxu1 %v11668_v4  ;;  %v13165_v4 = vld [vmem:[#allocation37_spill] sm:$0xff] }
 0x483   : > { %9008 = vmatmul.mubr.f32.gmra.mrb[14].mxu1 %v11678_v60  ;;  %v13166_v60 = vld [vmem:[#allocation14_spill] sm:$0xff] }
 0x484   : > { %v2954_v52 = vmul.f32 %v13166_v60, %v13165_v4  ;;  %v12017_v60 = vld [vmem:[#allocation3 + $0x38] sm:$0xff] }
 0x53a   : > { %v11935_v25 = vpop.f32.mrb[0].mxu1 }
 0x53b   : > { %v11937_v13 = vpop.f32.mrb[1].mxu1  ;;  %4376 = vmax.xlane.f32.xlu0 %v11935_v25 }
 0x53e   : > { %v11940_v8 = vpop.f32.mrb[2].mxu1 }
 0x53f   : > { %4380 = vmax.xlane.f32.xlu1 %v11940_v8  ;;  %v11943_v45 = vpop.f32.mrb[3].mxu1  ;;  %4374 = vmax.xlane.f32.xlu0 %v11937_v13 }
 0x542   : > { %v11946_v48 = vpop.f32.mrb[4].mxu1 }
 0x543   : > { %4384 = vmax.xlane.f32.xlu1 %v11946_v48  ;;  %v11949_v51 = vpop.f32.mrb[5].mxu1  ;;  %4378 = vmax.xlane.f32.xlu0 %v11943_v45 }
 0x546   : > { %v11952_v14 = vpop.f32.mrb[6].mxu1 }
 0x547   : > { %4388 = vmax.xlane.f32.xlu1 %v11952_v14  ;;  %v11955_v10 = vpop.f32.mrb[7].mxu1  ;;  %4382 = vmax.xlane.f32.xlu0 %v11949_v51 }
 0x54a   : > { %v11958_v28 = vpop.f32.mrb[8].mxu1 }
 0x54b   : > { %4392 = vmax.xlane.f32.xlu1 %v11958_v28  ;;  %v11961_v7 = vpop.f32.mrb[9].mxu1  ;;  %4386 = vmax.xlane.f32.xlu0 %v11955_v10 }
 0x54e   : > { %v11964_v20 = vpop.f32.mrb[10].mxu1 }
 0x54f   : > { %4396 = vmax.xlane.f32.xlu1 %v11964_v20  ;;  %v11967_v37 = vpop.f32.mrb[11].mxu1  ;;  %4390 = vmax.xlane.f32.xlu0 %v11961_v7 }
 0x552   : > { %v11970_v12 = vpop.f32.mrb[12].mxu1 }
 0x553   : > { %4400 = vmax.xlane.f32.xlu1 %v11970_v12  ;;  %v11973_v5 = vpop.f32.mrb[13].mxu1  ;;  %4394 = vmax.xlane.f32.xlu0 %v11967_v37 }
 0x556   : > { %v11976_v19 = vpop.f32.mrb[14].mxu1 }
 0x557   : > { %4404 = vmax.xlane.f32.xlu1 %v11976_v19  ;;  %v11979_v9 = vpop.f32.mrb[15].mxu1  ;;  %4398 = vmax.xlane.f32.xlu0 %v11973_v5 }
 0x55b   : > { %4402 = vmax.xlane.f32.xlu0 %v11979_v9 }
 0x568   : > { %4843 = vrot.lane.b32.xlu1 %v2954_v52, %s10554_s23  ;;  %v12019_v52 = vld [vmem:[#allocation3 + $0x20] sm:$0xff] }
 0x56c   : > { %4847 = vrot.lane.b32.xlu1 %v2956_v6, %s10554_s23 }
 0x570   : > { %4851 = vrot.lane.b32.xlu1 %v2958_v40, %s10554_s23  ;;  %v12031_v40 = vld [vmem:[#allocation3 + $0x30] sm:$0xff] }
 0x571   : > { %4841 = vrot.lane.b32.xlu0 %v2953_v42, %s10554_s23 }
 0x575   : > { %4845 = vrot.lane.b32.xlu0 %v2955_v2, %s10554_s23  ;;  %v12043_v2 = vld [vmem:[#allocation3 + $0x58] sm:$0xff] }
 0x579   : > { %4849 = vrot.lane.b32.xlu0 %v2957_v1, %s10554_s23 }
 0x57d   : > { %4853 = vrot.lane.b32.xlu0 %v2959_v41, %s10554_s23 }
 0x5c8   : > { %v4377_v50 = vpop.xlane.xlu0 %4376 }
 0x5c9   : > { %v4407_v56 = vmax.f32 %v4359_v39, %v4377_v50 }
 0x5cb   : > { %6190 = vst.msk [vmem:[#allocation3 + $0x8] sm:$0xff] %vm4678_vm3, %v4407_v56  ;;  %4477 = vperm.xlu0 %10396, %v4407_v56   ;;  %v4423_v15 = vsub.f32 %v4359_v39, %v4407_v56  ;;  %v12059_v39 = vld [vmem:[#allocation3 + $0x68] sm:$0xff]  ;;  %v12061_v56 = vld [vmem:[#allocation3 + $0x50] sm:$0xff] }
 0x5cc   : > { %v4381_v11 = vpop.xlane.xlu1 %4380  ;;  %v4375_v24 = vpop.xlane.xlu0 %4374 }
 0x5cd   : > { %v4409_v58 = vmax.f32 %v4361_v44, %v4381_v11  ;;  %v4406_v32 = vmax.f32 %v4358_v53, %v4375_v24  ;;  %v4440_v11 = vmul.f32 1.442695, %v4423_v15  ;;  %v12097_v15 = vld [vmem:[#allocation3 + $0x70] sm:$0xff] }
 0x5cf   : > { %6192 = vst.msk [vmem:[#allocation3 + $0x18] sm:$0xff] %vm4678_vm3, %v4409_v58  ;;  %6189 = vst.msk [vmem:[#allocation3] sm:$0xff] %vm4678_vm3, %v4406_v32  ;;  %4487 = vperm.xlu0 %10396, %v4409_v58   ;;  %4472 = vperm.xlu1 %10395, %v4406_v32   ;;  %v4422_v27 = vsub.f32 %v4358_v53, %v4406_v32  ;;  %v4425_v1 = vsub.f32 %v4361_v44, %v4409_v58 }
 0x5d0   : > { %v4385_v17 = vpop.xlane.xlu1 %4384  ;;  %v4379_v3 = vpop.xlane.xlu0 %4378 }
 0x5d1   : > { %v4411_v35 = vmax.f32 %v12007_v0, %v4385_v17  ;;  %v12015_v4 = vmax.f32 %v12009_v62, %v4379_v3  ;;  %v4438_v33 = vmul.f32 1.442695, %v4422_v27  ;;  %v4444_v44 = vmul.f32 1.442695, %v4425_v1  ;;  %v12080_v27 = vld [vmem:[#allocation3 + $0x60] sm:$0xff] }
 0x5d3   : > { %6194 = vst.msk [vmem:[#allocation3 + $0x28] sm:$0xff] %vm4678_vm3, %v4411_v35  ;;  %6191 = vst.msk [vmem:[#allocation3 + $0x10] sm:$0xff] %vm4678_vm3, %v12015_v4  ;;  %4497 = vperm.xlu0 %10396, %v4411_v35   ;;  %4482 = vperm.xlu1 %10395, %v12015_v4   ;;  %10397 = vpow2.f32 %v4438_v33  ;;  %v4427_v24 = vsub.f32 %v12007_v0, %v4411_v35  ;;  %v4424_v17 = vsub.f32 %v12009_v62, %v12015_v4 }
 0x5d4   : > { %v4389_v49 = vpop.xlane.xlu1 %4388  ;;  %v4383_v31 = vpop.xlane.xlu0 %4382  ;;  %10399 = vpow2.f32 %v4440_v11 }
 0x5d5   : > { %v4413_v6 = vmax.f32 %v12017_v60, %v4389_v49  ;;  %v12027_v46 = vmax.f32 %v12019_v52, %v4383_v31  ;;  %v12078_v31 = vld [vmem:[#allocation3 + $0x78] sm:$0xff]  ;;  %10401 = vpow2.f32 %v4444_v44  ;;  %v4448_v0 = vmul.f32 1.442695, %v4427_v24 }
 0x5d7   : > { %6196 = vst.msk [vmem:[#allocation3 + $0x38] sm:$0xff] %vm4678_vm3, %v4413_v6  ;;  %6193 = vst.msk [vmem:[#allocation3 + $0x20] sm:$0xff] %vm4678_vm3, %v12027_v46  ;;  %4507 = vperm.xlu0 %10396, %v4413_v6   ;;  %4492 = vperm.xlu1 %10395, %v12027_v46   ;;  %v4426_v62 = vsub.f32 %v12019_v52, %v12027_v46  ;;  %10403 = vpow2.f32 %v4448_v0 }
 0x5d8   : > { %v4393_v57 = vpop.xlane.xlu1 %4392  ;;  %v4387_v42 = vpop.xlane.xlu0 %4386 }
 0x5d9   : > { %v12038_v34 = vmax.f32 %v12029_v55, %v4393_v57  ;;  %v12041_v61 = vmax.f32 %v12031_v40, %v4387_v42  ;;  %v4429_v57 = vsub.f32 %v12017_v60, %v4413_v6  ;;  %v4442_v42 = vmul.f32 1.442695, %v4424_v17 }
 0x5da   : > { %v4446_v52 = vmul.f32 1.442695, %v4426_v62 }
 0x5db   : > { %6198 = vst.msk [vmem:[#allocation3 + $0x48] sm:$0xff] %vm4678_vm3, %v12038_v34  ;;  %6195 = vst.msk [vmem:[#allocation3 + $0x30] sm:$0xff] %vm4678_vm3, %v12041_v61  ;;  %4517 = vperm.xlu0 %10396, %v12038_v34   ;;  %4502 = vperm.xlu1 %10395, %v12041_v61   ;;  %v4452_v1 = vmul.f32 1.442695, %v4429_v57  ;;  %v4431_v46 = vsub.f32 %v12029_v55, %v12038_v34  ;;  %10405 = vpow2.f32 %v4442_v42  ;;  %v13034_v55 = vand.u32 4294901760, %v12004_v30 }
 0x5dc   : > { %v4397_v38 = vpop.xlane.xlu1 %4396  ;;  %v4391_v41 = vpop.xlane.xlu0 %4390  ;;  %v4428_v11 = vsub.f32 %v12031_v40, %v12041_v61 }
 0x5dd   : > { %v12054_v50 = vmax.f32 %v12043_v2, %v4397_v38  ;;  %v12057_v53 = vmax.f32 %v12045_v43, %v4391_v41  ;;  %10407 = vpow2.f32 %v4452_v1  ;;  %v4456_v40 = vmul.f32 1.442695, %v4431_v46 }
 0x5de   : > { %10409 = vpow2.f32 %v4446_v52  ;;  %v4450_v62 = vmul.f32 1.442695, %v4428_v11 }
 0x5df   : > { %6200 = vst.msk [vmem:[#allocation3 + $0x58] sm:$0xff] %vm4678_vm3, %v12054_v50  ;;  %6197 = vst.msk [vmem:[#allocation3 + $0x40] sm:$0xff] %vm4678_vm3, %v12057_v53  ;;  %4527 = vperm.xlu0 %10396, %v12054_v50   ;;  %4512 = vperm.xlu1 %10395, %v12057_v53   ;;  %v4433_v34 = vsub.f32 %v12043_v2, %v12054_v50  ;;  %10411 = vpow2.f32 %v4456_v40 }
 0x5e0   : > { %v4401_v58 = vpop.xlane.xlu1 %4400  ;;  %v4395_v32 = vpop.xlane.xlu0 %4394  ;;  %10413 = vpow2.f32 %v4450_v62 }
 0x5e1   : > { %v12073_v3 = vmax.f32 %v12059_v39, %v4401_v58  ;;  %v12076_v49 = vmax.f32 %v12061_v56, %v4395_v32  ;;  %v12114_v58 = vpop.eup %10397 }
 0x5e2   : > { %13179 = vst [vmem:[#allocation12_spill] sm:$0xff] %v12114_v58  ;;  %v12127_v0 = vpop.eup %10399 }
 0x5e3   : > { %6202 = vst.msk [vmem:[#allocation3 + $0x68] sm:$0xff] %vm4678_vm3, %v12073_v3  ;;  %6199 = vst.msk [vmem:[#allocation3 + $0x50] sm:$0xff] %vm4678_vm3, %v12076_v49  ;;  %4537 = vperm.xlu0 %10396, %v12073_v3   ;;  %4522 = vperm.xlu1 %10395, %v12076_v49   ;;  %v12131_v1 = vpop.eup %10401  ;;  %v4432_v52 = vsub.f32 %v12061_v56, %v12076_v49 }
 0x5e4   : > { %v4405_v35 = vpop.xlane.xlu1 %4404  ;;  %v4399_v4 = vpop.xlane.xlu0 %4398  ;;  %13180 = vst [vmem:[#allocation31_spill] sm:$0xff] %v12127_v0  ;;  %13181 = vst [vmem:[#allocation32_spill] sm:$0xff] %v12131_v1 }
 0x5e5   : > { %v12092_v60 = vmax.f32 %v12078_v31, %v4405_v35  ;;  %v12095_v6 = vmax.f32 %v12080_v27, %v4399_v4  ;;  %v4430_v35 = vsub.f32 %v12045_v43, %v12057_v53  ;;  %v4460_v43 = vmul.f32 1.442695, %v4433_v34  ;;  %v12149_v11 = vpop.eup %10403 }
 0x5e6   : > { %13182 = vst [vmem:[#allocation33_spill] sm:$0xff] %v12149_v11  ;;  %v12152_v33 = vpop.eup %10405  ;;  %v4458_v40 = vmul.f32 1.442695, %v4432_v52 }
 0x5e7   : > { %6204 = vst.msk [vmem:[#allocation3 + $0x78] sm:$0xff] %vm4678_vm3, %v12092_v60  ;;  %6201 = vst.msk [vmem:[#allocation3 + $0x60] sm:$0xff] %vm4678_vm3, %v12095_v6  ;;  %4547 = vperm.xlu0 %10396, %v12092_v60   ;;  %4532 = vperm.xlu1 %10395, %v12095_v6   ;;  %v4454_v56 = vmul.f32 1.442695, %v4430_v35  ;;  %10415 = vpow2.f32 %v4460_v43  ;;  %v4434_v62 = vsub.f32 %v12080_v27, %v12095_v6  ;;  %v12162_v17 = vpop.eup %10407 }
 0x5e8   : > { %v4844_v38 = vpop.permute.xlu1 %4843  ;;  %v4403_v41 = vpop.xlane.xlu0 %4402  ;;  %13183 = vst [vmem:[#allocation34_spill] sm:$0xff] %v12152_v33  ;;  %13184 = vst [vmem:[#allocation15_spill] sm:$0xff] %v12162_v17 }
 0x5e9   : > { %v4902_v44 = vand.u32 4294901760, %v4844_v38  ;;  %v12112_v24 = vmax.f32 %v12097_v15, %v4403_v41  ;;  %10417 = vpow2.f32 %v4454_v56 }
 0x5eb   : > { %v12116_v32 = vsub.f32 %v4844_v38, %v4902_v44  ;;  %6203 = vst.msk [vmem:[#allocation3 + $0x70] sm:$0xff] %vm4678_vm3, %v12112_v24  ;;  %4713 = vperm.xlu0 %10396, %v12114_v58   ;;  %4542 = vperm.xlu1 %10395, %v12112_v24   ;;  %v4435_v38 = vsub.f32 %v12059_v39, %v12073_v3 }
 0x5ec   : > { %v4848_v61 = vpop.permute.xlu1 %4847  ;;  %v4842_v57 = vpop.permute.xlu0 %4841  ;;  %v13200_v29 = vsub.f32 %v12097_v15, %v12112_v24 }
 0x5ed   : > { %v4908_v4 = vand.u32 4294901760, %v4848_v61  ;;  %v4899_v42 = vand.u32 4294901760, %v4842_v57  ;;  %v5185_v50 = vand.u32 4294901760, %v12116_v32 }
 0x5ef   : > { %v12137_v46 = vsub.f32 %v4848_v61, %v4908_v4  ;;  %v12141_v2 = vpack.c.bf16 %v4899_v42, %v13034_v55  ;;  %4728 = vperm.xlu0 %10396, %v12131_v1   ;;  %4718 = vperm.xlu1 %10395, %v12127_v0   ;;  %v12146_v53 = vsub.f32 %v4842_v57, %v4899_v42  ;;  %v4464_v61 = vmul.f32 1.442695, %v4435_v38 }
 0x5f0   : > { %v4852_v39 = vpop.permute.xlu1 %4851  ;;  %v4846_v3 = vpop.permute.xlu0 %4845  ;;  %v5186_v35 = vsub.f32 %v12116_v32, %v5185_v50 }
 0x5f1   : > { %v4914_v49 = vand.u32 4294901760, %v4852_v39  ;;  %v4905_v41 = vand.u32 4294901760, %v4846_v3  ;;  %9711 = vmatprep.subr.bf16.mxu0 %v12141_v2  ;;  %v5199_v42 = vand.u32 4294901760, %v12137_v46  ;;  %10419 = vpow2.f32 %v4464_v61 }
 0x5f2   : > { %9713 = vmatpush3.bf16.msra.mxu0 %v12141_v2  ;;  %10421 = vpow2.f32 %v4458_v40 }
 0x5f3   : > { %v12154_v34 = vpack.c.bf16 %v4905_v41, %v4902_v44  ;;  %v5191_v57 = vsub.f32 %v4846_v3, %v4905_v41  ;;  %4738 = vperm.xlu0 %10396, %v12149_v11   ;;  %4723 = vperm.xlu1 %10395, %v12152_v33   ;;  %v5212_v52 = vsub.f32 %v4852_v39, %v4914_v49  ;;  %v12165_v3 = vpop.eup %10409  ;;  %v4462_v39 = vmul.f32 1.442695, %v4434_v62 }
 0x5f4   : > { %v4850_v38 = vpop.permute.xlu0 %4849  ;;  %13185 = vst [vmem:[#allocation35_spill] sm:$0xff] %v12165_v3  ;;  %v5200_v56 = vsub.f32 %v12137_v46, %v5199_v42  ;;  %v5187_v33 = vand.u32 4294901760, %v5186_v35 }
 0x5f5   : > { %v5192_v44 = vand.u32 4294901760, %v5191_v57  ;;  %v4911_v55 = vand.u32 4294901760, %v4850_v38  ;;  %9715 = vmatprep.subr.bf16.mxu0 %v12154_v34  ;;  %v12169_v27 = vpack.c.bf16 %v5191_v57, %v12116_v32  ;;  %v5213_v1 = vand.u32 4294901760, %v5212_v52 }
 0x5f6   : > { %9717 = vmatpush3.bf16.msra.mxu0 %v12154_v34  ;;  %10423 = vpow2.f32 %v4462_v39 }
 0x5f7   : > { %v5193_v6 = vsub.f32 %v5191_v57, %v5192_v44  ;;  %v12171_v43 = vpack.c.bf16 %v4911_v55, %v4908_v4  ;;  %v5205_v41 = vsub.f32 %v4850_v38, %v4911_v55  ;;  %4748 = vperm.xlu0 %10396, %v12162_v17   ;;  %4733 = vperm.xlu1 %10395, %v12165_v3   ;;  %v12179_v4 = vpop.eup %10411 }
 0x5f8   : > { %v4854_v11 = vpop.permute.xlu0 %4853  ;;  %v12176_v61 = vpack.c.bf16 %v5192_v44, %v5185_v50  ;;  %13187 = vst [vmem:[#allocation21_spill] sm:$0xff] %v12179_v4  ;;  %v12185_v57 = vpop.eup %10413  ;;  %v5201_v44 = vand.u32 4294901760, %v5200_v56  ;;  %v5214_v17 = vsub.f32 %v5212_v52, %v5213_v1 }
 0x5f9   : > { %v5206_v58 = vand.u32 4294901760, %v5205_v41  ;;  %v4917_v32 = vand.u32 4294901760, %v4854_v11  ;;  %9719 = vmatprep.subr.bf16.mxu0 %v12171_v43  ;;  %v5194_v40 = vand.u32 4294901760, %v5193_v6  ;;  %v12183_v55 = vpack.c.bf16 %v5205_v41, %v12137_v46  ;;  %13188 = vst [vmem:[#allocation22_spill] sm:$0xff] %v12185_v57 }
 0x5fa   : > { %13186 = vst [vmem:[#allocation18_spill] sm:$0xff] %v12176_v61  ;;  %9721 = vmatpush3.bf16.msra.mxu0 %v12171_v43  ;;  %v5215_v39 = vand.u32 4294901760, %v5214_v17 }
 0x5fb   : > { %v5207_v62 = vsub.f32 %v5205_v41, %v5206_v58  ;;  %v12187_v38 = vpack.c.bf16 %v4917_v32, %v4914_v49  ;;  %v5219_v50 = vsub.f32 %v4854_v11, %v4917_v32  ;;  %4758 = vperm.xlu0 %10396, %v12179_v4   ;;  %v12190_v35 = vpack.c.bf16 %v5194_v40, %v5187_v33  ;;  %v12198_v49 = vpop.eup %10415 }
 0x5fc   : > { %4743 = vperm.xlu1 %10395, %v12185_v57   ;;  %v12193_v6 = vpack.c.bf16 %v5206_v58, %v5199_v42  ;;  %13191 = vst [vmem:[#allocation25_spill] sm:$0xff] %v12198_v49  ;;  %v12201_v11 = vpop.eup %10417 }
 0x5fd   : > { %13189 = vst [vmem:[#allocation23_spill] sm:$0xff] %v12187_v38  ;;  %v5220_v3 = vand.u32 4294901760, %v5219_v50  ;;  %9723 = vmatprep.subr.bf16.mxu0 %v12187_v38  ;;  %v5208_v46 = vand.u32 4294901760, %v5207_v62  ;;  %v12196_v0 = vpack.c.bf16 %v5219_v50, %v5212_v52  ;;  %13192 = vst [vmem:[#allocation26_spill] sm:$0xff] %v12201_v11  ;;  %v12209_v41 = vpop.eup %10419 }
 0x5fe   : > { %13190 = vst [vmem:[#allocation24_spill] sm:$0xff] %v12193_v6  ;;  %9725 = vmatpush3.bf16.msra.mxu0 %v12187_v38  ;;  %13194 = vst [vmem:[#allocation10_spill] sm:$0xff] %v12209_v41  ;;  %v12212_v52 = vpop.eup %10421  ;;  %v4466_v38 = vmul.f32 1.442695, %v13200_v29  ;;  %v13201_v29 = vsub.f32 %v12078_v31, %v12092_v60  ;;  %v13203_v60 = vld [vmem:[#allocation46_spill] sm:$0xff] }
 0x5ff   : > { %v5221_v33 = vsub.f32 %v5219_v50, %v5220_v3  ;;  %4768 = vperm.xlu0 %10396, %v12198_v49   ;;  %9727 = vmatprep.subr.bf16.mxu0 %v11753_v36  ;;  %v12205_v58 = vpack.c.bf16 %v5208_v46, %v5201_v44  ;;  %v12207_v42 = vpack.c.bf16 %v5220_v3, %v5213_v1 }
 0x600   : > { %4753 = vperm.xlu1 %10395, %v12201_v11   ;;  %13195 = vst [vmem:[#allocation28_spill] sm:$0xff] %v12212_v52  ;;  %v12218_v40 = vpop.eup %10423  ;;  %v4468_v15 = vmul.f32 1.442695, %v13201_v29 }
 0x601   : > { %13193 = vst [vmem:[#allocation27_spill] sm:$0xff] %v12207_v42  ;;  %v5222_v56 = vand.u32 4294901760, %v5221_v33  ;;  %13196 = vst [vmem:[#allocation29_spill] sm:$0xff] %v12218_v40 }
 0x603   : > { %4778 = vperm.xlu0 %10396, %v12209_v41   ;;  %v12215_v32 = vpack.c.bf16 %v5222_v56, %v5215_v39 }
 0x604   : > { %4763 = vperm.xlu1 %10395, %v12212_v52  }
 0x608   : > { %4773 = vperm.xlu1 %10395, %v12218_v40  }
 0x64a   : > { %v4478_v1 = vpop.permute.xlu0 %4477 }
 0x64b   : > { %v4551_v3 = vsub.f32 %v11935_v25, %v4478_v1 }
 0x64d   : > { %v4568_v62 = vmul.f32 1.442695, %v4551_v3 }
 0x64e   : > { %v4473_v50 = vpop.permute.xlu1 %4472  ;;  %v4488_v44 = vpop.permute.xlu0 %4487 }
 0x64f   : > { %10425 = vpow2.f32 %v4568_v62  ;;  %v4550_v17 = vsub.f32 %v11937_v13, %v4473_v50  ;;  %v4553_v46 = vsub.f32 %v11940_v8, %v4488_v44 }
 0x651   : > { %v4566_v33 = vmul.f32 1.442695, %v4550_v17  ;;  %v4572_v39 = vmul.f32 1.442695, %v4553_v46 }
 0x652   : > { %v4483_v56 = vpop.permute.xlu1 %4482  ;;  %v4498_v41 = vpop.permute.xlu0 %4497 }
 0x653   : > { %10427 = vpow2.f32 %v4566_v33  ;;  %v4552_v49 = vsub.f32 %v11943_v45, %v4483_v56  ;;  %v4555_v40 = vsub.f32 %v11946_v48, %v4498_v41 }
 0x654   : > { %10429 = vpow2.f32 %v4572_v39 }
 0x655   : > { %v4570_v52 = vmul.f32 1.442695, %v4552_v49  ;;  %v4576_v25 = vmul.f32 1.442695, %v4555_v40 }
 0x656   : > { %v4493_v1 = vpop.permute.xlu1 %4492  ;;  %v4508_v3 = vpop.permute.xlu0 %4507 }
 0x657   : > { %10431 = vpow2.f32 %v4570_v52  ;;  %v4554_v62 = vsub.f32 %v11949_v51, %v4493_v1  ;;  %v4557_v13 = vsub.f32 %v11952_v14, %v4508_v3 }
 0x658   : > { %10433 = vpow2.f32 %v4576_v25 }
 0x659   : > { %v10426_v8 = vpop.eup %10425  ;;  %v4574_v50 = vmul.f32 1.442695, %v4554_v62  ;;  %v4580_v44 = vmul.f32 1.442695, %v4557_v13  ;;  %v13197_v13 = vand.u32 4294901760, %v12004_v30 }
 0x65a   : > { %v4503_v17 = vpop.permute.xlu1 %4502  ;;  %4632 = vadd.xlane.f32.xlu0 %v10426_v8  ;;  %v4518_v46 = vpop.permute.xlu0 %4517  ;;  %v12228_v45 = vand.u32 4294901760, %v10426_v8 }
 0x65b   : > { %10435 = vpow2.f32 %v4574_v50  ;;  %v4556_v48 = vsub.f32 %v11955_v10, %v4503_v17  ;;  %v4559_v49 = vsub.f32 %v11958_v28, %v4518_v46 }
 0x65c   : > { %10437 = vpow2.f32 %v4580_v44  ;;  %v12233_v41 = vsub.f32 %v10426_v8, %v12228_v45  ;;  %v12248_v8 = vsub.f32 %v12004_v30, %v13197_v13 }
 0x65d   : > { %v10428_v51 = vpop.eup %10427  ;;  %v4578_v14 = vmul.f32 1.442695, %v4556_v48  ;;  %v4584_v52 = vmul.f32 1.442695, %v4559_v49 }
 0x65e   : > { %v10430_v40 = vpop.eup %10429  ;;  %v4513_v33 = vpop.permute.xlu1 %4512  ;;  %4630 = vadd.xlane.f32.xlu1 %v10428_v51  ;;  %v12235_v56 = vand.u32 4294901760, %v10428_v51  ;;  %v13046_v25 = vand.u32 4294901760, %v12233_v41 }
 0x65f   : > { %v4528_v39 = vpop.permute.xlu0 %4527  ;;  %10439 = vpow2.f32 %v4578_v14  ;;  %v4558_v10 = vsub.f32 %v11961_v7, %v4513_v33  ;;  %v12240_v1 = vand.u32 4294901760, %v10430_v40 }
 0x660   : > { %v4561_v28 = vsub.f32 %v11964_v20, %v4528_v39  ;;  %10441 = vpow2.f32 %v4584_v52  ;;  %v12243_v3 = vsub.f32 %v10428_v51, %v12235_v56  ;;  %v4965_v49 = vsub.f32 %v12233_v41, %v13046_v25 }
 0x661   : > { %v10432_v62 = vpop.eup %10431  ;;  %v4582_v50 = vmul.f32 1.442695, %v4558_v10  ;;  %v12251_v17 = vsub.f32 %v10430_v40, %v12240_v1 }
 0x662   : > { %v4588_v44 = vmul.f32 1.442695, %v4561_v28  ;;  %v10434_v7 = vpop.eup %10433  ;;  %v4523_v46 = vpop.permute.xlu1 %4522  ;;  %4634 = vadd.xlane.f32.xlu0 %v10432_v62  ;;  %4636 = vadd.xlane.f32.xlu1 %v10430_v40  ;;  %v13047_v48 = vand.u32 4294901760, %v12243_v3  ;;  %v12257_v51 = vand.u32 4294901760, %v10432_v62  ;;  %v4966_v28 = vand.u32 4294901760, %v4965_v49 }
 0x663   : > { %v4538_v20 = vpop.permute.xlu0 %4537  ;;  %10443 = vpow2.f32 %v4582_v50  ;;  %v4560_v30 = vsub.f32 %v11967_v37, %v4523_v46  ;;  %v13048_v52 = vand.u32 4294901760, %v12251_v17  ;;  %v12268_v39 = vand.u32 4294901760, %v10434_v7 }
 0x664   : > { %v4563_v14 = vsub.f32 %v11970_v12, %v4538_v20  ;;  %10445 = vpow2.f32 %v4588_v44  ;;  %v4955_v40 = vsub.f32 %v12243_v3, %v13047_v48  ;;  %v12266_v33 = vsub.f32 %v10432_v62, %v12257_v51 }
 0x665   : > { %v10436_v10 = vpop.eup %10435  ;;  %v4586_v13 = vmul.f32 1.442695, %v4560_v30  ;;  %v4985_v37 = vsub.f32 %v12251_v17, %v13048_v52  ;;  %v12278_v48 = vsub.f32 %v10434_v7, %v12268_v39  ;;  %v13211_v29 = vand.u32 4294901760, %v12251_v17 }
 0x666   : > { %v4592_v50 = vmul.f32 1.442695, %v4563_v14  ;;  %v10438_v12 = vpop.eup %10437  ;;  %v4533_v44 = vpop.permute.xlu1 %4532  ;;  %4638 = vadd.xlane.f32.xlu0 %v10436_v10  ;;  %4640 = vadd.xlane.f32.xlu1 %v10434_v7  ;;  %v4956_v20 = vand.u32 4294901760, %v4955_v40  ;;  %v13055_v62 = vand.u32 4294901760, %v12266_v33  ;;  %v12275_v25 = vand.u32 4294901760, %v10436_v10 }
 0x667   : > { %v4548_v46 = vpop.permute.xlu0 %4547  ;;  %10447 = vpow2.f32 %v4586_v13  ;;  %v4562_v30 = vsub.f32 %v11973_v5, %v4533_v44  ;;  %v13052_v4 = vand.u32 4294901760, %v12278_v48  ;;  %v13054_v7 = vand.u32 4294901760, %v12146_v53 }
 0x668   : > { %v4565_v14 = vsub.f32 %v11976_v19, %v4548_v46  ;;  %10449 = vpow2.f32 %v4592_v50  ;;  %9042 = vmatprep.mubr.f32.mxu0 %v4956_v20  ;;  %v4975_v52 = vsub.f32 %v12266_v33, %v13055_v62  ;;  %v12286_v40 = vsub.f32 %v10436_v10, %v12275_v25 }
 0x669   : > { %v10440_v11 = vpop.eup %10439  ;;  %v4590_v13 = vmul.f32 1.442695, %v4562_v30  ;;  %9043 = vmatmul.mubr.f32.vlgmr.msra.gmra.mrb[16].mxu0 %v4966_v28  ;;  %v12290_v5 = vand.u32 4294901760, %v10438_v12  ;;  %v4986_v44 = vand.u32 4294901760, %v4985_v37  ;;  %v5005_v28 = vsub.f32 %v12278_v48, %v13052_v4 }
 0x66a   : > { %v4596_v57 = vmul.f32 1.442695, %v4565_v14  ;;  %v10442_v19 = vpop.eup %10441  ;;  %9729 = vmatpush3.bf16.msra.mxu0 %v11753_v36  ;;  %v4543_v49 = vpop.permute.xlu1 %4542  ;;  %4642 = vadd.xlane.f32.xlu0 %v10440_v11  ;;  %v4976_v50 = vand.u32 4294901760, %v4975_v52  ;;  %v13053_v10 = vand.u32 4294901760, %v12286_v40  ;;  %v12294_v46 = vand.u32 4294901760, %v10440_v11 }
 0x66b   : > { %10451 = vpow2.f32 %v4590_v13  ;;  %v4564_v20 = vsub.f32 %v11979_v9, %v4543_v49  ;;  %9731 = vmatprep.subr.bf16.mxu0 %v11767_v47  ;;  %4644 = vadd.xlane.f32.xlu1 %v10438_v12  ;;  %v12302_v36 = vsub.f32 %v10438_v12, %v12290_v5  ;;  %v5179_v30 = vsub.f32 %v12146_v53, %v13054_v7 }
 0x66c   : > { %10453 = vpow2.f32 %v4596_v57  ;;  %9045 = vmatprep.mubr.f32.mxu0 %v4976_v50  ;;  %v4995_v52 = vsub.f32 %v12286_v40, %v13053_v10  ;;  %v12308_v37 = vsub.f32 %v10440_v11, %v12294_v46  ;;  %v12314_v12 = vand.u32 4294901760, %v10442_v19 }
 0x66d   : > { %v10444_v9 = vpop.eup %10443  ;;  %v4594_v14 = vmul.f32 1.442695, %v4564_v20  ;;  %9046 = vmatmul.mubr.f32.gmra.mrb[18].mxu0 %v4986_v44  ;;  %v13056_v13 = vand.u32 4294901760, %v12302_v36  ;;  %v13198_v4 = vand.u32 4294901760, %v12248_v8  ;;  %v5006_v44 = vand.u32 4294901760, %v5005_v28 }
 0x66e   : > { %v10446_v57 = vpop.eup %10445  ;;  %9733 = vmatpush3.bf16.msra.mxu0 %v11767_v47  ;;  %4646 = vadd.xlane.f32.xlu0 %v10444_v9  ;;  %v4996_v49 = vand.u32 4294901760, %v4995_v52  ;;  %v13057_v50 = vand.u32 4294901760, %v12308_v37  ;;  %v12318_v11 = vand.u32 4294901760, %v10444_v9  ;;  %v12334_v7 = vsub.f32 %v10442_v19, %v12314_v12 }
 0x66f   : > { %v5172_v10 = vsub.f32 %v12248_v8, %v13198_v4  ;;  %10455 = vpow2.f32 %v4594_v14  ;;  %9735 = vmatprep.subr.bf16.mxu0 %v11777_v16  ;;  %4648 = vadd.xlane.f32.xlu1 %v10442_v19  ;;  %v5025_v20 = vsub.f32 %v12302_v36, %v13056_v13  ;;  %v12336_v4 = vand.u32 4294901760, %v10446_v57 }
 0x670   : > { %9048 = vmatprep.mubr.f32.mxu0 %v4996_v49  ;;  %v5015_v47 = vsub.f32 %v12308_v37, %v13057_v50  ;;  %v12331_v52 = vsub.f32 %v10444_v9, %v12318_v11  ;;  %v5180_v28 = vand.u32 4294901760, %v5179_v30  ;;  %v13064_v50 = vand.u32 4294901760, %v12334_v7 }
 0x671   : > { %v10448_v14 = vpop.eup %10447  ;;  %9049 = vmatmul.mubr.f32.gmra.mrb[20].mxu0 %v5006_v44  ;;  %v5026_v19 = vand.u32 4294901760, %v5025_v20  ;;  %v5173_v9 = vand.u32 4294901760, %v5172_v10  ;;  %v12345_v6 = vsub.f32 %v10446_v57, %v12336_v4  ;;  %10457 = vpow2.f32 %v4466_v38 }
 0x672   : > { %v10450_v62 = vpop.eup %10449  ;;  %9737 = vmatpush3.bf16.msra.mxu0 %v11777_v16  ;;  %4650 = vadd.xlane.f32.xlu0 %v10448_v14  ;;  %v5016_v49 = vand.u32 4294901760, %v5015_v47  ;;  %v13061_v13 = vand.u32 4294901760, %v12331_v52  ;;  %v12341_v42 = vand.u32 4294901760, %v10448_v14  ;;  %v5045_v44 = vsub.f32 %v12334_v7, %v13064_v50 }
 0x673   : > { %9739 = vmatprep.subr.bf16.mxu0 %v11784_v18  ;;  %4652 = vadd.xlane.f32.xlu1 %v10446_v57  ;;  %v12347_v30 = vand.u32 4294901760, %v10450_v62  ;;  %v9742_v10 = vpack.c.bf16 %v5180_v28, %v5173_v9  ;;  %v13065_v57 = vand.u32 4294901760, %v12345_v6  ;;  %10459 = vpow2.f32 %v4468_v15 }
 0x674   : > { %9051 = vmatprep.mubr.f32.mxu0 %v5016_v49  ;;  %v5035_v16 = vsub.f32 %v12331_v52, %v13061_v13  ;;  %v12356_v47 = vsub.f32 %v10448_v14, %v12341_v42  ;;  %v5046_v14 = vand.u32 4294901760, %v5045_v44 }
 0x675   : > { %v10452_v61 = vpop.eup %10451  ;;  %9052 = vmatmul.mubr.f32.gmra.mrb[22].mxu0 %v5026_v19  ;;  %v12360_v20 = vsub.f32 %v10450_v62, %v12347_v30  ;;  %v5065_v28 = vsub.f32 %v12345_v6, %v13065_v57 }
 0x676   : > { %v10454_v49 = vpop.eup %10453  ;;  %9741 = vmatpush3.bf16.msra.mxu0 %v11784_v18  ;;  %4654 = vadd.xlane.f32.xlu0 %v10452_v61  ;;  %v5036_v13 = vand.u32 4294901760, %v5035_v16  ;;  %v13066_v54 = vand.u32 4294901760, %v12356_v47  ;;  %v12364_v23 = vand.u32 4294901760, %v10452_v61 }
 0x677   : > { %9743 = vmatprep.subr.bf16.mxu0 %v9742_v10  ;;  %4656 = vadd.xlane.f32.xlu1 %v10450_v62  ;;  %v12370_v9 = vand.u32 4294901760, %v10454_v49 }
 0x678   : > { %9054 = vmatprep.mubr.f32.mxu0 %v5036_v13  ;;  %v5055_v18 = vsub.f32 %v12356_v47, %v13066_v54  ;;  %v12376_v16 = vsub.f32 %v10452_v61, %v12364_v23  ;;  %v5066_v13 = vand.u32 4294901760, %v5065_v28  ;;  %v13199_v54 = vand.u32 4294901760, %v12360_v20 }
 0x679   : > { %v10456_v50 = vpop.eup %10455  ;;  %9055 = vmatmul.mubr.f32.gmra.mrb[24].mxu0 %v5046_v14  ;;  %v12379_v62 = vsub.f32 %v10454_v49, %v12370_v9 }
 0x67a   : > { %9745 = vmatpush3.bf16.msra.mxu0 %v9742_v10  ;;  %4658 = vadd.xlane.f32.xlu0 %v10456_v50  ;;  %v5056_v44 = vand.u32 4294901760, %v5055_v18  ;;  %v5074_v57 = vand.u32 4294901760, %v12376_v16  ;;  %v12382_v19 = vand.u32 4294901760, %v10456_v50  ;;  %v5085_v61 = vsub.f32 %v12360_v20, %v13199_v54 }
 0x67b   : > { %9747 = vmatprep.subr.bf16.mxu0 %v12190_v35  ;;  %4660 = vadd.xlane.f32.xlu1 %v10454_v49  ;;  %v5104_v14 = vand.u32 4294901760, %v12379_v62  ;;  %v12418_v31 = vpop.eup %10457 }
 0x67c   : > { %9057 = vmatprep.mubr.f32.mxu0 %v5056_v44  ;;  %v5075_v10 = vsub.f32 %v12376_v16, %v5074_v57  ;;  %v12393_v18 = vsub.f32 %v10456_v50, %v12382_v19  ;;  %v5086_v28 = vand.u32 4294901760, %v5085_v61  ;;  %v13207_v61 = vld [vmem:[#allocation45_spill] sm:$0xff] }
 0x67d   : > { %9058 = vmatmul.mubr.f32.gmra.mrb[26].mxu0 %v5066_v13  ;;  %v5105_v44 = vsub.f32 %v12379_v62, %v5104_v14  ;;  %v13202_v13 = vld [vmem:[#allocation44_spill] sm:$0xff]  ;;  %v12425_v38 = vpop.eup %10459 }
 0x67e   : > { %9749 = vmatpush3.bf16.msra.mxu0 %v12190_v35  ;;  %v5076_v49 = vand.u32 4294901760, %v5075_v10  ;;  %v5094_v54 = vand.u32 4294901760, %v12393_v18 }
 0x67f   : > { %9751 = vmatprep.subr.bf16.mxu0 %v12205_v58  ;;  %v5106_v35 = vand.u32 4294901760, %v5105_v44 }
 0x680   : > { %9060 = vmatprep.mubr.f32.mxu0 %v5076_v49  ;;  %v5095_v50 = vsub.f32 %v12393_v18, %v5094_v54  ;;  %v13208_v49 = vand.u32 4294901760, %v12233_v41 }
 0x681   : > { %9061 = vmatmul.mubr.f32.gmra.mrb[28].mxu0 %v5086_v28  ;;  %v13209_v28 = vand.u32 4294901760, %v12266_v33 }
 0x682   : > { %9753 = vmatpush3.bf16.msra.mxu0 %v12205_v58  ;;  %v5096_v24 = vand.u32 4294901760, %v5095_v50  ;;  %v9774_v58 = vpack.c.bf16 %v12146_v53, %v12248_v8  ;;  %v13210_v50 = vld [vmem:[#allocation47_spill] sm:$0xff] }
 0x683   : > { %9755 = vmatprep.subr.bf16.mxu0 %v12215_v32 }
 0x684   : > { %9063 = vmatprep.mubr.f32.mxu0 %v5096_v24 }
 0x685   : > { %9064 = vmatmul.mubr.f32.gmra.mrb[30].mxu0 %v5106_v35  ;;  %v13215_v35 = vand.u32 4294901760, %v12308_v37 }
 0x686   : > { %9757 = vmatpush3.bf16.msra.mxu0 %v12215_v32  ;;  %9098 = vmatprep.mubr.f32.mxu0 %v12235_v56  ;;  %v13206_v32 = vand.u32 4294901760, %v12243_v3 }
 0x687   : > { %9759 = vmatprep.subr.bf16.mxu0 %v13202_v13 }
 0x689   : > { %9099 = vmatmul.mubr.f32.vlgmr.msra.gmra.mrb[16].mxu0 %v12228_v45 }
 0x68a   : > { %9761 = vmatpush3.bf16.msra.mxu0 %v13202_v13  ;;  %9101 = vmatprep.mubr.f32.mxu0 %v12257_v51 }
 0x68b   : > { %9763 = vmatprep.subr.bf16.mxu0 %v13203_v60 }
 0x68c   : > { %4783 = vperm.xlu1 %10395, %v12418_v31  }
 0x68d   : > { %9102 = vmatmul.mubr.f32.gmra.mrb[18].mxu0 %v12240_v1 }
 0x68e   : > { %9765 = vmatpush3.bf16.msra.mxu0 %v13203_v60  ;;  %9104 = vmatprep.mubr.f32.mxu0 %v12275_v25  ;;  %v13218_v60 = vand.u32 4294901760, %v12248_v8  ;;  %v13223_v8 = vld [vmem:[#allocation18_spill] sm:$0xff] }
 0x68f   : > { %9767 = vmatprep.subr.bf16.mxu0 %v11758_v59 }
 0x690   : > { %4788 = vperm.xlu0 %10396, %v12425_v38  }
 0x691   : > { %9105 = vmatmul.mubr.f32.gmra.mrb[20].mxu0 %v12268_v39 }
 0x692   : > { %9769 = vmatpush3.bf16.msra.mxu0 %v11758_v59  ;;  %9107 = vmatprep.mubr.f32.mxu0 %v12294_v46  ;;  %v13204_v59 = vld [vmem:[#allocation43_spill] sm:$0xff] }
 0x693   : > { %9771 = vmatprep.subr.bf16.mxu0 %v11772_v21 }
 0x695   : > { %9108 = vmatmul.mubr.f32.gmra.mrb[22].mxu0 %v12290_v5 }
 0x696   : > { %9773 = vmatpush3.bf16.msra.mxu0 %v11772_v21  ;;  %9110 = vmatprep.mubr.f32.mxu0 %v12318_v11  ;;  %v12476_v21 = vpop.permute.xlu0 %4713 }
 0x697   : > { %9775 = vmatprep.subr.bf16.mxu0 %v9774_v58 }
 0x699   : > { %9111 = vmatmul.mubr.f32.gmra.mrb[24].mxu0 %v12314_v12 }
 0x69a   : > { %9777 = vmatpush3.bf16.msra.mxu0 %v9774_v58  ;;  %9113 = vmatprep.mubr.f32.mxu0 %v12341_v42  ;;  %v13219_v58 = vand.u32 4294901760, %v12146_v53 }
 0x69b   : > { %9779 = vmatprep.subr.bf16.mxu0 %v12169_v27 }
 0x69d   : > { %9114 = vmatmul.mubr.f32.gmra.mrb[26].mxu0 %v12336_v4 }
 0x69e   : > { %9781 = vmatpush3.bf16.msra.mxu0 %v12169_v27  ;;  %9116 = vmatprep.mubr.f32.mxu0 %v12364_v23  ;;  %v13205_v27 = vld [vmem:[#allocation23_spill] sm:$0xff] }
 0x69f   : > { %9783 = vmatprep.subr.bf16.mxu0 %v12183_v55 }
 0x6a1   : > { %9117 = vmatmul.mubr.f32.gmra.mrb[28].mxu0 %v12347_v30 }
 0x6a2   : > { %9785 = vmatpush3.bf16.msra.mxu0 %v12183_v55  ;;  %9119 = vmatprep.mubr.f32.mxu0 %v12382_v19  ;;  %v12485_v55 = vpop.permute.xlu0 %4728 }
 0x6a3   : > { %9787 = vmatprep.subr.bf16.mxu0 %v12196_v0 }
 0x6a5   : > { %9120 = vmatmul.mubr.f32.gmra.mrb[30].mxu0 %v12370_v9 }
 0x6a6   : > { %9789 = vmatpush3.bf16.msra.mxu0 %v12196_v0  ;;  %9154 = vmatprep.mubr.f32.mxu0 %v12243_v3  ;;  %v12482_v0 = vpop.permute.xlu1 %4718  ;;  %v12499_v44 = vpop.permute.xlu0 %4738  ;;  %v13212_v3 = vand.u32 4294901760, %v12286_v40 }
 0x6a7   : > { %9791 = vmatprep.subr.bf16.mxu0 %v13204_v59 }
 0x6a9   : > { %9155 = vmatmul.mubr.f32.vlgmr.msra.gmra.mrb[16].mxu0 %v12233_v41  ;;  %v13213_v41 = vld [vmem:[#allocation48_spill] sm:$0xff] }
 0x6aa   : > { %9793 = vmatpush3.bf16.msra.mxu0 %v13204_v59  ;;  %9157 = vmatprep.mubr.f32.mxu0 %v12266_v33  ;;  %v12492_v10 = vpop.permute.xlu1 %4723  ;;  %v12510_v24 = vpop.permute.xlu0 %4748  ;;  %v13214_v33 = vand.u32 4294901760, %v12278_v48 }
 0x6ab   : > { %9795 = vmatprep.subr.bf16.mxu0 %v11741_v26 }
 0x6ad   : > { %9158 = vmatmul.mubr.f32.gmra.mrb[18].mxu0 %v12251_v17  ;;  %v13216_v17 = vld [vmem:[#allocation49_spill] sm:$0xff] }
 0x6ae   : > { %9797 = vmatpush3.bf16.msra.mxu0 %v11741_v26  ;;  %9160 = vmatprep.mubr.f32.mxu0 %v12286_v40  ;;  %v12507_v15 = vpop.permute.xlu1 %4733  ;;  %v13217_v40 = vand.u32 4294901760, %v12302_v36 }
 0x6af   : > { %9799 = vmatprep.subr.bf16.mxu0 %v11751_v63 }
 0x6b1   : > { %9161 = vmatmul.mubr.f32.gmra.mrb[20].mxu0 %v12278_v48  ;;  %v13220_v48 = vand.u32 4294901760, %v12331_v52 }
 0x6b2   : > { %9801 = vmatpush3.bf16.msra.mxu0 %v11751_v63  ;;  %9163 = vmatprep.mubr.f32.mxu0 %v12308_v37  ;;  %v12518_v13 = vpop.permute.xlu1 %4743  ;;  %v13221_v37 = vand.u32 4294901760, %v12334_v7 }
 0x6b3   : > { %9803 = vmatprep.subr.bf16.mxu0 %v11762_v22 }
 0x6b5   : > { %9164 = vmatmul.mubr.f32.gmra.mrb[22].mxu0 %v12302_v36  ;;  %v13222_v36 = vand.u32 4294901760, %v12356_v47 }
 0x6b6   : > { %9805 = vmatpush3.bf16.msra.mxu0 %v11762_v22  ;;  %9166 = vmatprep.mubr.f32.mxu0 %v12331_v52 }
 0x6b7   : > { %9807 = vmatprep.subr.bf16.mxu0 %v12141_v2 }
 0x6b9   : > { %9167 = vmatmul.mubr.f32.gmra.mrb[24].mxu0 %v12334_v7  ;;  %v13225_v7 = vld [vmem:[#allocation24_spill] sm:$0xff] }
 0x6ba   : > { %9809 = vmatpush3.bf16.msra.mxu0 %v12141_v2  ;;  %9169 = vmatprep.mubr.f32.mxu0 %v12356_v47  ;;  %v13226_v47 = vand.u32 4294901760, %v12360_v20 }
 0x6bb   : > { %9811 = vmatprep.subr.bf16.mxu0 %v12154_v34 }
 0x6bd   : > { %9170 = vmatmul.mubr.f32.gmra.mrb[26].mxu0 %v12345_v6 }
 0x6be   : > { %9813 = vmatpush3.bf16.msra.mxu0 %v12154_v34  ;;  %9172 = vmatprep.mubr.f32.mxu0 %v12376_v16 }
 0x6bf   : > { %9815 = vmatprep.subr.bf16.mxu0 %v12171_v43 }
 0x6c1   : > { %9173 = vmatmul.mubr.f32.gmra.mrb[28].mxu0 %v12360_v20 }
 0x6c2   : > { %9817 = vmatpush3.bf16.msra.mxu0 %v12171_v43  ;;  %9175 = vmatprep.mubr.f32.mxu0 %v12393_v18 }
 0x6c3   : > { %9819 = vmatprep.subr.bf16.mxu0 %v13205_v27 }
 0x6c5   : > { %9176 = vmatmul.mubr.f32.gmra.mrb[30].mxu0 %v12379_v62  ;;  %v13229_v62 = vld [vmem:[#allocation12_spill] sm:$0xff] }
 0x6c6   : > { %9821 = vmatpush3.bf16.msra.mxu0 %v13205_v27  ;;  %9210 = vmatprep.mubr.f32.mxu0 %v13206_v32  ;;  %v9838_v32 = vpack.c.bf16 %v13219_v58, %v13218_v60  ;;  %v13231_v60 = vld [vmem:[#allocation34_spill] sm:$0xff] }
 0x6c7   : > { %9823 = vmatprep.subr.bf16.mxu0 %v13207_v61 }
 0x6c9   : > { %9211 = vmatmul.mubr.f32.vlgmr.msra.gmra.mrb[16].mxu0 %v13208_v49  ;;  %v12535_v49 = vpop.permute.xlu1 %4753 }
 0x6ca   : > { %9825 = vmatpush3.bf16.msra.mxu0 %v13207_v61  ;;  %9213 = vmatprep.mubr.f32.mxu0 %v13209_v28  ;;  %v12529_v61 = vpop.permute.xlu0 %4758  ;;  %v13224_v28 = vand.u32 4294901760, %v12345_v6  ;;  %v13227_v6 = vld [vmem:[#allocation27_spill] sm:$0xff] }
 0x6cb   : > { %9827 = vmatprep.subr.bf16.mxu0 %v13210_v50 }
 0x6cd   : > { %9214 = vmatmul.mubr.f32.gmra.mrb[18].mxu0 %v13211_v29  ;;  %v12546_v52 = vpop.permute.xlu1 %4763  ;;  %v4599_v29 = vld [vmem:[#allocation4 + $0x8] sm:$0xff] }
 0x6ce   : > { %9829 = vmatpush3.bf16.msra.mxu0 %v13210_v50  ;;  %9216 = vmatprep.mubr.f32.mxu0 %v13212_v3  ;;  %v12538_v53 = vpop.permute.xlu0 %4768 }
 0x6cf   : > { %9831 = vmatprep.subr.bf16.mxu0 %v13213_v41 }
 0x6d1   : > { %9217 = vmatmul.mubr.f32.gmra.mrb[20].mxu0 %v13214_v33  ;;  %v12561_v16 = vpop.permute.xlu1 %4773  ;;  %v4601_v33 = vld [vmem:[#allocation4 + $0x18] sm:$0xff] }
 0x6d2   : > { %9833 = vmatpush3.bf16.msra.mxu0 %v13213_v41  ;;  %9219 = vmatprep.mubr.f32.mxu0 %v13215_v35  ;;  %v12553_v50 = vpop.permute.xlu0 %4778  ;;  %v4600_v35 = vld [vmem:[#allocation4 + $0x10] sm:$0xff] }
 0x6d3   : > { %9835 = vmatprep.subr.bf16.mxu0 %v13216_v17  ;;  %v4616_v58 = vmul.f32 %v13231_v60, %v4600_v35  ;;  %v4606_v35 = vld [vmem:[#allocation4 + $0x40] sm:$0xff] }
 0x6d5   : > { %9220 = vmatmul.mubr.f32.gmra.mrb[22].mxu0 %v13217_v40  ;;  %v13230_v40 = vld [vmem:[#allocation32_spill] sm:$0xff] }
 0x6d6   : > { %9837 = vmatpush3.bf16.msra.mxu0 %v13216_v17  ;;  %9222 = vmatprep.mubr.f32.mxu0 %v13220_v48 }
 0x6d7   : > { %9839 = vmatprep.subr.bf16.mxu0 %v9838_v32 }
 0x6d9   : > { %9223 = vmatmul.mubr.f32.gmra.mrb[24].mxu0 %v13221_v37  ;;  %v4603_v37 = vld [vmem:[#allocation4 + $0x28] sm:$0xff] }
 0x6da   : > { %9841 = vmatpush3.bf16.msra.mxu0 %v9838_v32  ;;  %9225 = vmatprep.mubr.f32.mxu0 %v13222_v36  ;;  %v4602_v36 = vld [vmem:[#allocation4 + $0x20] sm:$0xff] }
 0x6db   : > { %9843 = vmatprep.subr.bf16.mxu0 %v13223_v8 }
 0x6dd   : > { %9226 = vmatmul.mubr.f32.gmra.mrb[26].mxu0 %v13224_v28 }
 0x6de   : > { %9845 = vmatpush3.bf16.msra.mxu0 %v13223_v8  ;;  %9228 = vmatprep.mubr.f32.mxu0 %v5074_v57  ;;  %v13228_v57 = vld [vmem:[#allocation31_spill] sm:$0xff] }
 0x6df   : > { %9847 = vmatprep.subr.bf16.mxu0 %v13225_v7  ;;  %v4615_v20 = vmul.f32 %v13228_v57, %v4599_v29 }
 0x6e1   : > { %9229 = vmatmul.mubr.f32.gmra.mrb[28].mxu0 %v13226_v47  ;;  %v13233_v47 = vld [vmem:[#allocation35_spill] sm:$0xff] }
 0x6e2   : > { %9849 = vmatpush3.bf16.msra.mxu0 %v13225_v7  ;;  %9231 = vmatprep.mubr.f32.mxu0 %v5094_v54  ;;  %v4598_v54 = vld [vmem:[#allocation4] sm:$0xff] }
 0x6e3   : > { %9851 = vmatprep.subr.bf16.mxu0 %v13227_v6 }
 0x6e5   : > { %9232 = vmatmul.mubr.f32.gmra.mrb[30].mxu0 %v5104_v14  ;;  %v4614_v14 = vmul.f32 %v13229_v62, %v4598_v54 }
 0x6e6   : > { %9853 = vmatpush3.bf16.msra.mxu0 %v13227_v6  ;;  %9266 = vmatprep.mubr.f32.mxu0 %v12235_v56  ;;  %v4618_v6 = vmul.f32 %v13233_v47, %v4602_v36  ;;  %v4608_v36 = vld [vmem:[#allocation4 + $0x50] sm:$0xff] }
 0x6e7   : > { %9855 = vmatprep.subr.bf16.mxu0 %v13204_v59  ;;  %v4633_v18 = vpop.xlane.xlu0 %4632 }
 0x6e8   : > { %v4663_v3 = vadd.f32 %v4633_v18, %v4615_v20  ;;  %v4604_v20 = vld [vmem:[#allocation4 + $0x30] sm:$0xff] }
 0x6e9   : > { %9267 = vmatmul.mubr.f32.vlgmr.msra.gmra.mrb[16].mxu0 %v12228_v45 }
 0x6ea   : > { %4680 = vst.msk [vmem:[#allocation4 + $0x8] sm:$0xff] %vm4678_vm3, %v4663_v3  ;;  %9857 = vmatpush3.bf16.msra.mxu0 %v13204_v59  ;;  %9269 = vmatprep.mubr.f32.mxu0 %v12257_v51  ;;  %v4617_v59 = vmul.f32 %v13230_v40, %v4601_v33  ;;  %v4605_v3 = vld [vmem:[#allocation4 + $0x38] sm:$0xff] }
 0x6eb   : > { %9859 = vmatprep.subr.bf16.mxu0 %v11741_v26  ;;  %v4631_v41 = vpop.xlane.xlu1 %4630 }
 0x6ec   : > { %v4662_v17 = vadd.f32 %v4631_v41, %v4614_v14  ;;  %v13235_v14 = vld [vmem:[#allocation15_spill] sm:$0xff] }
 0x6ed   : > { %9270 = vmatmul.mubr.f32.gmra.mrb[18].mxu0 %v12240_v1  ;;  %v4621_v41 = vmul.f32 %v13235_v14, %v4605_v3  ;;  %v4611_v3 = vld [vmem:[#allocation4 + $0x68] sm:$0xff]  ;;  %v13241_v14 = vld [vmem:[#allocation10_spill] sm:$0xff] }
 0x6ee   : > { %4679 = vst.msk [vmem:[#allocation4] sm:$0xff] %vm4678_vm3, %v4662_v17  ;;  %9861 = vmatpush3.bf16.msra.mxu0 %v11741_v26  ;;  %9272 = vmatprep.mubr.f32.mxu0 %v12275_v25  ;;  %v13232_v26 = vld [vmem:[#allocation33_spill] sm:$0xff] }
 0x6ef   : > { %9863 = vmatprep.subr.bf16.mxu0 %v11751_v63  ;;  %v4637_v32 = vpop.xlane.xlu1 %4636  ;;  %v4635_v48 = vpop.xlane.xlu0 %4634  ;;  %v4619_v7 = vmul.f32 %v13232_v26, %v4603_v37  ;;  %v4609_v26 = vld [vmem:[#allocation4 + $0x58] sm:$0xff] }
 0x6f0   : > { %v4665_v8 = vadd.f32 %v4637_v32, %v4617_v59  ;;  %v4664_v28 = vadd.f32 %v4635_v48, %v4616_v58  ;;  %v4607_v59 = vld [vmem:[#allocation4 + $0x48] sm:$0xff]  ;;  %v13237_v32 = vld [vmem:[#allocation21_spill] sm:$0xff] }
 0x6f1   : > { %9273 = vmatmul.mubr.f32.gmra.mrb[20].mxu0 %v12268_v39  ;;  %v4623_v48 = vmul.f32 %v13237_v32, %v4607_v59  ;;  %v4613_v59 = vld [vmem:[#allocation4 + $0x78] sm:$0xff] }
 0x6f2   : > { %4682 = vst.msk [vmem:[#allocation4 + $0x18] sm:$0xff] %vm4678_vm3, %v4665_v8  ;;  %4681 = vst.msk [vmem:[#allocation4 + $0x10] sm:$0xff] %vm4678_vm3, %v4664_v28  ;;  %9865 = vmatpush3.bf16.msra.mxu0 %v11751_v63  ;;  %9275 = vmatprep.mubr.f32.mxu0 %v12294_v46  ;;  %v13234_v63 = vld [vmem:[#allocation22_spill] sm:$0xff] }
 0x6f3   : > { %9867 = vmatprep.subr.bf16.mxu0 %v11762_v22  ;;  %v4641_v29 = vpop.xlane.xlu1 %4640  ;;  %v4639_v57 = vpop.xlane.xlu0 %4638  ;;  %v4620_v62 = vmul.f32 %v13234_v63, %v4604_v20  ;;  %v4610_v20 = vld [vmem:[#allocation4 + $0x60] sm:$0xff] }
 0x6f4   : > { %v4667_v18 = vadd.f32 %v4641_v29, %v4619_v7  ;;  %v4666_v54 = vadd.f32 %v4639_v57, %v4618_v6  ;;  %v13239_v6 = vld [vmem:[#allocation25_spill] sm:$0xff] }
 0x6f5   : > { %9276 = vmatmul.mubr.f32.gmra.mrb[22].mxu0 %v12290_v5  ;;  %v4625_v29 = vmul.f32 %v13239_v6, %v4609_v26 }
 0x6f6   : > { %4684 = vst.msk [vmem:[#allocation4 + $0x28] sm:$0xff] %vm4678_vm3, %v4667_v18  ;;  %4683 = vst.msk [vmem:[#allocation4 + $0x20] sm:$0xff] %vm4678_vm3, %v4666_v54  ;;  %9869 = vmatpush3.bf16.msra.mxu0 %v11762_v22  ;;  %9278 = vmatprep.mubr.f32.mxu0 %v12318_v11  ;;  %v13236_v22 = vld [vmem:[#allocation26_spill] sm:$0xff] }
 0x6f7   : > { %9871 = vmatprep.subr.bf16.mxu0 %v12141_v2  ;;  %v4643_v33 = vpop.xlane.xlu0 %4642  ;;  %v4622_v58 = vmul.f32 %v13236_v22, %v4606_v35  ;;  %v4612_v35 = vld [vmem:[#allocation4 + $0x70] sm:$0xff]  ;;  %v4629_v22 = vmul.f32 %v12425_v38, %v4613_v59  ;;  %v4710_v59 = vld [vmem:[#allocation5 + $0x78] sm:$0xff] }
 0x6f8   : > { %v4645_v17 = vpop.xlane.xlu1 %4644  ;;  %v4668_v40 = vadd.f32 %v4643_v33, %v4620_v62 }
 0x6f9   : > { %v4669_v60 = vadd.f32 %v4645_v17, %v4621_v41  ;;  %9279 = vmatmul.mubr.f32.gmra.mrb[24].mxu0 %v12314_v12  ;;  %v4627_v41 = vmul.f32 %v13241_v14, %v4611_v3  ;;  %v4708_v14 = vld [vmem:[#allocation5 + $0x68] sm:$0xff] }
 0x6fa   : > { %4685 = vst.msk [vmem:[#allocation4 + $0x30] sm:$0xff] %vm4678_vm3, %v4668_v40  ;;  %9873 = vmatpush3.bf16.msra.mxu0 %v12141_v2  ;;  %9281 = vmatprep.mubr.f32.mxu0 %v12341_v42  ;;  %v13238_v2 = vld [vmem:[#allocation28_spill] sm:$0xff] }
 0x6fb   : > { %4686 = vst.msk [vmem:[#allocation4 + $0x38] sm:$0xff] %vm4678_vm3, %v4669_v60  ;;  %9875 = vmatprep.subr.bf16.mxu0 %v12154_v34  ;;  %v4647_v37 = vpop.xlane.xlu0 %4646  ;;  %v4624_v47 = vmul.f32 %v13238_v2, %v4608_v36  ;;  %v4701_v36 = vld [vmem:[#allocation5 + $0x30] sm:$0xff]  ;;  %v4704_v2 = vld [vmem:[#allocation5 + $0x48] sm:$0xff] }
 0x6fc   : > { %v4649_v8 = vpop.xlane.xlu1 %4648  ;;  %v4670_v28 = vadd.f32 %v4647_v37, %v4622_v58 }
 0x6fd   : > { %v4671_v7 = vadd.f32 %v4649_v8, %v4623_v48  ;;  %9282 = vmatmul.mubr.f32.gmra.mrb[26].mxu0 %v12336_v4 }
 0x6fe   : > { %4687 = vst.msk [vmem:[#allocation4 + $0x40] sm:$0xff] %vm4678_vm3, %v4670_v28  ;;  %9877 = vmatpush3.bf16.msra.mxu0 %v12154_v34  ;;  %9284 = vmatprep.mubr.f32.mxu0 %v12364_v23  ;;  %v13240_v34 = vld [vmem:[#allocation29_spill] sm:$0xff] }
 0x6ff   : > { %4688 = vst.msk [vmem:[#allocation4 + $0x48] sm:$0xff] %vm4678_vm3, %v4671_v7  ;;  %9879 = vmatprep.subr.bf16.mxu0 %v12171_v43  ;;  %v4651_v57 = vpop.xlane.xlu0 %4650  ;;  %v4626_v62 = vmul.f32 %v13240_v34, %v4610_v20  ;;  %v4797_v7 = vmul.f32 %v12518_v13, %v4701_v36 }
 0x700   : > { %v4653_v18 = vpop.xlane.xlu1 %4652  ;;  %v4672_v54 = vadd.f32 %v4651_v57, %v4624_v47  ;;  %v4703_v47 = vld [vmem:[#allocation5 + $0x40] sm:$0xff]  ;;  %v4800_v57 = vmul.f32 %v12529_v61, %v4704_v2 }
 0x701   : > { %v4673_v63 = vadd.f32 %v4653_v18, %v4625_v29  ;;  %9285 = vmatmul.mubr.f32.gmra.mrb[28].mxu0 %v12347_v30  ;;  %v4799_v20 = vmul.f32 %v12535_v49, %v4703_v47  ;;  %v4706_v18 = vld [vmem:[#allocation5 + $0x58] sm:$0xff] }
 0x702   : > { %4689 = vst.msk [vmem:[#allocation4 + $0x50] sm:$0xff] %vm4678_vm3, %v4672_v54  ;;  %9881 = vmatpush3.bf16.msra.mxu0 %v12171_v43  ;;  %9287 = vmatprep.mubr.f32.mxu0 %v12382_v19  ;;  %v4628_v43 = vmul.f32 %v12418_v31, %v4612_v35  ;;  %v4705_v54 = vld [vmem:[#allocation5 + $0x50] sm:$0xff]  ;;  %v4802_v34 = vmul.f32 %v12538_v53, %v4706_v18 }
 0x703   : > { %4690 = vst.msk [vmem:[#allocation4 + $0x58] sm:$0xff] %vm4678_vm3, %v4673_v63  ;;  %9883 = vmatprep.subr.bf16.mxu0 %v13205_v27  ;;  %v4655_v33 = vpop.xlane.xlu0 %4654 }
 0x704   : > { %v4657_v17 = vpop.xlane.xlu1 %4656  ;;  %v4674_v40 = vadd.f32 %v4655_v33, %v4626_v62  ;;  %v4801_v62 = vmul.f32 %v12546_v52, %v4705_v54  ;;  %v4709_v52 = vld [vmem:[#allocation5 + $0x70] sm:$0xff] }
 0x705   : > { %v4675_v60 = vadd.f32 %v4657_v17, %v4627_v41  ;;  %9288 = vmatmul.mubr.f32.gmra.mrb[30].mxu0 %v12370_v9  ;;  %v4707_v41 = vld [vmem:[#allocation5 + $0x60] sm:$0xff]  ;;  %v4804_v17 = vmul.f32 %v12553_v50, %v4708_v14 }
 0x706   : > { %4691 = vst.msk [vmem:[#allocation4 + $0x60] sm:$0xff] %vm4678_vm3, %v4674_v40  ;;  %9885 = vmatpush3.bf16.msra.mxu0 %v13205_v27  ;;  %9322 = vmatprep.mubr.f32.mxu0 %v12235_v56  ;;  %v4695_v56 = vld [vmem:[#allocation5] sm:$0xff]  ;;  %v4702_v27 = vld [vmem:[#allocation5 + $0x38] sm:$0xff]  ;;  %v4803_v40 = vmul.f32 %v12561_v16, %v4707_v41 }
 0x707   : > { %4692 = vst.msk [vmem:[#allocation4 + $0x68] sm:$0xff] %vm4678_vm3, %v4675_v60  ;;  %v4659_v58 = vpop.xlane.xlu0 %4658  ;;  %v4798_v26 = vmul.f32 %v12510_v24, %v4702_v27 }
 0x708   : > { %v4661_v32 = vpop.xlane.xlu1 %4660  ;;  %v4676_v48 = vadd.f32 %v4659_v58, %v4628_v43 }
 0x709   : > { %v4677_v37 = vadd.f32 %v4661_v32, %v4629_v22  ;;  %9323 = vmatmul.mubr.f32.vlgmr.msra.gmra.mrb[16].mxu0 %v12228_v45  ;;  %v4696_v45 = vld [vmem:[#allocation5 + $0x8] sm:$0xff] }
 0x70a   : > { %4693 = vst.msk [vmem:[#allocation4 + $0x70] sm:$0xff] %vm4678_vm3, %v4676_v48  ;;  %9325 = vmatprep.mubr.f32.mxu0 %v12257_v51  ;;  %v4698_v51 = vld [vmem:[#allocation5 + $0x18] sm:$0xff] }
 0x70b   : > { %4694 = vst.msk [vmem:[#allocation4 + $0x78] sm:$0xff] %vm4678_vm3, %v4677_v37 }
 0x70c   : > { %v4784_v43 = vpop.permute.xlu1 %4783 }
 0x70d   : > { %9326 = vmatmul.mubr.f32.gmra.mrb[18].mxu0 %v12240_v1  ;;  %v4791_v1 = vmul.f32 %v12476_v21, %v4695_v56  ;;  %v4805_v37 = vmul.f32 %v4784_v43, %v4709_v52 }
 0x70e   : > { %9328 = vmatprep.mubr.f32.mxu0 %v12275_v25  ;;  %v4792_v25 = vmul.f32 %v12482_v0, %v4696_v45 }
 0x70f   : > { %v4789_v53 = vpop.permute.xlu0 %4788 }
 0x710   : > { %v4806_v48 = vmul.f32 %v4789_v53, %v4710_v59 }
 0x711   : > { %9329 = vmatmul.mubr.f32.gmra.mrb[20].mxu0 %v12268_v39  ;;  %v6239_v27 = vld [vmem:[#allocation4 + $0x70] sm:$0xff] (!%p7668_p10) }
 0x712   : > { %9331 = vmatprep.mubr.f32.mxu0 %v12294_v46 }
 0x715   : > { %9332 = vmatmul.mubr.f32.gmra.mrb[22].mxu0 %v12290_v5  ;;  %v4697_v5 = vld [vmem:[#allocation5 + $0x10] sm:$0xff] }
 0x716   : > { %9334 = vmatprep.mubr.f32.mxu0 %v12318_v11  ;;  %v4793_v11 = vmul.f32 %v12492_v10, %v4697_v5  ;;  %v6226_v5 = vld [vmem:[#allocation4 + $0x8] sm:$0xff] (!%p7668_p10) }
 0x719   : > { %9335 = vmatmul.mubr.f32.gmra.mrb[24].mxu0 %v12314_v12 }
 0x71a   : > { %9337 = vmatprep.mubr.f32.mxu0 %v12341_v42 }
 0x71d   : > { %9338 = vmatmul.mubr.f32.gmra.mrb[26].mxu0 %v12336_v4  ;;  %v4700_v4 = vld [vmem:[#allocation5 + $0x28] sm:$0xff] }
 0x71e   : > { %9340 = vmatprep.mubr.f32.mxu0 %v12364_v23  ;;  %v4794_v23 = vmul.f32 %v12485_v55, %v4698_v51  ;;  %v4796_v21 = vmul.f32 %v12499_v44, %v4700_v4  ;;  %v10555_v51 = vmov (!%p7668_p10), 0   ;;  %v6233_v4 = vld [vmem:[#allocation4 + $0x40] sm:$0xff] (!%p7668_p10) }
 0x71f   : > { %10462 = vset.pattern.permute.xlu1 (!%p7668_p10), %v10555_v51  ;;  %10461 = vset.pattern.permute.xlu0 (!%p7668_p10), %v10555_v51 }
 0x721   : > { %9341 = vmatmul.mubr.f32.gmra.mrb[28].mxu0 %v12347_v30 }
 0x722   : > { %9343 = vmatprep.mubr.f32.mxu0 %v12382_v19  ;;  %v4699_v19 = vld [vmem:[#allocation5 + $0x20] sm:$0xff] }
 0x723   : > { %v4795_v0 = vmul.f32 %v12507_v15, %v4699_v19  ;;  %v6235_v19 = vld [vmem:[#allocation4 + $0x50] sm:$0xff] (!%p7668_p10) }
 0x725   : > { %9344 = vmatmul.mubr.f32.gmra.mrb[30].mxu0 %v12370_v9 }
 0x7dc   : > { %v9324_v39 = vpop.f32.mrb[16].mxu0 }
 0x7dd   : > { %v6158_v42 = vadd.f32 %v9324_v39, %v4792_v25  ;;  %v6063_v46 = vpop.f32.mrb[17].mxu0  ;;  %v6227_v25 = vld [vmem:[#allocation4 + $0x10] sm:$0xff] (!%p7668_p10)  ;;  %v6228_v39 = vld [vmem:[#allocation4 + $0x18] sm:$0xff] (!%p7668_p10) }
 0x7de   : > { %v6157_v12 = vadd.f32 %v6063_v46, %v4791_v1  ;;  %v6225_v1 = vld [vmem:[#allocation4] sm:$0xff] (!%p7668_p10)  ;;  %6253 = vperm.xlu1 (!%p7668_p10), %10462, %v6227_v25  }
 0x7df   : > { %6174 = vst.msk [vmem:[#allocation5 + $0x8] sm:$0xff] %vm1708_vm2, %v6158_v42  ;;  %6243 = vperm.xlu0 (!%p7668_p10), %10461, %v6225_v1   ;;  %v6230_v42 = vld [vmem:[#allocation4 + $0x28] sm:$0xff] (!%p7668_p10)  ;;  %v6229_v46 = vld [vmem:[#allocation4 + $0x20] sm:$0xff] (!%p7668_p10) }
 0x7e0   : > { %6173 = vst.msk [vmem:[#allocation5] sm:$0xff] %vm1708_vm2, %v6157_v12  ;;  %v9327_v30 = vpop.f32.mrb[18].mxu0  ;;  %v6232_v12 = vld [vmem:[#allocation4 + $0x38] sm:$0xff] (!%p7668_p10) }
 0x7e1   : > { %v6160_v9 = vadd.f32 %v9327_v30, %v4794_v23  ;;  %v6075_v31 = vpop.f32.mrb[19].mxu0  ;;  %v6231_v23 = vld [vmem:[#allocation4 + $0x30] sm:$0xff] (!%p7668_p10)  ;;  %v6236_v30 = vld [vmem:[#allocation4 + $0x58] sm:$0xff] (!%p7668_p10) }
 0x7e2   : > { %v6159_v38 = vadd.f32 %v6075_v31, %v4793_v11  ;;  %6258 = vperm.xlu1 (!%p7668_p10), %10462, %v6228_v39   ;;  %v6234_v11 = vld [vmem:[#allocation4 + $0x48] sm:$0xff] (!%p7668_p10) }
 0x7e3   : > { %6176 = vst.msk [vmem:[#allocation5 + $0x18] sm:$0xff] %vm1708_vm2, %v6160_v9  ;;  %6248 = vperm.xlu0 (!%p7668_p10), %10461, %v6226_v5   ;;  %v6353_v9 = vld [vmem:[%s12972_s7] sm:$0xff] (!%p7668_p10)  ;;  %v6238_v31 = vld [vmem:[#allocation4 + $0x68] sm:$0xff] (!%p7668_p10) }
 0x7e4   : > { %6175 = vst.msk [vmem:[#allocation5 + $0x10] sm:$0xff] %vm1708_vm2, %v6159_v38  ;;  %v9330_v55 = vpop.f32.mrb[20].mxu0  ;;  %v6237_v38 = vld [vmem:[#allocation4 + $0x60] sm:$0xff] (!%p7668_p10) }
 0x7e5   : > { %v6162_v10 = vadd.f32 %v9330_v55, %v4796_v21  ;;  %v6087_v8 = vpop.f32.mrb[21].mxu0  ;;  %v12675_v21 = vand.u32 (!%p7668_p10), 4294901760, %v6353_v9 }
 0x7e6   : > { %v6161_v28 = vadd.f32 %v6087_v8, %v4795_v0  ;;  %6268 = vperm.xlu1 (!%p7668_p10), %10462, %v6230_v42   ;;  %v6240_v0 = vld [vmem:[#allocation4 + $0x78] sm:$0xff] (!%p7668_p10) }
 0x7e7   : > { %6178 = vst.msk [vmem:[#allocation5 + $0x28] sm:$0xff] %vm1708_vm2, %v6162_v10  ;;  %6263 = vperm.xlu0 (!%p7668_p10), %10461, %v6229_v46   ;;  %9424 = vmatprep.subr.mxu0 (!%p7668_p10), %v12675_v21  ;;  %v12682_v55 = vsub.f32 (!%p7668_p10), %v6353_v9, %v12675_v21 }
 0x7e8   : > { %6177 = vst.msk [vmem:[#allocation5 + $0x20] sm:$0xff] %vm1708_vm2, %v6161_v28  ;;  %v9333_v44 = vpop.f32.mrb[22].mxu0  ;;  %9346 = vmatprep.subr.mxu1 (!%p7668_p10), %v12675_v21  ;;  %9425 = vmatpush3.msra.mxu0 (!%p7668_p10), %v12675_v21 }
 0x7e9   : > { %v6164_v15 = vadd.f32 %v9333_v44, %v4798_v26  ;;  %v6099_v6 = vpop.f32.mrb[23].mxu0  ;;  %9347 = vmatpush3.msra.mxu1 (!%p7668_p10), %v12675_v21  ;;  %v12685_v36 = vand.u32 (!%p7668_p10), 4294901760, %v12682_v55 }
 0x7ea   : > { %v6163_v29 = vadd.f32 %v6099_v6, %v4797_v7  ;;  %6278 = vperm.xlu1 (!%p7668_p10), %10462, %v6232_v12   ;;  %v6209_v6 = vld [vmem:[#allocation5] sm:$0xff] (!%p7668_p10) }
 0x7eb   : > { %6180 = vst.msk [vmem:[#allocation5 + $0x38] sm:$0xff] %vm1708_vm2, %v6164_v15  ;;  %6273 = vperm.xlu0 (!%p7668_p10), %10461, %v6231_v23   ;;  %v6639_v10 = vsub.f32 (!%p7668_p10), %v12682_v55, %v12685_v36  ;;  %9450 = vmatprep.subr.mxu0 (!%p7668_p10), %v12685_v36  ;;  %v6211_v15 = vld [vmem:[#allocation5 + $0x10] sm:$0xff] (!%p7668_p10) }
 0x7ec   : > { %6179 = vst.msk [vmem:[#allocation5 + $0x30] sm:$0xff] %vm1708_vm2, %v6163_v29  ;;  %v9336_v24 = vpop.f32.mrb[24].mxu0 }
 0x7ed   : > { %v6166_v13 = vadd.f32 %v9336_v24, %v4800_v57  ;;  %v6111_v3 = vpop.f32.mrb[25].mxu0  ;;  %v12690_v8 = vand.u32 (!%p7668_p10), 4294901760, %v6639_v10 }
 0x7ee   : > { %v6165_v63 = vadd.f32 %v6111_v3, %v4799_v20  ;;  %6288 = vperm.xlu1 (!%p7668_p10), %10462, %v6234_v11   ;;  %v6210_v3 = vld [vmem:[#allocation5 + $0x8] sm:$0xff] (!%p7668_p10) }
 0x7ef   : > { %6182 = vst.msk [vmem:[#allocation5 + $0x48] sm:$0xff] %vm1708_vm2, %v6166_v13  ;;  %6283 = vperm.xlu0 (!%p7668_p10), %10461, %v6233_v4   ;;  %9372 = vmatprep.subr.mxu1 (!%p7668_p10), %v12690_v8  ;;  %v6212_v13 = vld [vmem:[#allocation5 + $0x18] sm:$0xff] (!%p7668_p10)  ;;  %v6214_v59 = vld [vmem:[#allocation5 + $0x28] sm:$0xff] (!%p7668_p10)  ;;  %v6213_v52 = vld [vmem:[#allocation5 + $0x20] sm:$0xff] (!%p7668_p10) }
 0x7f0   : > { %6181 = vst.msk [vmem:[#allocation5 + $0x40] sm:$0xff] %vm1708_vm2, %v6165_v63  ;;  %v9339_v61 = vpop.f32.mrb[26].mxu0 }
 0x7f1   : > { %v6168_v49 = vadd.f32 %v9339_v61, %v4802_v34  ;;  %v6123_v33 = vpop.f32.mrb[27].mxu0 }
 0x7f2   : > { %v6167_v35 = vadd.f32 %v6123_v33, %v4801_v62  ;;  %6298 = vperm.xlu1 (!%p7668_p10), %10462, %v6236_v30   ;;  %v6216_v51 = vld [vmem:[#allocation5 + $0x38] sm:$0xff] (!%p7668_p10) }
 0x7f3   : > { %6184 = vst.msk [vmem:[#allocation5 + $0x58] sm:$0xff] %vm1708_vm2, %v6168_v49  ;;  %6293 = vperm.xlu0 (!%p7668_p10), %10461, %v6235_v19   ;;  %v6215_v46 = vld [vmem:[#allocation5 + $0x30] sm:$0xff] (!%p7668_p10) }
 0x7f4   : > { %6183 = vst.msk [vmem:[#allocation5 + $0x50] sm:$0xff] %vm1708_vm2, %v6167_v35  ;;  %v9342_v60 = vpop.f32.mrb[28].mxu0 }
 0x7f5   : > { %v6170_v22 = vadd.f32 %v9342_v60, %v4804_v17  ;;  %v6135_v58 = vpop.f32.mrb[29].mxu0 }
 0x7f6   : > { %v6169_v32 = vadd.f32 %v6135_v58, %v4803_v40  ;;  %6208 = sbr.rel (%p7668_p10) target bundleno = 2481 (0x9b1), region = 64  ;;  %6308 = vperm.xlu1 (!%p7668_p10), %10462, %v6238_v31  }
 0x7f7   : > { %6186 = vst.msk [vmem:[#allocation5 + $0x68] sm:$0xff] %vm1708_vm2, %v6170_v22  ;;  %6303 = vperm.xlu0 (!%p7668_p10), %10461, %v6237_v38  }
 0x7f8   : > { %6185 = vst.msk [vmem:[#allocation5 + $0x60] sm:$0xff] %vm1708_vm2, %v6169_v32  ;;  %v9345_v50 = vpop.f32.mrb[30].mxu0 }
 0x7f9   : > { %v6172_v45 = vadd.f32 %v9345_v50, %v4806_v48  ;;  %v6147_v56 = vpop.f32.mrb[31].mxu0 }
 0x7fa   : > { %v6171_v16 = vadd.f32 %v6147_v56, %v4805_v37  ;;  %6318 = vperm.xlu1 (!%p7668_p10), %10462, %v6240_v0  }
 0x7fb   : > { %6188 = vst.msk [vmem:[#allocation5 + $0x78] sm:$0xff] %vm1708_vm2, %v6172_v45  ;;  %6313 = vperm.xlu0 (!%p7668_p10), %10461, %v6239_v27  }
 0x7fc   : > { %6187 = vst.msk [vmem:[#allocation5 + $0x70] sm:$0xff] %vm1708_vm2, %v6171_v16 }
 0x85d   : > { %v6254_v28 = vpop.permute.xlu1 %6253 }
 0x85e   : > { %v6244_v26 = vpop.permute.xlu0 %6243  ;;  %10463 = vrcp.f32 %v6254_v28 }
 0x85f   : > { %10465 = vrcp.f32 %v6244_v26 }
 0x861   : > { %v6259_v7 = vpop.permute.xlu1 %6258 }
 0x862   : > { %v6249_v2 = vpop.permute.xlu0 %6248  ;;  %10467 = vrcp.f32 %v6259_v7 }
 0x863   : > { %10469 = vrcp.f32 %v6249_v2  ;;  %v6218_v2 = vld [vmem:[#allocation5 + $0x48] sm:$0xff] }
 0x865   : > { %v6269_v44 = vpop.permute.xlu1 %6268 }
 0x866   : > { %v6264_v47 = vpop.permute.xlu0 %6263  ;;  %10471 = vrcp.f32 %v6269_v44 }
 0x867   : > { %10473 = vrcp.f32 %v6264_v47 }
 0x868   : > { %v10464_v29 = vpop.eup %10463 }
 0x869   : > { %v10466_v57 = vpop.eup %10465  ;;  %v6279_v20 = vpop.permute.xlu1 %6278  ;;  %v6326_v24 = vmul.f32 %v10464_v29, %v6211_v15 }
 0x86a   : > { %v6274_v18 = vpop.permute.xlu0 %6273  ;;  %10475 = vrcp.f32 %v6279_v20  ;;  %v6322_v54 = vmul.f32 %v10466_v57, %v6209_v6  ;;  %v6217_v6 = vld [vmem:[#allocation5 + $0x40] sm:$0xff] }
 0x86b   : > { %10477 = vrcp.f32 %v6274_v18  ;;  %v6368_v63 = vsel %vm1708_vm2, %v6326_v24, 0 }
 0x86c   : > { %v10468_v34 = vpop.eup %10467  ;;  %v6362_v62 = vsel %vm1708_vm2, %v6322_v54, 0  ;;  %v12695_v14 = vand.u32 4294901760, %v6368_v63 }
 0x86d   : > { %v10470_v61 = vpop.eup %10469  ;;  %v6289_v41 = vpop.permute.xlu1 %6288  ;;  %v12697_v33 = vand.u32 4294901760, %v6362_v62  ;;  %v6328_v35 = vmul.f32 %v10468_v34, %v6212_v13 }
 0x86e   : > { %v6284_v49 = vpop.permute.xlu0 %6283  ;;  %10479 = vrcp.f32 %v6289_v41  ;;  %v6324_v17 = vmul.f32 %v10470_v61, %v6210_v3  ;;  %v12700_v40 = vsub.f32 %v6368_v63, %v12695_v14 }
 0x86f   : > { %10481 = vrcp.f32 %v6284_v49  ;;  %v12703_v53 = vsub.f32 %v6362_v62, %v12697_v33  ;;  %v6371_v60 = vsel %vm1708_vm2, %v6328_v35, 0  ;;  %v6220_v35 = vld [vmem:[#allocation5 + $0x58] sm:$0xff] }
 0x870   : > { %v10472_v43 = vpop.eup %10471  ;;  %v6365_v22 = vsel %vm1708_vm2, %v6324_v17, 0  ;;  %v6497_v58 = vand.u32 4294901760, %v12700_v40  ;;  %v12708_v32 = vand.u32 4294901760, %v6371_v60 }
 0x871   : > { %v10474_v48 = vpop.eup %10473  ;;  %v6299_v37 = vpop.permute.xlu1 %6298  ;;  %v6477_v45 = vand.u32 4294901760, %v12703_v53  ;;  %v12711_v56 = vand.u32 4294901760, %v6365_v22  ;;  %v6332_v16 = vmul.f32 %v10472_v43, %v6214_v59 }
 0x872   : > { %v6294_v50 = vpop.permute.xlu0 %6293  ;;  %10483 = vrcp.f32 %v6299_v37  ;;  %v12714_v25 = vsub.f32 %v6371_v60, %v12708_v32  ;;  %v6330_v1 = vmul.f32 %v10474_v48, %v6213_v52  ;;  %v6498_v11 = vsub.f32 %v12700_v40, %v6497_v58  ;;  %v6219_v52 = vld [vmem:[#allocation5 + $0x50] sm:$0xff] }
 0x873   : > { %10485 = vrcp.f32 %v6294_v50  ;;  %9426 = vmatprep.mubr.f32.mxu0 %v6477_v45  ;;  %v6478_v39 = vsub.f32 %v12703_v53, %v6477_v45  ;;  %v12718_v5 = vsub.f32 %v6365_v22, %v12711_v56  ;;  %v6377_v42 = vsel %vm1708_vm2, %v6332_v16, 0 }
 0x874   : > { %v10476_v12 = vpop.eup %10475  ;;  %v6507_v23 = vand.u32 4294901760, %v12714_v25  ;;  %v6374_v4 = vsel %vm1708_vm2, %v6330_v1, 0  ;;  %v12724_v30 = vand.u32 4294901760, %v6377_v42  ;;  %v6499_v57 = vand.u32 4294901760, %v6498_v11 }
 0x875   : > { %v10478_v19 = vpop.eup %10477  ;;  %v6309_v9 = vpop.permute.xlu1 %6308  ;;  %v6479_v38 = vand.u32 4294901760, %v6478_v39  ;;  %v6487_v0 = vand.u32 4294901760, %v12718_v5  ;;  %v12727_v27 = vand.u32 4294901760, %v6374_v4  ;;  %v6336_v10 = vmul.f32 %v10476_v12, %v6216_v51 }
 0x876   : > { %v6304_v31 = vpop.permute.xlu0 %6303  ;;  %10487 = vrcp.f32 %v6309_v9  ;;  %v6508_v28 = vsub.f32 %v12714_v25, %v6507_v23  ;;  %v12731_v26 = vsub.f32 %v6377_v42, %v12724_v30  ;;  %v6334_v7 = vmul.f32 %v10478_v19, %v6215_v46  ;;  %v6222_v42 = vld [vmem:[#allocation5 + $0x68] sm:$0xff] }
 0x877   : > { %10489 = vrcp.f32 %v6304_v31  ;;  %9348 = vmatprep.mubr.f32.mxu1 %v6479_v38  ;;  %9427 = vmatmul.mubr.f32.vlgmr.msra.gmra.mrb[0].mxu0 %v6487_v0  ;;  %v6488_v44 = vsub.f32 %v12718_v5, %v6487_v0  ;;  %v12735_v47 = vsub.f32 %v6374_v4, %v12727_v27  ;;  %v6383_v15 = vsel %vm1708_vm2, %v6336_v10, 0  ;;  %v6221_v4 = vld [vmem:[#allocation5 + $0x60] sm:$0xff] }
 0x878   : > { %v10480_v29 = vpop.eup %10479  ;;  %9429 = vmatprep.mubr.f32.mxu0 %v6497_v58  ;;  %9451 = vmatpush3.msra.mxu0 %v12685_v36  ;;  %v6527_v20 = vand.u32 4294901760, %v12731_v26  ;;  %v6380_v18 = vsel %vm1708_vm2, %v6334_v7, 0  ;;  %v12741_v24 = vand.u32 4294901760, %v6383_v15  ;;  %v6509_v41 = vand.u32 4294901760, %v6508_v28 }
 0x879   : > { %v10482_v54 = vpop.eup %10481  ;;  %v6319_v13 = vpop.permute.xlu1 %6318  ;;  %v6489_v63 = vand.u32 4294901760, %v6488_v44  ;;  %v6517_v34 = vand.u32 4294901760, %v12735_v47  ;;  %v12744_v62 = vand.u32 4294901760, %v6380_v18  ;;  %v6340_v61 = vmul.f32 %v10480_v29, %v6218_v2  ;;  %9476 = vmatprep.subr.mxu0 %v12675_v21  ;;  %v6224_v29 = vld [vmem:[#allocation5 + $0x78] sm:$0xff] }
 0x87a   : > { %v6314_v3 = vpop.permute.xlu0 %6313  ;;  %10491 = vrcp.f32 %v6319_v13  ;;  %v12748_v36 = vsub.f32 %v6383_v15, %v12741_v24  ;;  %v6338_v49 = vmul.f32 %v10482_v54, %v6217_v6  ;;  %v6528_v22 = vsub.f32 %v12731_v26, %v6527_v20  ;;  %v6223_v13 = vld [vmem:[#allocation5 + $0x70] sm:$0xff] }
 0x87b   : > { %10493 = vrcp.f32 %v6314_v3  ;;  %9349 = vmatmul.mubr.f32.vlgmr.msra.gmra.mrb[0].mxu1 %v6489_v63  ;;  %9430 = vmatmul.mubr.f32.gmra.mrb[2].mxu0 %v6507_v23  ;;  %v6518_v17 = vsub.f32 %v12735_v47, %v6517_v34  ;;  %v12752_v59 = vsub.f32 %v6380_v18, %v12744_v62  ;;  %v6389_v60 = vsel %vm1708_vm2, %v6340_v61, 0 }
 0x87c   : > { %v10484_v43 = vpop.eup %10483  ;;  %9373 = vmatpush3.msra.mxu1 %v12690_v8  ;;  %9351 = vmatprep.mubr.f32.mxu1 %v6499_v57  ;;  %v6547_v58 = vand.u32 4294901760, %v12748_v36  ;;  %v6386_v48 = vsel %vm1708_vm2, %v6338_v49, 0  ;;  %v12759_v37 = vand.u32 4294901760, %v6389_v60  ;;  %v6529_v9 = vand.u32 4294901760, %v6528_v22 }
 0x87d   : > { %v10486_v50 = vpop.eup %10485  ;;  %9432 = vmatprep.mubr.f32.mxu0 %v6517_v34  ;;  %v6519_v45 = vand.u32 4294901760, %v6518_v17  ;;  %v6537_v16 = vand.u32 4294901760, %v12752_v59  ;;  %v12762_v1 = vand.u32 4294901760, %v6386_v48  ;;  %v6344_v51 = vmul.f32 %v10484_v43, %v6220_v35  ;;  %9398 = vmatprep.subr.mxu1 %v12682_v55 }
 0x87e   : > { %v12766_v8 = vsub.f32 %v6389_v60, %v12759_v37  ;;  %v6342_v39 = vmul.f32 %v10486_v50, %v6219_v52  ;;  %v6548_v23 = vsub.f32 %v12748_v36, %v6547_v58 }
 0x87f   : > { %9352 = vmatmul.mubr.f32.gmra.mrb[2].mxu1 %v6509_v41  ;;  %9433 = vmatmul.mubr.f32.gmra.mrb[4].mxu0 %v6527_v20  ;;  %v6538_v46 = vsub.f32 %v12752_v59, %v6537_v16  ;;  %v12770_v12 = vsub.f32 %v6386_v48, %v12762_v1  ;;  %v6395_v11 = vsel %vm1708_vm2, %v6344_v51, 0 }
 0x880   : > { %v10488_v19 = vpop.eup %10487  ;;  %9354 = vmatprep.mubr.f32.mxu1 %v6519_v45  ;;  %9435 = vmatprep.mubr.f32.mxu0 %v6537_v16  ;;  %v6567_v31 = vand.u32 4294901760, %v12766_v8  ;;  %v6392_v38 = vsel %vm1708_vm2, %v6342_v39, 0  ;;  %v12776_v0 = vand.u32 4294901760, %v6395_v11  ;;  %v6549_v57 = vand.u32 4294901760, %v6548_v23 }
 0x881   : > { %v10490_v10 = vpop.eup %10489  ;;  %v6539_v28 = vand.u32 4294901760, %v6538_v46  ;;  %v6557_v7 = vand.u32 4294901760, %v12770_v12  ;;  %v12779_v2 = vand.u32 4294901760, %v6392_v38  ;;  %v6348_v44 = vmul.f32 %v10488_v19, %v6222_v42 }
 0x882   : > { %v12782_v15 = vsub.f32 %v6395_v11, %v12776_v0  ;;  %v6346_v6 = vmul.f32 %v10490_v10, %v6221_v4  ;;  %v6568_v63 = vsub.f32 %v12766_v8, %v6567_v31 }
 0x883   : > { %9355 = vmatmul.mubr.f32.gmra.mrb[4].mxu1 %v6529_v9  ;;  %9436 = vmatmul.mubr.f32.gmra.mrb[6].mxu0 %v6547_v58  ;;  %v6558_v20 = vsub.f32 %v12770_v12, %v6557_v7  ;;  %v12786_v18 = vsub.f32 %v6392_v38, %v12779_v2  ;;  %v6401_v54 = vsel %vm1708_vm2, %v6348_v44, 0 }
 0x884   : > { %v10492_v3 = vpop.eup %10491  ;;  %9357 = vmatprep.mubr.f32.mxu1 %v6539_v28  ;;  %9438 = vmatprep.mubr.f32.mxu0 %v6557_v7  ;;  %v6587_v34 = vand.u32 4294901760, %v12782_v15  ;;  %v6398_v61 = vsel %vm1708_vm2, %v6346_v6, 0  ;;  %v12792_v41 = vand.u32 4294901760, %v6401_v54  ;;  %v6569_v45 = vand.u32 4294901760, %v6568_v63 }
 0x885   : > { %v10494_v49 = vpop.eup %10493  ;;  %v6559_v35 = vand.u32 4294901760, %v6558_v20  ;;  %v6577_v17 = vand.u32 4294901760, %v12786_v18  ;;  %v12795_v60 = vand.u32 4294901760, %v6398_v61  ;;  %v6352_v52 = vmul.f32 %v10492_v3, %v6224_v29 }
 0x886   : > { %v12798_v43 = vsub.f32 %v6401_v54, %v12792_v41  ;;  %v6350_v22 = vmul.f32 %v10494_v49, %v6223_v13  ;;  %v6588_v16 = vsub.f32 %v12782_v15, %v6587_v34 }
 0x887   : > { %9358 = vmatmul.mubr.f32.gmra.mrb[6].mxu1 %v6549_v57  ;;  %9439 = vmatmul.mubr.f32.gmra.mrb[8].mxu0 %v6567_v31  ;;  %v6578_v58 = vsub.f32 %v12786_v18, %v6577_v17  ;;  %v12802_v48 = vsub.f32 %v6398_v61, %v12795_v60  ;;  %v6407_v50 = vsel %vm1708_vm2, %v6352_v52, 0 }
 0x888   : > { %9360 = vmatprep.mubr.f32.mxu1 %v6559_v35  ;;  %9441 = vmatprep.mubr.f32.mxu0 %v6577_v17  ;;  %v6404_v51 = vsel %vm1708_vm2, %v6350_v22, 0  ;;  %v12807_v39 = vand.u32 4294901760, %v6407_v50  ;;  %v6607_v23 = vand.u32 4294901760, %v12798_v43  ;;  %v6589_v31 = vand.u32 4294901760, %v6588_v16 }
 0x889   : > { %v6579_v42 = vand.u32 4294901760, %v6578_v58  ;;  %v6597_v46 = vand.u32 4294901760, %v12802_v48  ;;  %v12811_v11 = vand.u32 4294901760, %v6404_v51 }
 0x88a   : > { %v12814_v4 = vsub.f32 %v6407_v50, %v12807_v39  ;;  %v6608_v28 = vsub.f32 %v12798_v43, %v6607_v23 }
 0x88b   : > { %9361 = vmatmul.mubr.f32.gmra.mrb[8].mxu1 %v6569_v45  ;;  %9442 = vmatmul.mubr.f32.gmra.mrb[10].mxu0 %v6587_v34  ;;  %v6598_v19 = vsub.f32 %v12802_v48, %v6597_v46  ;;  %v12818_v9 = vsub.f32 %v6404_v51, %v12811_v11 }
 0x88c   : > { %9363 = vmatprep.mubr.f32.mxu1 %v6579_v42  ;;  %9444 = vmatprep.mubr.f32.mxu0 %v6597_v46  ;;  %v6627_v7 = vand.u32 4294901760, %v12814_v4  ;;  %v6609_v6 = vand.u32 4294901760, %v6608_v28 }
 0x88d   : > { %v6599_v38 = vand.u32 4294901760, %v6598_v19  ;;  %v6617_v10 = vand.u32 4294901760, %v12818_v9 }
 0x88e   : > { %v6628_v57 = vsub.f32 %v12814_v4, %v6627_v7 }
 0x88f   : > { %9364 = vmatmul.mubr.f32.gmra.mrb[10].mxu1 %v6589_v31  ;;  %9445 = vmatmul.mubr.f32.gmra.mrb[12].mxu0 %v6607_v23  ;;  %v6618_v44 = vsub.f32 %v12818_v9, %v6617_v10 }
 0x890   : > { %9366 = vmatprep.mubr.f32.mxu1 %v6599_v38  ;;  %9447 = vmatprep.mubr.f32.mxu0 %v6617_v10  ;;  %v6629_v20 = vand.u32 4294901760, %v6628_v57 }
 0x891   : > { %v6619_v29 = vand.u32 4294901760, %v6618_v44 }
 0x893   : > { %9367 = vmatmul.mubr.f32.gmra.mrb[12].mxu1 %v6609_v6  ;;  %9448 = vmatmul.mubr.f32.gmra.mrb[14].mxu0 %v6627_v7 }
 0x894   : > { %9369 = vmatprep.mubr.f32.mxu1 %v6619_v29  ;;  %9452 = vmatprep.mubr.f32.mxu0 %v12697_v33 }
 0x897   : > { %9370 = vmatmul.mubr.f32.gmra.mrb[14].mxu1 %v6629_v20  ;;  %9453 = vmatmul.mubr.f32.vlgmr.msra.gmra.mrb[0].mxu0 %v12711_v56 }
 0x898   : > { %9374 = vmatprep.mubr.f32.mxu1 %v12697_v33  ;;  %9455 = vmatprep.mubr.f32.mxu0 %v12695_v14 }
 0x899   : > { %9477 = vmatpush3.msra.mxu0 %v12675_v21 }
 0x89b   : > { %9375 = vmatmul.mubr.f32.vlgmr.msra.gmra.mrb[0].mxu1 %v12711_v56  ;;  %9456 = vmatmul.mubr.f32.gmra.mrb[2].mxu0 %v12708_v32 }
 0x89c   : > { %9399 = vmatpush3.msra.mxu1 %v12682_v55  ;;  %9377 = vmatprep.mubr.f32.mxu1 %v12695_v14 }
 0x89d   : > { %9458 = vmatprep.mubr.f32.mxu0 %v12727_v27 }
 0x89f   : > { %9378 = vmatmul.mubr.f32.gmra.mrb[2].mxu1 %v12708_v32  ;;  %9459 = vmatmul.mubr.f32.gmra.mrb[4].mxu0 %v12724_v30 }
 0x8a0   : > { %9380 = vmatprep.mubr.f32.mxu1 %v12727_v27  ;;  %9461 = vmatprep.mubr.f32.mxu0 %v12744_v62 }
 0x8a3   : > { %9381 = vmatmul.mubr.f32.gmra.mrb[4].mxu1 %v12724_v30  ;;  %9462 = vmatmul.mubr.f32.gmra.mrb[6].mxu0 %v12741_v24 }
 0x8a4   : > { %9383 = vmatprep.mubr.f32.mxu1 %v12744_v62  ;;  %9464 = vmatprep.mubr.f32.mxu0 %v12762_v1 }
 0x8a7   : > { %9384 = vmatmul.mubr.f32.gmra.mrb[6].mxu1 %v12741_v24  ;;  %9465 = vmatmul.mubr.f32.gmra.mrb[8].mxu0 %v12759_v37 }
 0x8a8   : > { %9386 = vmatprep.mubr.f32.mxu1 %v12762_v1  ;;  %9467 = vmatprep.mubr.f32.mxu0 %v12779_v2 }
 0x8ab   : > { %9387 = vmatmul.mubr.f32.gmra.mrb[8].mxu1 %v12759_v37  ;;  %9468 = vmatmul.mubr.f32.gmra.mrb[10].mxu0 %v12776_v0 }
 0x8ac   : > { %9389 = vmatprep.mubr.f32.mxu1 %v12779_v2  ;;  %9470 = vmatprep.mubr.f32.mxu0 %v12795_v60 }
 0x8af   : > { %9390 = vmatmul.mubr.f32.gmra.mrb[10].mxu1 %v12776_v0  ;;  %9471 = vmatmul.mubr.f32.gmra.mrb[12].mxu0 %v12792_v41 }
 0x8b0   : > { %9392 = vmatprep.mubr.f32.mxu1 %v12795_v60  ;;  %9473 = vmatprep.mubr.f32.mxu0 %v12811_v11 }
 0x8b3   : > { %9393 = vmatmul.mubr.f32.gmra.mrb[12].mxu1 %v12792_v41  ;;  %9474 = vmatmul.mubr.f32.gmra.mrb[14].mxu0 %v12807_v39 }
 0x8b4   : > { %9395 = vmatprep.mubr.f32.mxu1 %v12811_v11  ;;  %9478 = vmatprep.mubr.f32.mxu0 %v12697_v33 }
 0x8b7   : > { %9396 = vmatmul.mubr.f32.gmra.mrb[14].mxu1 %v12807_v39  ;;  %9479 = vmatmul.mubr.f32.vlgmr.msra.gmra.mrb[0].mxu0 %v12711_v56 }
 0x8b8   : > { %9400 = vmatprep.mubr.f32.mxu1 %v12703_v53  ;;  %9481 = vmatprep.mubr.f32.mxu0 %v12695_v14  ;;  %v12894_v14 = vld [vmem:[%s12973_s8] ss:$0 sm:$0xff] }
 0x8bb   : > { %9401 = vmatmul.mubr.f32.vlgmr.msra.gmra.mrb[0].mxu1 %v12718_v5  ;;  %9482 = vmatmul.mubr.f32.gmra.mrb[2].mxu0 %v12708_v32 }
 0x8bc   : > { %9403 = vmatprep.mubr.f32.mxu1 %v12700_v40  ;;  %9484 = vmatprep.mubr.f32.mxu0 %v12727_v27 }
 0x8bf   : > { %9404 = vmatmul.mubr.f32.gmra.mrb[2].mxu1 %v12714_v25  ;;  %9485 = vmatmul.mubr.f32.gmra.mrb[4].mxu0 %v12724_v30 }
 0x8c0   : > { %9406 = vmatprep.mubr.f32.mxu1 %v12735_v47  ;;  %9487 = vmatprep.mubr.f32.mxu0 %v12744_v62 }
 0x8c3   : > { %9407 = vmatmul.mubr.f32.gmra.mrb[4].mxu1 %v12731_v26  ;;  %9488 = vmatmul.mubr.f32.gmra.mrb[6].mxu0 %v12741_v24 }
 0x8c4   : > { %9409 = vmatprep.mubr.f32.mxu1 %v12752_v59  ;;  %9490 = vmatprep.mubr.f32.mxu0 %v12762_v1 }
 0x8c7   : > { %9410 = vmatmul.mubr.f32.gmra.mrb[6].mxu1 %v12748_v36  ;;  %9491 = vmatmul.mubr.f32.gmra.mrb[8].mxu0 %v12759_v37 }
 0x8c8   : > { %9412 = vmatprep.mubr.f32.mxu1 %v12770_v12  ;;  %9493 = vmatprep.mubr.f32.mxu0 %v12779_v2 }
 0x8cb   : > { %9413 = vmatmul.mubr.f32.gmra.mrb[8].mxu1 %v12766_v8  ;;  %9494 = vmatmul.mubr.f32.gmra.mrb[10].mxu0 %v12776_v0 }
 0x8cc   : > { %9415 = vmatprep.mubr.f32.mxu1 %v12786_v18  ;;  %9496 = vmatprep.mubr.f32.mxu0 %v12795_v60 }
 0x8cf   : > { %9416 = vmatmul.mubr.f32.gmra.mrb[10].mxu1 %v12782_v15  ;;  %9497 = vmatmul.mubr.f32.gmra.mrb[12].mxu0 %v12792_v41 }
 0x8d0   : > { %9418 = vmatprep.mubr.f32.mxu1 %v12802_v48  ;;  %9499 = vmatprep.mubr.f32.mxu0 %v12811_v11 }
 0x8d3   : > { %9419 = vmatmul.mubr.f32.gmra.mrb[12].mxu1 %v12798_v43  ;;  %9500 = vmatmul.mubr.f32.gmra.mrb[14].mxu0 %v12807_v39 }
 0x8d4   : > { %9421 = vmatprep.mubr.f32.mxu1 %v12818_v9 }
 0x8d7   : > { %9422 = vmatmul.mubr.f32.gmra.mrb[14].mxu1 %v12814_v4 }
 0x98a   : > { %v9480_v21 = vpop.f32.mrb[0].mxu0 }
 0x98b   : > { %v7406_v55 = vpop.f32.mrb[1].mxu0 }
 0x98e   : > { %v9402_v33 = vpop.f32.mrb[0].mxu1  ;;  %v9483_v40 = vpop.f32.mrb[2].mxu0 }
 0x98f   : > { %v10238_v53 = vadd.f32 %v9402_v33, %v12894_v14  ;;  %v6871_v32 = vpop.f32.mrb[1].mxu1  ;;  %v7418_v56 = vpop.f32.mrb[3].mxu0 }
 0x990   : > { %v10240_v25 = vadd.f32 %v12894_v14, %v6871_v32 }
 0x991   : > { %v10239_v5 = vadd.f32 %v10238_v53, %v9480_v21 }
 0x992   : > { %v10241_v30 = vadd.f32 %v10240_v25, %v7406_v55  ;;  %v9405_v27 = vpop.f32.mrb[2].mxu1  ;;  %v9486_v26 = vpop.f32.mrb[4].mxu0 }
 0x993   : > { %7501 = vst.msk [vmem:[%s10659_s29 + $0x8] sm:$0xff] %vm1708_vm2, %v10239_v5  ;;  %v10242_v47 = vadd.f32 %v9405_v27, %v12894_v14  ;;  %v6885_v24 = vpop.f32.mrb[3].mxu1  ;;  %v7430_v62 = vpop.f32.mrb[5].mxu0 }
 0x994   : > { %7500 = vst.msk [vmem:[%s10659_s29] sm:$0xff] %vm1708_vm2, %v10241_v30  ;;  %v10244_v36 = vadd.f32 %v12894_v14, %v6885_v24 }
 0x995   : > { %v10243_v59 = vadd.f32 %v10242_v47, %v9483_v40 }
 0x996   : > { %v10245_v37 = vadd.f32 %v10244_v36, %v7418_v56  ;;  %v9408_v1 = vpop.f32.mrb[4].mxu1  ;;  %v9489_v8 = vpop.f32.mrb[6].mxu0 }
 0x997   : > { %7503 = vst.msk [vmem:[%s10659_s29 + $0x18] sm:$0xff] %vm1708_vm2, %v10243_v59  ;;  %v10246_v12 = vadd.f32 %v9408_v1, %v12894_v14  ;;  %v6899_v0 = vpop.f32.mrb[5].mxu1  ;;  %v7442_v2 = vpop.f32.mrb[7].mxu0 }
 0x998   : > { %7502 = vst.msk [vmem:[%s10659_s29 + $0x10] sm:$0xff] %vm1708_vm2, %v10245_v37  ;;  %v10248_v15 = vadd.f32 %v12894_v14, %v6899_v0 }
 0x999   : > { %v10247_v18 = vadd.f32 %v10246_v12, %v9486_v26 }
 0x99a   : > { %v10249_v54 = vadd.f32 %v10248_v15, %v7430_v62  ;;  %v9411_v13 = vpop.f32.mrb[6].mxu1  ;;  %v9492_v3 = vpop.f32.mrb[8].mxu0 }
 0x99b   : > { %7505 = vst.msk [vmem:[%s10659_s29 + $0x28] sm:$0xff] %vm1708_vm2, %v10247_v18  ;;  %v10250_v63 = vadd.f32 %v9411_v13, %v12894_v14  ;;  %v6913_v34 = vpop.f32.mrb[7].mxu1  ;;  %v7454_v61 = vpop.f32.mrb[9].mxu0 }
 0x99c   : > { %7504 = vst.msk [vmem:[%s10659_s29 + $0x20] sm:$0xff] %vm1708_vm2, %v10249_v54  ;;  %v10252_v41 = vadd.f32 %v12894_v14, %v6913_v34 }
 0x99d   : > { %v10251_v49 = vadd.f32 %v10250_v63, %v9489_v8 }
 0x99e   : > { %v10253_v35 = vadd.f32 %v10252_v41, %v7442_v2  ;;  %v9414_v17 = vpop.f32.mrb[8].mxu1  ;;  %v9495_v60 = vpop.f32.mrb[10].mxu0 }
 0x99f   : > { %7507 = vst.msk [vmem:[%s10659_s29 + $0x38] sm:$0xff] %vm1708_vm2, %v10251_v49  ;;  %v10254_v52 = vadd.f32 %v9414_v17, %v12894_v14  ;;  %v6927_v43 = vpop.f32.mrb[9].mxu1  ;;  %v7466_v22 = vpop.f32.mrb[11].mxu0 }
 0x9a0   : > { %7506 = vst.msk [vmem:[%s10659_s29 + $0x30] sm:$0xff] %vm1708_vm2, %v10253_v35  ;;  %v10256_v58 = vadd.f32 %v12894_v14, %v6927_v43 }
 0x9a1   : > { %v10255_v48 = vadd.f32 %v10254_v52, %v9492_v3 }
 0x9a2   : > { %v10257_v50 = vadd.f32 %v10256_v58, %v7454_v61  ;;  %v9417_v45 = vpop.f32.mrb[10].mxu1  ;;  %v9498_v16 = vpop.f32.mrb[12].mxu0 }
 0x9a3   : > { %7509 = vst.msk [vmem:[%s10659_s29 + $0x48] sm:$0xff] %vm1708_vm2, %v10255_v48  ;;  %v10258_v51 = vadd.f32 %v9417_v45, %v12894_v14  ;;  %v6941_v39 = vpop.f32.mrb[11].mxu1  ;;  %v7478_v42 = vpop.f32.mrb[13].mxu0 }
 0x9a4   : > { %7508 = vst.msk [vmem:[%s10659_s29 + $0x40] sm:$0xff] %vm1708_vm2, %v10257_v50  ;;  %v10260_v46 = vadd.f32 %v12894_v14, %v6941_v39 }
 0x9a5   : > { %v10259_v23 = vadd.f32 %v10258_v51, %v9495_v60 }
 0x9a6   : > { %v10261_v11 = vadd.f32 %v10260_v46, %v7466_v22  ;;  %v9420_v4 = vpop.f32.mrb[12].mxu1  ;;  %v9501_v19 = vpop.f32.mrb[14].mxu0 }
 0x9a7   : > { %7511 = vst.msk [vmem:[%s10659_s29 + $0x58] sm:$0xff] %vm1708_vm2, %v10259_v23  ;;  %v10262_v9 = vadd.f32 %v9420_v4, %v12894_v14  ;;  %v6955_v31 = vpop.f32.mrb[13].mxu1  ;;  %v7490_v38 = vpop.f32.mrb[15].mxu0 }
 0x9a8   : > { %7510 = vst.msk [vmem:[%s10659_s29 + $0x50] sm:$0xff] %vm1708_vm2, %v10261_v11  ;;  %v10264_v10 = vadd.f32 %v12894_v14, %v6955_v31 }
 0x9a9   : > { %v10263_v28 = vadd.f32 %v10262_v9, %v9498_v16 }
 0x9aa   : > { %v10265_v7 = vadd.f32 %v10264_v10, %v7478_v42  ;;  %v9423_v44 = vpop.f32.mrb[14].mxu1 }
 0x9ab   : > { %7513 = vst.msk [vmem:[%s10659_s29 + $0x68] sm:$0xff] %vm1708_vm2, %v10263_v28  ;;  %v10266_v6 = vadd.f32 %v9423_v44, %v12894_v14  ;;  %v6969_v29 = vpop.f32.mrb[15].mxu1 }
 0x9ac   : > { %7512 = vst.msk [vmem:[%s10659_s29 + $0x60] sm:$0xff] %vm1708_vm2, %v10265_v7  ;;  %v10268_v57 = vadd.f32 %v12894_v14, %v6969_v29 }
 0x9ad   : > { %v10267_v20 = vadd.f32 %v10266_v6, %v9501_v19 }
 0x9ae   : > { %v10269_v21 = vadd.f32 %v10268_v57, %v7490_v38 }
 0x9af   : > { %7515 = vst.msk [vmem:[%s10659_s29 + $0x78] sm:$0xff] %vm1708_vm2, %v10267_v20 }
 0x9b0   : > { %7514 = vst.msk [vmem:[%s10659_s29 + $0x70] sm:$0xff] %vm1708_vm2, %v10269_v21 }
 0x9b1 PF: > { %s19_s15 = sadd.s32 1, %s10549_s15   ;;  %s13242_s11 = sld [smem:[#allocation6_spill]] }
 0x9b2   : > { %p16_p11 = scmp.ge.s32.totalorder %s19_s15, 10   ;;  %s13243_s19 = sld [smem:[#allocation7_spill]] }
 0x9b3   : > { %s13244_s22 = sld [smem:[#allocation8_spill]]  ;;  %s13245_s14 = sld [smem:[#allocation9_spill]] }
 0x9b4   : > { %s13246_s30 = smov %s10537_s12  ;;  %s13247_s10 = smov %s10541_s13 }
 0x9b5   :  { %18 = sbr.rel (!%p16_p11) target bundleno = 4 (0x4), region = 100 }
 0x9b8   : > { %s13248_s12 = smov %s13243_s19 }
 0x9b9   : > { %s13249_s13 = smov %s13244_s22 }

</bundles_post_ra>
